<compile_context>
chip_gen: v7x
topology: tpu7x:2x2x1
jax: 0.10.0
libtpu: 0.0.40
codegen_flags: <defaults>
</compile_context>

<pallas_src>
import functools

import jax
import jax.numpy as jnp
from jax.experimental import pallas as pl
from jax.experimental.pallas import tpu as pltpu


def _round_up(x, m):
    return ((x + m - 1) // m) * m


# ----------------------------------------------------------------------------
# Fused conv kernel: one grid step = one image's full (padded) layer output.
# ----------------------------------------------------------------------------
def _fused_conv_kernel(*refs, stride, kh, kw, ho, wo, relu, has_bias):
    # stride == 2: x_ref block (1, 4, ho+1, wo+1, cin)  (phase p = 2*(ki%2)+(kj%2))
    # stride == 1: x_ref block (1, ho+kh-1, wo+kw-1, cin)
    # w_ref: (kh*kw, cin, cout_pad)  fully VMEM-resident
    # b_ref: (1, cout_pad) f32       (only when has_bias)
    # o_ref: (1, ho*wo, cout_pad)
    if has_bias:
        x_ref, w_ref, b_ref, o_ref = refs
    else:
        x_ref, w_ref, o_ref = refs

    m = ho * wo
    cout = o_ref.shape[-1]

    # Bias folded into the accumulator init (saves a separate VPU add pass).
    if has_bias:
        acc = jnp.broadcast_to(b_ref[...], (m, cout)).astype(jnp.float32)
    else:
        acc = jnp.zeros((m, cout), jnp.float32)

    # Accumulate the kh*kw tap matmuls; every slice is static and contiguous.
    for ki in range(kh):
        for kj in range(kw):
            if stride == 2:
                p = 2 * (ki % 2) + (kj % 2)
                di, dj = ki // 2, kj // 2
                win = x_ref[0, p, di:di + ho, dj:dj + wo, :]
            else:
                win = x_ref[0, ki:ki + ho, kj:kj + wo, :]
            acc = acc + jnp.dot(win.reshape(m, -1), w_ref[ki * kw + kj],
                                preferred_element_type=jnp.float32)

    if relu:
        acc = jnp.maximum(acc, 0.0)
    o_ref[0] = acc.astype(o_ref.dtype)


def _fused_conv(x_block, w2, b2, *, stride, kh, kw, ho, wo, relu, out_dtype):
    n = x_block.shape[0]
    cp = w2.shape[-1]
    x_nd = x_block.ndim

    kernel = functools.partial(
        _fused_conv_kernel, stride=stride, kh=kh, kw=kw, ho=ho, wo=wo,
        relu=relu, has_bias=b2 is not None)

    in_specs = [
        pl.BlockSpec((1,) + x_block.shape[1:],
                     lambda i: (i,) + (0,) * (x_nd - 1)),
        pl.BlockSpec(w2.shape, lambda i: (0, 0, 0)),      # weight VMEM-resident
    ]
    operands = [x_block, w2]
    if b2 is not None:
        in_specs.append(pl.BlockSpec(b2.shape, lambda i: (0, 0)))
        operands.append(b2)

    return pl.pallas_call(
        kernel,
        out_shape=jax.ShapeDtypeStruct((n, ho * wo, cp), out_dtype),
        grid_spec=pltpu.PrefetchScalarGridSpec(
            num_scalar_prefetch=0,
            grid=(n,),                                     # one image per step
            in_specs=in_specs,
            out_specs=pl.BlockSpec((1, ho * wo, cp), lambda i: (i, 0, 0)),
        ),
        compiler_params=pltpu.CompilerParams(
            dimension_semantics=("parallel",)),            # both v7x TCs busy
    )(*operands)


# ----------------------------------------------------------------------------
# Layer wrappers (JAX side: pad + stride-phase reshape only, ~1x traffic)
# ----------------------------------------------------------------------------
def conv4x4_s2_relu_pallas(x, weight, bias, out_dtype):
    """Conv2d(k=4, stride=2, pad=1) + bias + ReLU on an NHWC activation."""
    n, h, w, cin = x.shape
    cout = weight.shape[0]
    assert h % 2 == 0 and w % 2 == 0
    ho, wo = h // 2, w // 2
    wo_k = _round_up(max(wo, 8), 8)          # tile-aligned in-kernel out width
    hq, wq = ho + 1, wo_k + 1
    cin_p = _round_up(cin, 8)
    cp = _round_up(cout, 128)

    # Zero-pad (conv pad=1 plus extra right columns for wo_k) and stride-phase
    # decompose:  x_ph[n, 2a+b, i, j, c] = x_pad[n, 2i+a, 2j+b, c].
    x_p = jnp.pad(x, ((0, 0), (1, 1), (1, 2 * wq - w - 1), (0, cin_p - cin))
                  ).astype(jnp.bfloat16)
    x_ph = (x_p.reshape(n, hq, 2, wq, 2, cin_p)
                .transpose(0, 2, 4, 1, 3, 5)
                .reshape(n, 4, hq, wq, cin_p))

    w2 = jnp.pad(weight.transpose(2, 3, 1, 0),             # (kh,kw,Cin,Cout)
                 ((0, 0), (0, 0), (0, cin_p - cin), (0, cp - cout))
                 ).reshape(16, cin_p, cp).astype(jnp.bfloat16)
    b2 = jnp.pad(bias.reshape(1, cout), ((0, 0), (0, cp - cout))
                 ).astype(jnp.float32)

    out = _fused_conv(x_ph, w2, b2, stride=2, kh=4, kw=4, ho=ho, wo=wo_k,
                      relu=True, out_dtype=out_dtype)
    return out.reshape(n, ho, wo_k, cp)[:, :, :wo, :cout]   # stays NHWC


def conv4x4_s1_final_pallas(x, weight, out_dtype):
    """ZeroPad2d((1,0,1,0)) + Conv2d(512, 1, 4, stride=1, pad=1, bias=False)."""
    n, h, w, cin = x.shape
    cout = weight.shape[0]
    ho, wo = h, w                            # (h + 3) - 4 + 1
    wo_k = _round_up(max(wo, 8), 8)
    cin_p = _round_up(cin, 8)
    cp = _round_up(cout, 128)

    # Combined padding: top=1+1, bottom=0+1, left=1+1, right=0+1 (+ wo_k extra)
    x_p = jnp.pad(x, ((0, 0), (2, 1), (2, wo_k + 1 - w), (0, cin_p - cin))
                  ).astype(jnp.bfloat16)
    w2 = jnp.pad(weight.transpose(2, 3, 1, 0),
                 ((0, 0), (0, 0), (0, cin_p - cin), (0, cp - cout))
                 ).reshape(16, cin_p, cp).astype(jnp.bfloat16)

    out = _fused_conv(x_p, w2, None, stride=1, kh=4, kw=4, ho=ho, wo=wo_k,
                      relu=False, out_dtype=out_dtype)
    return out.reshape(n, ho, wo_k, cp)[:, :, :wo, :cout]


# ----------------------------------------------------------------------------
# F.interpolate(..., mode='nearest'): integer index rule floor(i * in / out)
# ----------------------------------------------------------------------------
def interpolate_nearest_nchw(x, size):
    N, C, H, W = x.shape
    Ho, Wo = size
    idx_h = (jnp.arange(Ho) * H) // Ho
    idx_w = (jnp.arange(Wo) * W) // Wo
    return x[:, :, idx_h][:, :, :, idx_w]


# ----------------------------------------------------------------------------
# Parameters (deterministic synthetic init; shapes match the nn.Module)
# ----------------------------------------------------------------------------
def init_params(key, in_channels=3):
    chans = [(in_channels * 2, 64), (64, 128), (128, 256), (256, 512)]
    params = []
    for cin, cout in chans:
        key, kw_, kb_ = jax.random.split(key, 3)
        fan_in = cin * 4 * 4
        std = (2.0 / fan_in) ** 0.5
        w = std * jax.random.normal(kw_, (cout, cin, 4, 4), jnp.float32)
        b = 0.01 * jax.random.normal(kb_, (cout,), jnp.float32)
        params.append((w, b))
    key, kw_ = jax.random.split(key)
    fan_in = 512 * 4 * 4
    std = (2.0 / fan_in) ** 0.5
    w_final = std * jax.random.normal(kw_, (1, 512, 4, 4), jnp.float32)
    params.append((w_final, None))              # final conv has bias=False
    return params


# ----------------------------------------------------------------------------
# Forward pass (norm=None path of the PyTorch module); in/out are NCHW.
# ----------------------------------------------------------------------------
def discriminator_forward(params, img_A, img_B):
    img_B = interpolate_nearest_nchw(img_B, (img_A.shape[2], img_A.shape[3]))
    x = jnp.concatenate([img_A, img_B], axis=1)     # channel concat (NCHW)
    x = x.transpose(0, 2, 3, 1)                     # -> NHWC once
    for w, b in params[:4]:                         # 4 downsample blocks
        x = conv4x4_s2_relu_pallas(x, w, b, out_dtype=jnp.bfloat16)
    w, _ = params[4]
    x = conv4x4_s1_final_pallas(x, w, out_dtype=jnp.float32)
    return x.transpose(0, 3, 1, 2)                  # back to NCHW once


# ----------------------------------------------------------------------------
# Pure-JAX reference (for sanity check only)
# ----------------------------------------------------------------------------
def _ref_conv(x, w, b, stride, pad, apply_relu):
    pt, pb, pleft, pright = pad
    y = jax.lax.conv_general_dilated(
        x, w, window_strides=(stride, stride),
        padding=((pt, pb), (pleft, pright)),
        dimension_numbers=("NCHW", "OIHW", "NCHW"),
        precision=jax.lax.Precision.HIGHEST)
    if b is not None:
        y = y + b.reshape(1, -1, 1, 1)
    if apply_relu:
        y = jnp.maximum(y, 0.0)
    return y


def discriminator_reference(params, img_A, img_B):
    img_B = interpolate_nearest_nchw(img_B, (img_A.shape[2], img_A.shape[3]))
    x = jnp.concatenate([img_A, img_B], axis=1)
    for w, b in params[:4]:
        x = _ref_conv(x, w, b, 2, (1, 1, 1, 1), True)
    w, _ = params[4]
    return _ref_conv(x, w, None, 1, (2, 1, 2, 1), False)


# ----------------------------------------------------------------------------
if __name__ == "__main__":
    key = jax.random.PRNGKey(0)
    k_params, k_a, k_b = jax.random.split(key, 3)

    params = init_params(k_params, in_channels=3)
    img_A = jax.random.normal(k_a, (2, 3, 32, 32), jnp.float32)
    img_B = jax.random.normal(k_b, (2, 3, 16, 16), jnp.float32)

    out = discriminator_forward(params, img_A, img_B)
    out = jax.block_until_ready(out)

    assert out.shape == (2, 1, 2, 2), f"unexpected output shape {out.shape}"

    ref = jax.block_until_ready(discriminator_reference(params, img_A, img_B))
    max_err = float(jnp.max(jnp.abs(out - ref)))
    scale = max(1.0, float(jnp.max(jnp.abs(ref))))
    assert max_err / scale < 5e-2, (
        f"mismatch vs reference, max abs err = {max_err} (scale {scale})")

    print("KERNEL_OK")
</pallas_src>

<mosaic_0001>
module attributes {stable_mosaic.version = 11 : i64} {
  func.func @_fused_conv_kernel(%arg0: i32, %arg1: memref<1x4x17x17x8xbf16, #tpu.memory_space<vmem>>, %arg2: memref<16x8x128xbf16, #tpu.memory_space<vmem>>, %arg3: memref<1x128xf32, #tpu.memory_space<vmem>>, %arg4: memref<1x256x128xbf16, #tpu.memory_space<vmem>>) attributes {dimension_semantics = [#tpu.dimension_semantics<parallel>], iteration_bounds = array<i64: 2>, scalar_prefetch = 0 : i64, scratch_operands = 0 : i64, tpu.core_type = #tpu.core_type<tc>, window_params = [{transform_indices = @transform_0, window_bounds = array<i64: 1, 4, 17, 17, 8>}, {pipeline_mode = #tpu.pipeline_mode<synchronous>, transform_indices = @transform_1, window_bounds = array<i64: 16, 8, 128>}, {pipeline_mode = #tpu.pipeline_mode<synchronous>, transform_indices = @transform_2, window_bounds = array<i64: 1, 128>}, {transform_indices = @transform_3, window_bounds = array<i64: 1, 256, 128>}]} {
    %c0 = arith.constant 0 : index
    %c0_0 = arith.constant 0 : index
    %0 = vector.load %arg3[%c0, %c0_0] : memref<1x128xf32, #tpu.memory_space<vmem>>, vector<1x128xf32>
    %1 = vector.shape_cast %0 : vector<1x128xf32> to vector<1x128xf32>
    %2 = vector.broadcast %1 : vector<1x128xf32> to vector<256x128xf32>
    %c0_1 = arith.constant 0 : index
    %c0_2 = arith.constant 0 : index
    %c0_3 = arith.constant 0 : index
    %c0_4 = arith.constant 0 : index
    %c0_5 = arith.constant 0 : index
    %3 = vector.load %arg1[%c0_1, %c0_2, %c0_3, %c0_4, %c0_5] : memref<1x4x17x17x8xbf16, #tpu.memory_space<vmem>>, vector<1x1x16x16x8xbf16>
    %4 = vector.shape_cast %3 : vector<1x1x16x16x8xbf16> to vector<16x16x8xbf16>
    %5 = vector.shape_cast %4 : vector<16x16x8xbf16> to vector<256x8xbf16>
    %c0_6 = arith.constant 0 : index
    %c0_7 = arith.constant 0 : index
    %c0_8 = arith.constant 0 : index
    %6 = vector.load %arg2[%c0_6, %c0_7, %c0_8] : memref<16x8x128xbf16, #tpu.memory_space<vmem>>, vector<1x8x128xbf16>
    %7 = vector.shape_cast %6 : vector<1x8x128xbf16> to vector<8x128xbf16>
    %cst = arith.constant dense<0.000000e+00> : vector<256x128xf32>
    %8 = tpu.matmul %5, %7, %cst {dimension_numbers = #tpu.dot_dimension_numbers<[1], [0], [0], [1], [0, 0, 1, 1], [], []>} : vector<256x8xbf16>, vector<8x128xbf16>, vector<256x128xf32> -> vector<256x128xf32>
    %9 = arith.addf %2, %8 : vector<256x128xf32>
    %c0_9 = arith.constant 0 : index
    %c1 = arith.constant 1 : index
    %c0_10 = arith.constant 0 : index
    %c0_11 = arith.constant 0 : index
    %c0_12 = arith.constant 0 : index
    %10 = vector.load %arg1[%c0_9, %c1, %c0_10, %c0_11, %c0_12] : memref<1x4x17x17x8xbf16, #tpu.memory_space<vmem>>, vector<1x1x16x16x8xbf16>
    %11 = vector.shape_cast %10 : vector<1x1x16x16x8xbf16> to vector<16x16x8xbf16>
    %12 = vector.shape_cast %11 : vector<16x16x8xbf16> to vector<256x8xbf16>
    %c1_13 = arith.constant 1 : index
    %c0_14 = arith.constant 0 : index
    %c0_15 = arith.constant 0 : index
    %13 = vector.load %arg2[%c1_13, %c0_14, %c0_15] : memref<16x8x128xbf16, #tpu.memory_space<vmem>>, vector<1x8x128xbf16>
    %14 = vector.shape_cast %13 : vector<1x8x128xbf16> to vector<8x128xbf16>
    %cst_16 = arith.constant dense<0.000000e+00> : vector<256x128xf32>
    %15 = tpu.matmul %12, %14, %cst_16 {dimension_numbers = #tpu.dot_dimension_numbers<[1], [0], [0], [1], [0, 0, 1, 1], [], []>} : vector<256x8xbf16>, vector<8x128xbf16>, vector<256x128xf32> -> vector<256x128xf32>
    %16 = arith.addf %9, %15 : vector<256x128xf32>
    %c0_17 = arith.constant 0 : index
    %c0_18 = arith.constant 0 : index
    %c0_19 = arith.constant 0 : index
    %c1_20 = arith.constant 1 : index
    %c0_21 = arith.constant 0 : index
    %17 = vector.load %arg1[%c0_17, %c0_18, %c0_19, %c1_20, %c0_21] : memref<1x4x17x17x8xbf16, #tpu.memory_space<vmem>>, vector<1x1x16x16x8xbf16>
    %18 = vector.shape_cast %17 : vector<1x1x16x16x8xbf16> to vector<16x16x8xbf16>
    %19 = vector.shape_cast %18 : vector<16x16x8xbf16> to vector<256x8xbf16>
    %c2 = arith.constant 2 : index
    %c0_22 = arith.constant 0 : index
    %c0_23 = arith.constant 0 : index
    %20 = vector.load %arg2[%c2, %c0_22, %c0_23] : memref<16x8x128xbf16, #tpu.memory_space<vmem>>, vector<1x8x128xbf16>
    %21 = vector.shape_cast %20 : vector<1x8x128xbf16> to vector<8x128xbf16>
    %cst_24 = arith.constant dense<0.000000e+00> : vector<256x128xf32>
    %22 = tpu.matmul %19, %21, %cst_24 {dimension_numbers = #tpu.dot_dimension_numbers<[1], [0], [0], [1], [0, 0, 1, 1], [], []>} : vector<256x8xbf16>, vector<8x128xbf16>, vector<256x128xf32> -> vector<256x128xf32>
    %23 = arith.addf %16, %22 : vector<256x128xf32>
    %c0_25 = arith.constant 0 : index
    %c1_26 = arith.constant 1 : index
    %c0_27 = arith.constant 0 : index
    %c1_28 = arith.constant 1 : index
    %c0_29 = arith.constant 0 : index
    %24 = vector.load %arg1[%c0_25, %c1_26, %c0_27, %c1_28, %c0_29] : memref<1x4x17x17x8xbf16, #tpu.memory_space<vmem>>, vector<1x1x16x16x8xbf16>
    %25 = vector.shape_cast %24 : vector<1x1x16x16x8xbf16> to vector<16x16x8xbf16>
    %26 = vector.shape_cast %25 : vector<16x16x8xbf16> to vector<256x8xbf16>
    %c3 = arith.constant 3 : index
    %c0_30 = arith.constant 0 : index
    %c0_31 = arith.constant 0 : index
    %27 = vector.load %arg2[%c3, %c0_30, %c0_31] : memref<16x8x128xbf16, #tpu.memory_space<vmem>>, vector<1x8x128xbf16>
    %28 = vector.shape_cast %27 : vector<1x8x128xbf16> to vector<8x128xbf16>
    %cst_32 = arith.constant dense<0.000000e+00> : vector<256x128xf32>
    %29 = tpu.matmul %26, %28, %cst_32 {dimension_numbers = #tpu.dot_dimension_numbers<[1], [0], [0], [1], [0, 0, 1, 1], [], []>} : vector<256x8xbf16>, vector<8x128xbf16>, vector<256x128xf32> -> vector<256x128xf32>
    %30 = arith.addf %23, %29 : vector<256x128xf32>
    %c0_33 = arith.constant 0 : index
    %c2_34 = arith.constant 2 : index
    %c0_35 = arith.constant 0 : index
    %c0_36 = arith.constant 0 : index
    %c0_37 = arith.constant 0 : index
    %31 = vector.load %arg1[%c0_33, %c2_34, %c0_35, %c0_36, %c0_37] : memref<1x4x17x17x8xbf16, #tpu.memory_space<vmem>>, vector<1x1x16x16x8xbf16>
    %32 = vector.shape_cast %31 : vector<1x1x16x16x8xbf16> to vector<16x16x8xbf16>
    %33 = vector.shape_cast %32 : vector<16x16x8xbf16> to vector<256x8xbf16>
    %c4 = arith.constant 4 : index
    %c0_38 = arith.constant 0 : index
    %c0_39 = arith.constant 0 : index
    %34 = vector.load %arg2[%c4, %c0_38, %c0_39] : memref<16x8x128xbf16, #tpu.memory_space<vmem>>, vector<1x8x128xbf16>
    %35 = vector.shape_cast %34 : vector<1x8x128xbf16> to vector<8x128xbf16>
    %cst_40 = arith.constant dense<0.000000e+00> : vector<256x128xf32>
    %36 = tpu.matmul %33, %35, %cst_40 {dimension_numbers = #tpu.dot_dimension_numbers<[1], [0], [0], [1], [0, 0, 1, 1], [], []>} : vector<256x8xbf16>, vector<8x128xbf16>, vector<256x128xf32> -> vector<256x128xf32>
    %37 = arith.addf %30, %36 : vector<256x128xf32>
    %c0_41 = arith.constant 0 : index
    %c3_42 = arith.constant 3 : index
    %c0_43 = arith.constant 0 : index
    %c0_44 = arith.constant 0 : index
    %c0_45 = arith.constant 0 : index
    %38 = vector.load %arg1[%c0_41, %c3_42, %c0_43, %c0_44, %c0_45] : memref<1x4x17x17x8xbf16, #tpu.memory_space<vmem>>, vector<1x1x16x16x8xbf16>
    %39 = vector.shape_cast %38 : vector<1x1x16x16x8xbf16> to vector<16x16x8xbf16>
    %40 = vector.shape_cast %39 : vector<16x16x8xbf16> to vector<256x8xbf16>
    %c5 = arith.constant 5 : index
    %c0_46 = arith.constant 0 : index
    %c0_47 = arith.constant 0 : index
    %41 = vector.load %arg2[%c5, %c0_46, %c0_47] : memref<16x8x128xbf16, #tpu.memory_space<vmem>>, vector<1x8x128xbf16>
    %42 = vector.shape_cast %41 : vector<1x8x128xbf16> to vector<8x128xbf16>
    %cst_48 = arith.constant dense<0.000000e+00> : vector<256x128xf32>
    %43 = tpu.matmul %40, %42, %cst_48 {dimension_numbers = #tpu.dot_dimension_numbers<[1], [0], [0], [1], [0, 0, 1, 1], [], []>} : vector<256x8xbf16>, vector<8x128xbf16>, vector<256x128xf32> -> vector<256x128xf32>
    %44 = arith.addf %37, %43 : vector<256x128xf32>
    %c0_49 = arith.constant 0 : index
    %c2_50 = arith.constant 2 : index
    %c0_51 = arith.constant 0 : index
    %c1_52 = arith.constant 1 : index
    %c0_53 = arith.constant 0 : index
    %45 = vector.load %arg1[%c0_49, %c2_50, %c0_51, %c1_52, %c0_53] : memref<1x4x17x17x8xbf16, #tpu.memory_space<vmem>>, vector<1x1x16x16x8xbf16>
    %46 = vector.shape_cast %45 : vector<1x1x16x16x8xbf16> to vector<16x16x8xbf16>
    %47 = vector.shape_cast %46 : vector<16x16x8xbf16> to vector<256x8xbf16>
    %c6 = arith.constant 6 : index
    %c0_54 = arith.constant 0 : index
    %c0_55 = arith.constant 0 : index
    %48 = vector.load %arg2[%c6, %c0_54, %c0_55] : memref<16x8x128xbf16, #tpu.memory_space<vmem>>, vector<1x8x128xbf16>
    %49 = vector.shape_cast %48 : vector<1x8x128xbf16> to vector<8x128xbf16>
    %cst_56 = arith.constant dense<0.000000e+00> : vector<256x128xf32>
    %50 = tpu.matmul %47, %49, %cst_56 {dimension_numbers = #tpu.dot_dimension_numbers<[1], [0], [0], [1], [0, 0, 1, 1], [], []>} : vector<256x8xbf16>, vector<8x128xbf16>, vector<256x128xf32> -> vector<256x128xf32>
    %51 = arith.addf %44, %50 : vector<256x128xf32>
    %c0_57 = arith.constant 0 : index
    %c3_58 = arith.constant 3 : index
    %c0_59 = arith.constant 0 : index
    %c1_60 = arith.constant 1 : index
    %c0_61 = arith.constant 0 : index
    %52 = vector.load %arg1[%c0_57, %c3_58, %c0_59, %c1_60, %c0_61] : memref<1x4x17x17x8xbf16, #tpu.memory_space<vmem>>, vector<1x1x16x16x8xbf16>
    %53 = vector.shape_cast %52 : vector<1x1x16x16x8xbf16> to vector<16x16x8xbf16>
    %54 = vector.shape_cast %53 : vector<16x16x8xbf16> to vector<256x8xbf16>
    %c7 = arith.constant 7 : index
    %c0_62 = arith.constant 0 : index
    %c0_63 = arith.constant 0 : index
    %55 = vector.load %arg2[%c7, %c0_62, %c0_63] : memref<16x8x128xbf16, #tpu.memory_space<vmem>>, vector<1x8x128xbf16>
    %56 = vector.shape_cast %55 : vector<1x8x128xbf16> to vector<8x128xbf16>
    %cst_64 = arith.constant dense<0.000000e+00> : vector<256x128xf32>
    %57 = tpu.matmul %54, %56, %cst_64 {dimension_numbers = #tpu.dot_dimension_numbers<[1], [0], [0], [1], [0, 0, 1, 1], [], []>} : vector<256x8xbf16>, vector<8x128xbf16>, vector<256x128xf32> -> vector<256x128xf32>
    %58 = arith.addf %51, %57 : vector<256x128xf32>
    %c0_65 = arith.constant 0 : index
    %c0_66 = arith.constant 0 : index
    %c1_67 = arith.constant 1 : index
    %c0_68 = arith.constant 0 : index
    %c0_69 = arith.constant 0 : index
    %59 = vector.load %arg1[%c0_65, %c0_66, %c1_67, %c0_68, %c0_69] : memref<1x4x17x17x8xbf16, #tpu.memory_space<vmem>>, vector<1x1x16x16x8xbf16>
    %60 = vector.shape_cast %59 : vector<1x1x16x16x8xbf16> to vector<16x16x8xbf16>
    %61 = vector.shape_cast %60 : vector<16x16x8xbf16> to vector<256x8xbf16>
    %c8 = arith.constant 8 : index
    %c0_70 = arith.constant 0 : index
    %c0_71 = arith.constant 0 : index
    %62 = vector.load %arg2[%c8, %c0_70, %c0_71] : memref<16x8x128xbf16, #tpu.memory_space<vmem>>, vector<1x8x128xbf16>
    %63 = vector.shape_cast %62 : vector<1x8x128xbf16> to vector<8x128xbf16>
    %cst_72 = arith.constant dense<0.000000e+00> : vector<256x128xf32>
    %64 = tpu.matmul %61, %63, %cst_72 {dimension_numbers = #tpu.dot_dimension_numbers<[1], [0], [0], [1], [0, 0, 1, 1], [], []>} : vector<256x8xbf16>, vector<8x128xbf16>, vector<256x128xf32> -> vector<256x128xf32>
    %65 = arith.addf %58, %64 : vector<256x128xf32>
    %c0_73 = arith.constant 0 : index
    %c1_74 = arith.constant 1 : index
    %c1_75 = arith.constant 1 : index
    %c0_76 = arith.constant 0 : index
    %c0_77 = arith.constant 0 : index
    %66 = vector.load %arg1[%c0_73, %c1_74, %c1_75, %c0_76, %c0_77] : memref<1x4x17x17x8xbf16, #tpu.memory_space<vmem>>, vector<1x1x16x16x8xbf16>
    %67 = vector.shape_cast %66 : vector<1x1x16x16x8xbf16> to vector<16x16x8xbf16>
    %68 = vector.shape_cast %67 : vector<16x16x8xbf16> to vector<256x8xbf16>
    %c9 = arith.constant 9 : index
    %c0_78 = arith.constant 0 : index
    %c0_79 = arith.constant 0 : index
    %69 = vector.load %arg2[%c9, %c0_78, %c0_79] : memref<16x8x128xbf16, #tpu.memory_space<vmem>>, vector<1x8x128xbf16>
    %70 = vector.shape_cast %69 : vector<1x8x128xbf16> to vector<8x128xbf16>
    %cst_80 = arith.constant dense<0.000000e+00> : vector<256x128xf32>
    %71 = tpu.matmul %68, %70, %cst_80 {dimension_numbers = #tpu.dot_dimension_numbers<[1], [0], [0], [1], [0, 0, 1, 1], [], []>} : vector<256x8xbf16>, vector<8x128xbf16>, vector<256x128xf32> -> vector<256x128xf32>
    %72 = arith.addf %65, %71 : vector<256x128xf32>
    %c0_81 = arith.constant 0 : index
    %c0_82 = arith.constant 0 : index
    %c1_83 = arith.constant 1 : index
    %c1_84 = arith.constant 1 : index
    %c0_85 = arith.constant 0 : index
    %73 = vector.load %arg1[%c0_81, %c0_82, %c1_83, %c1_84, %c0_85] : memref<1x4x17x17x8xbf16, #tpu.memory_space<vmem>>, vector<1x1x16x16x8xbf16>
    %74 = vector.shape_cast %73 : vector<1x1x16x16x8xbf16> to vector<16x16x8xbf16>
    %75 = vector.shape_cast %74 : vector<16x16x8xbf16> to vector<256x8xbf16>
    %c10 = arith.constant 10 : index
    %c0_86 = arith.constant 0 : index
    %c0_87 = arith.constant 0 : index
    %76 = vector.load %arg2[%c10, %c0_86, %c0_87] : memref<16x8x128xbf16, #tpu.memory_space<vmem>>, vector<1x8x128xbf16>
    %77 = vector.shape_cast %76 : vector<1x8x128xbf16> to vector<8x128xbf16>
    %cst_88 = arith.constant dense<0.000000e+00> : vector<256x128xf32>
    %78 = tpu.matmul %75, %77, %cst_88 {dimension_numbers = #tpu.dot_dimension_numbers<[1], [0], [0], [1], [0, 0, 1, 1], [], []>} : vector<256x8xbf16>, vector<8x128xbf16>, vector<256x128xf32> -> vector<256x128xf32>
    %79 = arith.addf %72, %78 : vector<256x128xf32>
    %c0_89 = arith.constant 0 : index
    %c1_90 = arith.constant 1 : index
    %c1_91 = arith.constant 1 : index
    %c1_92 = arith.constant 1 : index
    %c0_93 = arith.constant 0 : index
    %80 = vector.load %arg1[%c0_89, %c1_90, %c1_91, %c1_92, %c0_93] : memref<1x4x17x17x8xbf16, #tpu.memory_space<vmem>>, vector<1x1x16x16x8xbf16>
    %81 = vector.shape_cast %80 : vector<1x1x16x16x8xbf16> to vector<16x16x8xbf16>
    %82 = vector.shape_cast %81 : vector<16x16x8xbf16> to vector<256x8xbf16>
    %c11 = arith.constant 11 : index
    %c0_94 = arith.constant 0 : index
    %c0_95 = arith.constant 0 : index
    %83 = vector.load %arg2[%c11, %c0_94, %c0_95] : memref<16x8x128xbf16, #tpu.memory_space<vmem>>, vector<1x8x128xbf16>
    %84 = vector.shape_cast %83 : vector<1x8x128xbf16> to vector<8x128xbf16>
    %cst_96 = arith.constant dense<0.000000e+00> : vector<256x128xf32>
    %85 = tpu.matmul %82, %84, %cst_96 {dimension_numbers = #tpu.dot_dimension_numbers<[1], [0], [0], [1], [0, 0, 1, 1], [], []>} : vector<256x8xbf16>, vector<8x128xbf16>, vector<256x128xf32> -> vector<256x128xf32>
    %86 = arith.addf %79, %85 : vector<256x128xf32>
    %c0_97 = arith.constant 0 : index
    %c2_98 = arith.constant 2 : index
    %c1_99 = arith.constant 1 : index
    %c0_100 = arith.constant 0 : index
    %c0_101 = arith.constant 0 : index
    %87 = vector.load %arg1[%c0_97, %c2_98, %c1_99, %c0_100, %c0_101] : memref<1x4x17x17x8xbf16, #tpu.memory_space<vmem>>, vector<1x1x16x16x8xbf16>
    %88 = vector.shape_cast %87 : vector<1x1x16x16x8xbf16> to vector<16x16x8xbf16>
    %89 = vector.shape_cast %88 : vector<16x16x8xbf16> to vector<256x8xbf16>
    %c12 = arith.constant 12 : index
    %c0_102 = arith.constant 0 : index
    %c0_103 = arith.constant 0 : index
    %90 = vector.load %arg2[%c12, %c0_102, %c0_103] : memref<16x8x128xbf16, #tpu.memory_space<vmem>>, vector<1x8x128xbf16>
    %91 = vector.shape_cast %90 : vector<1x8x128xbf16> to vector<8x128xbf16>
    %cst_104 = arith.constant dense<0.000000e+00> : vector<256x128xf32>
    %92 = tpu.matmul %89, %91, %cst_104 {dimension_numbers = #tpu.dot_dimension_numbers<[1], [0], [0], [1], [0, 0, 1, 1], [], []>} : vector<256x8xbf16>, vector<8x128xbf16>, vector<256x128xf32> -> vector<256x128xf32>
    %93 = arith.addf %86, %92 : vector<256x128xf32>
    %c0_105 = arith.constant 0 : index
    %c3_106 = arith.constant 3 : index
    %c1_107 = arith.constant 1 : index
    %c0_108 = arith.constant 0 : index
    %c0_109 = arith.constant 0 : index
    %94 = vector.load %arg1[%c0_105, %c3_106, %c1_107, %c0_108, %c0_109] : memref<1x4x17x17x8xbf16, #tpu.memory_space<vmem>>, vector<1x1x16x16x8xbf16>
    %95 = vector.shape_cast %94 : vector<1x1x16x16x8xbf16> to vector<16x16x8xbf16>
    %96 = vector.shape_cast %95 : vector<16x16x8xbf16> to vector<256x8xbf16>
    %c13 = arith.constant 13 : index
    %c0_110 = arith.constant 0 : index
    %c0_111 = arith.constant 0 : index
    %97 = vector.load %arg2[%c13, %c0_110, %c0_111] : memref<16x8x128xbf16, #tpu.memory_space<vmem>>, vector<1x8x128xbf16>
    %98 = vector.shape_cast %97 : vector<1x8x128xbf16> to vector<8x128xbf16>
    %cst_112 = arith.constant dense<0.000000e+00> : vector<256x128xf32>
    %99 = tpu.matmul %96, %98, %cst_112 {dimension_numbers = #tpu.dot_dimension_numbers<[1], [0], [0], [1], [0, 0, 1, 1], [], []>} : vector<256x8xbf16>, vector<8x128xbf16>, vector<256x128xf32> -> vector<256x128xf32>
    %100 = arith.addf %93, %99 : vector<256x128xf32>
    %c0_113 = arith.constant 0 : index
    %c2_114 = arith.constant 2 : index
    %c1_115 = arith.constant 1 : index
    %c1_116 = arith.constant 1 : index
    %c0_117 = arith.constant 0 : index
    %101 = vector.load %arg1[%c0_113, %c2_114, %c1_115, %c1_116, %c0_117] : memref<1x4x17x17x8xbf16, #tpu.memory_space<vmem>>, vector<1x1x16x16x8xbf16>
    %102 = vector.shape_cast %101 : vector<1x1x16x16x8xbf16> to vector<16x16x8xbf16>
    %103 = vector.shape_cast %102 : vector<16x16x8xbf16> to vector<256x8xbf16>
    %c14 = arith.constant 14 : index
    %c0_118 = arith.constant 0 : index
    %c0_119 = arith.constant 0 : index
    %104 = vector.load %arg2[%c14, %c0_118, %c0_119] : memref<16x8x128xbf16, #tpu.memory_space<vmem>>, vector<1x8x128xbf16>
    %105 = vector.shape_cast %104 : vector<1x8x128xbf16> to vector<8x128xbf16>
    %cst_120 = arith.constant dense<0.000000e+00> : vector<256x128xf32>
    %106 = tpu.matmul %103, %105, %cst_120 {dimension_numbers = #tpu.dot_dimension_numbers<[1], [0], [0], [1], [0, 0, 1, 1], [], []>} : vector<256x8xbf16>, vector<8x128xbf16>, vector<256x128xf32> -> vector<256x128xf32>
    %107 = arith.addf %100, %106 : vector<256x128xf32>
    %c0_121 = arith.constant 0 : index
    %c3_122 = arith.constant 3 : index
    %c1_123 = arith.constant 1 : index
    %c1_124 = arith.constant 1 : index
    %c0_125 = arith.constant 0 : index
    %108 = vector.load %arg1[%c0_121, %c3_122, %c1_123, %c1_124, %c0_125] : memref<1x4x17x17x8xbf16, #tpu.memory_space<vmem>>, vector<1x1x16x16x8xbf16>
    %109 = vector.shape_cast %108 : vector<1x1x16x16x8xbf16> to vector<16x16x8xbf16>
    %110 = vector.shape_cast %109 : vector<16x16x8xbf16> to vector<256x8xbf16>
    %c15 = arith.constant 15 : index
    %c0_126 = arith.constant 0 : index
    %c0_127 = arith.constant 0 : index
    %111 = vector.load %arg2[%c15, %c0_126, %c0_127] : memref<16x8x128xbf16, #tpu.memory_space<vmem>>, vector<1x8x128xbf16>
    %112 = vector.shape_cast %111 : vector<1x8x128xbf16> to vector<8x128xbf16>
    %cst_128 = arith.constant dense<0.000000e+00> : vector<256x128xf32>
    %113 = tpu.matmul %110, %112, %cst_128 {dimension_numbers = #tpu.dot_dimension_numbers<[1], [0], [0], [1], [0, 0, 1, 1], [], []>} : vector<256x8xbf16>, vector<8x128xbf16>, vector<256x128xf32> -> vector<256x128xf32>
    %114 = arith.addf %107, %113 : vector<256x128xf32>
    %cst_129 = arith.constant 0.000000e+00 : f32
    %115 = vector.broadcast %cst_129 : f32 to vector<256x128xf32>
    %116 = arith.maximumf %114, %115 : vector<256x128xf32>
    %117 = arith.truncf %116 : vector<256x128xf32> to vector<256x128xbf16>
    %c0_130 = arith.constant 0 : index
    %c0_131 = arith.constant 0 : index
    %c0_132 = arith.constant 0 : index
    %118 = vector.load %arg4[%c0_130, %c0_131, %c0_132] : memref<1x256x128xbf16, #tpu.memory_space<vmem>>, vector<1x256x128xbf16>
    %119 = vector.shape_cast %118 : vector<1x256x128xbf16> to vector<256x128xbf16>
    %120 = vector.shape_cast %117 : vector<256x128xbf16> to vector<1x256x128xbf16>
    tpu.vector_store %arg4[%c0_130, %c0_131, %c0_132], %120 {strides = array<i32>} : memref<1x256x128xbf16, #tpu.memory_space<vmem>>, vector<1x256x128xbf16>,
    return
  }
  func.func @transform_0(%arg0: i32) -> (i32, i32, i32, i32, i32) {
    %c0_i32 = arith.constant 0 : i32
    %c0_i32_0 = arith.constant 0 : i32
    %c0_i32_1 = arith.constant 0 : i32
    %c0_i32_2 = arith.constant 0 : i32
    %c0_i32_3 = arith.constant 0 : i32
    return %arg0, %c0_i32, %c0_i32_0, %c0_i32_1, %c0_i32_2 : i32, i32, i32, i32, i32
  }
  func.func @transform_1(%arg0: i32) -> (i32, i32, i32) {
    %c0_i32 = arith.constant 0 : i32
    %c0_i32_0 = arith.constant 0 : i32
    %c0_i32_1 = arith.constant 0 : i32
    %c0_i32_2 = arith.constant 0 : i32
    return %c0_i32, %c0_i32_0, %c0_i32_1 : i32, i32, i32
  }
  func.func @transform_2(%arg0: i32) -> (i32, i32) {
    %c0_i32 = arith.constant 0 : i32
    %c0_i32_0 = arith.constant 0 : i32
    %c0_i32_1 = arith.constant 0 : i32
    return %c0_i32, %c0_i32_0 : i32, i32
  }
  func.func @transform_3(%arg0: i32) -> (i32, i32, i32) {
    %c0_i32 = arith.constant 0 : i32
    %c0_i32_0 = arith.constant 0 : i32
    %c0_i32_1 = arith.constant 0 : i32
    return %arg0, %c0_i32, %c0_i32_0 : i32, i32, i32
  }
}

</mosaic_0001>

<bundles_post_ra>
// kernel: tpu_custom_call.1
= control target key start
LH: loop header
LB: loop body
LE: loop exit
PB: predicated region body
PF: predicated region fallthrough
CT: control target
= control target key end

     0   :  { %8 = vsyncpa [#allocation3], 0  ;;  %s13778_s0 = inlined_call_operand.vmem [shape: bf16[2,4,17,17,8], index: 0, kind: input, shape index: {}]   ;;  %s13779_s1 = inlined_call_operand.vmem [shape: bf16[16,8,128], index: 1, kind: input, shape index: {}]   ;;  %s13780_s2 = inlined_call_operand.vmem [shape: f32[1,128], index: 2, kind: input, shape index: {}]   ;;  %s13781_s3 = inlined_call_operand.hbm [shape: bf16[2,256,128], index: 3, kind: output, shape index: {}]  }
   0x1   :  { %10 = vsyncpa [#allocation3 + $0x1], 0  ;;  %s11990_s12 = smov 0   ;;  %s11992_s13 = smov 0  }
   0x2   :  { %s11994_s14 = smov 0   ;;  %s11996_s15 = smov 0  }
   0x3 LB: > { %s12011_s16 = sadd.s32 4294967295, %s11965_s15   ;;  %s9128_s17 = sadd.s32 4294967294, %s11965_s15   ;;  %s11965_s15 = sphi %s11996_s15, %s13789_s15   ;;  %s11961_s14 = sphi %s11994_s14, %s13788_s14   ;;  %s11957_s13 = sphi %s11992_s13, %s13787_s13   ;;  %s11953_s12 = sphi %s11990_s12, %s13786_s12  }
   0x4   : > { %s12015_s18 = sadd.s32 1, %s11965_s15   ;;  %s91_s19 = sadd.s32 1, %s11961_s14 }
   0x5   : > { %s88_s20 = ssub.s32 %s11965_s15, %s12015_s18  ;;  %p101_p0 = scmp.ne.s32.totalorder %s11961_s14, %s11957_s13 }
   0x6   : > { %p89_p1 = scmp.eq.s32.totalorder %s88_s20, 0  ;;  %p102_p2 = scmp.eq.s32.totalorder %s12011_s16, 1 }
   0x7   : > { %p107_p3 = scmp.ne.s32.totalorder %s11957_s13, %s11953_s12  ;;  %p108_p4 = scmp.eq.s32.totalorder %s9128_s17, 1 }
   0x8   : > { %s12026_s21 = scalar_select %p89_p1, %s11961_s14, %s91_s19  }
   0x9   : > { %p12028_p5 = por %p102_p2, %p101_p0  ;;  %p12032_p6 = por %p108_p4, %p107_p3 }
   0xa   : > { %p9131_p7 = scmp.ge.s32.totalorder %s11965_s15, 1  ;;  %p140_p8 = scmp.lt.s32.totalorder %s11965_s15, 3 }
   0xc   : > { %p141_p9 = pnand %p9131_p7, %p140_p8 }
   0xd   : > { %v209_v0 = vld [vmem:[%s13779_s1] sm:$0xf] (!%p141_p9)  ;;  %vm339_vm0 = vcmask (!%p141_p9), 1043456   ;;  %p164_p10 = scmp.lt.s32.totalorder (!%p141_p9), %s12011_s16, 1  ;;  %v9199_v4 = vld [vmem:[%s13779_s1 + $0x4] sm:$0xf] (!%p141_p9) }
   0xe   : > { %144 = sbr.rel (%p141_p9) target bundleno = 869 (0x365), region = 32  ;;  %v9670_v1 = vld [vmem:[%s13779_s1 + $0x20] sm:$0xf] (!%p141_p9)  ;;  %11715 = vmatprep.subr.msk.bf16.mxu1 (!%p141_p9), %vm339_vm0, %v209_v0  ;;  %v341_v2 = vsel (!%p141_p9), %vm339_vm0, %v209_v0, 0  ;;  %v9735_v5 = vld [vmem:[%s13779_s1 + $0x24] sm:$0xf] (!%p141_p9) }
   0xf   : > { %11723 = vmatprep.subr.msk.bf16.mxu0 (!%p141_p9), %vm339_vm0, %v9670_v1  ;;  %v4684_v3 = vsel (!%p141_p9), %vm339_vm0, %v9670_v1, 0  ;;  %10660 = vmatpush3.bf16.msra.mxu1 (!%p141_p9), %v341_v2  ;;  %vm290_vm1 = vcmask (!%p141_p9), 64512   ;;  %v700_v9 = vsel (!%p141_p9), %vm339_vm0, %v9199_v4, 0  ;;  %v12071_v10 = vld [vmem:[%s13779_s1 + $0x8] sm:$0xf] (!%p141_p9)  ;;  %v5043_v12 = vsel (!%p141_p9), %vm339_vm0, %v9735_v5, 0 }
  0x10   : > { %10932 = vmatpush3.bf16.msra.mxu0 (!%p141_p9), %v4684_v3  ;;  %11716 = vmatprep.subr.msk.bf16.mxu1 (!%p141_p9), %vm339_vm0, %v9199_v4  ;;  %v12079_v13 = vld [vmem:[%s13779_s1 + $0x28] sm:$0xf] (!%p141_p9)  ;;  %v1429_v44 = vsel (!%p141_p9), %vm339_vm0, %v12071_v10, 0  ;;  %vm943_vm2 = vsmask.f32 (!%p141_p9), 3328  ;;  %s161_s4 = sand.u32 (!%p141_p9), 1, %s11957_s13  }
  0x11   : > { %11724 = vmatprep.subr.msk.bf16.mxu0 (!%p141_p9), %vm339_vm0, %v9735_v5  ;;  %v9313_v45 = vld [vmem:[%s13779_s1 + $0xc] sm:$0xf] (!%p141_p9)  ;;  %vm944_vm3 = vsmask.f32 (!%p141_p9), 7440  ;;  %v5769_v47 = vsel (!%p141_p9), %vm339_vm0, %v12079_v13, 0  ;;  %s9132_s5 = sshll.u32 (!%p141_p9), %s161_s4, 7 }
  0x12   : > { %v12157_v49 = vsel (!%p141_p9), %vm339_vm0, %v9313_v45, 0  ;;  %vm12174_vm4 = vmor (!%p141_p9), %vm943_vm2, %vm944_vm3  ;;  %s10291_s7 = sshll.u32 (!%p141_p9), %s12011_s16, 11  ;;  %s11967_s20 = smov (!%p141_p9), [#allocation2]  }
  0x13   : > { %s13729_s17 = scalar_lea.hbm (!%p141_p9), %s13781_s3, %s10291_s7  ;;  %s11907_s24 = sshll.u32 (!%p141_p9), %s11967_s20, 4  ;;  %s11908_s24 = int_to_ptr.vmem [resolvable:$false] %s11907_s24 }
  0x14   : > { %s11909_s25 = scalar_lea.vmem (!%p141_p9), %s11908_s24, 4096 }
  0x15   : > { %s165_s30 = scalar_select %p164_p10, %s12011_s16, 1 }
  0x16   : > { %s13737_s16 = scalar_lea.sflag [#allocation3], %s161_s4 }
  0x17   : > { %s11731_s6 = smul.u32 816, %s165_s30 }
  0x19   : > { %s12061_s9 = scalar_lea.vmem %s13778_s0, %s11731_s6  ;;  %s13684_s6 = scalar_lea.vmem [#allocation2], %s9132_s5 }
  0x1a   : > { %v11773_v6 = vld [vmem:[%s12061_s9] sm:$0xff]   ;;  %v11774_v7 = vld [vmem:[%s12061_s9 + $0xc] sm:$0xff]   ;;  %v11776_v11 = vld [vmem:[%s12061_s9 + $0x18] sm:$0xff]   ;;  %s9066_s8 = sshll.u32 %s13684_s6, 4  ;;  %s13731_s8 = int_to_ptr.vmem [resolvable:$true] %s9066_s8 }
  0x1b   : > { %10661 = vmatprep.mubr.msk.bf16.mxu1 %vm290_vm1, %v11773_v6  ;;  %v11775_v8 = vld [vmem:[%s12061_s9 + $0xc] sm:$0xff]   ;;  %10933 = vmatprep.mubr.msk.bf16.mxu0 %vm290_vm1, %v11774_v7  ;;  %v11777_v14 = vld [vmem:[%s12061_s9 + $0x18] sm:$0xff]   ;;  %v11778_v15 = vld [vmem:[%s12061_s9 + $0x24] sm:$0xff]   ;;  %s11903_s19 = scalar_lea.vmem %s13731_s8, 2048  ;;  %p11910_p0 = scmp.lt.s32.totalorder %s13731_s8, %s11908_s24 }
  0x1c   : > { %10662 = vmatmul.mubr.msk.bf16.vlgmr.msra.gmra.mrb[0].mxu1 %vm290_vm1, %v11775_v8  ;;  %10934 = vmatmul.mubr.msk.bf16.vlgmr.msra.gmra.mrb[0].mxu0 %vm290_vm1, %v11776_v11  ;;  %v11779_v16 = vld [vmem:[%s12061_s9 + $0x24] sm:$0xff]   ;;  %v11780_v17 = vld [vmem:[%s12061_s9 + $0x30] sm:$0xff]   ;;  %v11782_v19 = vld [vmem:[%s12061_s9 + $0x3c] sm:$0xff]   ;;  %p11904_p11 = scmp.ne.s32.totalorder %s13731_s8, %s11903_s19  ;;  %p11911_p1 = scmp.lt.s32.totalorder %s11909_s25, %s11903_s19 }
  0x1d   : > { %10694 = vmatpush3.bf16.msra.mxu1 %v700_v9  ;;  %10966 = vmatpush3.bf16.msra.mxu0 %v5043_v12  ;;  %v11781_v18 = vld [vmem:[%s12061_s9 + $0x30] sm:$0xff]   ;;  %v11783_v20 = vld [vmem:[%s12061_s9 + $0x3c] sm:$0xff]   ;;  %v11784_v21 = vld [vmem:[%s12061_s9 + $0x48] sm:$0xff]  }
  0x1e   : > { %10665 = vmatprep.mubr.msk.bf16.mxu1 %vm290_vm1, %v11777_v14  ;;  %10937 = vmatprep.mubr.msk.bf16.mxu0 %vm290_vm1, %v11778_v15  ;;  %v11785_v22 = vld [vmem:[%s12061_s9 + $0x48] sm:$0xff]   ;;  %v11786_v23 = vld [vmem:[%s12061_s9 + $0x54] sm:$0xff]   ;;  %v11788_v25 = vld [vmem:[%s12061_s9 + $0x60] sm:$0xff]   ;;  %p11905_p12 = pnand %p11904_p11, %p12028_p5  ;;  %p11912_p2 = por %p11911_p1, %p11910_p0 }
  0x1f   : > { %11717 = vmatprep.subr.msk.bf16.mxu1 %vm339_vm0, %v12071_v10  ;;  %11725 = vmatprep.subr.msk.bf16.mxu0 %vm339_vm0, %v12079_v13  ;;  %v11787_v24 = vld [vmem:[%s12061_s9 + $0x54] sm:$0xff]   ;;  %v11789_v26 = vld [vmem:[%s12061_s9 + $0x60] sm:$0xff]   ;;  %v11790_v27 = vld [vmem:[%s12061_s9 + $0x6c] sm:$0xff]  }
  0x20   : > { %v11791_v28 = vld [vmem:[%s12061_s9 + $0x6c] sm:$0xff]   ;;  %v11792_v29 = vld [vmem:[%s12061_s9 + $0x78] sm:$0xff]   ;;  %v11794_v31 = vld [vmem:[%s12061_s9 + $0x84] sm:$0xff]   ;;  %p11906_p13 = pneg %p11905_p12 }
  0x21   : > { %v11793_v30 = vld [vmem:[%s12061_s9 + $0x78] sm:$0xff]   ;;  %v11795_v32 = vld [vmem:[%s12061_s9 + $0x84] sm:$0xff]   ;;  %v11796_v33 = vld [vmem:[%s12061_s9 + $0x90] sm:$0xff]  }
  0x22   : > { %v11797_v34 = vld [vmem:[%s12061_s9 + $0x90] sm:$0xff]   ;;  %v11798_v35 = vld [vmem:[%s12061_s9 + $0x9c] sm:$0xff]   ;;  %v11800_v37 = vld [vmem:[%s12061_s9 + $0xa8] sm:$0xff]   ;;  %p11913_p3 = pnand %p11912_p2, %p11906_p13 }
  0x23   : > { %v11799_v36 = vld [vmem:[%s12061_s9 + $0x9c] sm:$0xff]   ;;  %v11801_v38 = vld [vmem:[%s12061_s9 + $0xa8] sm:$0xff]   ;;  %v11802_v39 = vld [vmem:[%s12061_s9 + $0xb4] sm:$0xff]  }
  0x24   : > { %10666 = vmatmul.mubr.msk.bf16.gmra.mrb[4].mxu1 %vm290_vm1, %v11779_v16  ;;  %10938 = vmatmul.mubr.msk.bf16.gmra.mrb[4].mxu0 %vm290_vm1, %v11780_v17  ;;  %v11803_v40 = vld [vmem:[%s12061_s9 + $0xb4] sm:$0xff]   ;;  %v11804_v41 = vld [vmem:[%s12061_s9 + $0xc0] sm:$0xff]   ;;  %v11805_v42 = vld [vmem:[%s12061_s9 + $0xcc] sm:$0xff]  }
  0x25   : > { %10669 = vmatprep.mubr.msk.bf16.mxu1 %vm290_vm1, %v11781_v18  ;;  %10941 = vmatprep.mubr.msk.bf16.mxu0 %vm290_vm1, %v11782_v19  ;;  %v11806_v43 = vld [vmem:[%s12061_s9 + $0xd8] sm:$0xff]   ;;  %v11808_v48 = vld [vmem:[%s12061_s9 + $0xe4] sm:$0xff]   ;;  %v895_v51 = vld [vmem:[%s12061_s9] sm:$0xf] }
  0x26   : > { %v11807_v46 = vld [vmem:[%s12061_s9 + $0xd8] sm:$0xff]   ;;  %v11809_v50 = vld [vmem:[%s12061_s9 + $0xe4] sm:$0xff]   ;;  %v11810_v54 = vld [vmem:[%s12061_s9 + $0xf0] sm:$0xff]   ;;  %v947_v55 = vshrl.u32 %v895_v51, 16  ;;  %v950_v56 = vshll.u32 %v895_v51, 16 }
  0x27   : > { %v896_v52 = vld [vmem:[%s12061_s9 + $0x4] sm:$0xf]  ;;  %v897_v53 = vld [vmem:[%s12061_s9 + $0x8] sm:$0x1]  ;;  %v9768_v59 = vld [vmem:[%s12061_s9 + $0xc] sm:$0xf] }
  0x28   : > { %v956_v57 = vshll.u32 %v896_v52, 16  ;;  %v960_v58 = vshrl.u32 %v896_v52, 16  ;;  %v966_v60 = vshll.u32 %v897_v53, 16  ;;  %v9769_v61 = vld [vmem:[%s12061_s9 + $0x10] sm:$0xf]  ;;  %v5287_v63 = vshrl.u32 %v9768_v59, 16 }
  0x29   : > { %v9770_v62 = vld [vmem:[%s12061_s9 + $0x14] sm:$0x1]  ;;  %v949_v0 = vrot.slane %v947_v55, 4  ;;  %v952_v1 = vrot.slane %v950_v56, 5  ;;  %v898_v4 = vld [vmem:[%s12061_s9 + $0xc] sm:$0xf] }
  0x2a   : > { %v958_v2 = vrot.slane %v956_v57, 5  ;;  %v962_v3 = vrot.slane %v960_v58, 4  ;;  %v968_v5 = vrot.slane %v966_v60, 5  ;;  %v5289_v6 = vrot.slane %v5287_v63, 4  ;;  %v899_v13 = vld [vmem:[%s12061_s9 + $0x10] sm:$0xf] }
  0x2b   : > { %v5290_v7 = vshll.u32 %v9768_v59, 16  ;;  %v5296_v8 = vshll.u32 %v9769_v61, 16  ;;  %v953_v9 = vor.u32 %v952_v1, %v949_v0  ;;  %v5300_v11 = vshrl.u32 %v9769_v61, 16  ;;  %v900_v17 = vld [vmem:[%s12061_s9 + $0x14] sm:$0x1]  ;;  %v11815_v63 = vld [vmem:[%s12061_s9 + $0x108] sm:$0xff]  }
  0x2c   : > { %10670 = vmatmul.mubr.msk.bf16.gmra.mrb[8].mxu1 %vm290_vm1, %v11783_v20  ;;  %10942 = vmatmul.mubr.msk.bf16.gmra.mrb[8].mxu0 %vm290_vm1, %v11784_v21  ;;  %v963_v10 = vor.u32 %v962_v3, %v958_v2  ;;  %v5306_v12 = vshll.u32 %v9770_v62, 16  ;;  %v971_v18 = vshrl.u32 %v898_v4, 16  ;;  %v974_v19 = vshll.u32 %v898_v4, 16  ;;  %v901_v57 = vld [vmem:[%s12061_s9 + $0x18] sm:$0xf] }
  0x2d   : > { %10673 = vmatprep.mubr.msk.bf16.mxu1 %vm290_vm1, %v11785_v22  ;;  %10945 = vmatprep.mubr.msk.bf16.mxu0 %vm290_vm1, %v11786_v23  ;;  %v5292_v15 = vrot.slane %v5290_v7, 5  ;;  %v5298_v16 = vrot.slane %v5296_v8, 5  ;;  %v954_v20 = vrot.slane %v953_v9, 4  ;;  %v5302_v22 = vrot.slane %v5300_v11, 4  ;;  %v902_v58 = vld [vmem:[%s12061_s9 + $0x1c] sm:$0xf] }
  0x2e   : > { %v964_v21 = vrot.slane %v963_v10, 4  ;;  %v5308_v23 = vrot.slane %v5306_v12, 5  ;;  %v11816_v4 = vld [vmem:[%s12061_s9 + $0x114] sm:$0xff]   ;;  %v995_v7 = vshrl.u32 %v901_v57, 16  ;;  %v998_v8 = vshll.u32 %v901_v57, 16 }
  0x2f   : > { %v1004_v9 = vshll.u32 %v902_v58, 16  ;;  %v11817_v10 = vld [vmem:[%s12061_s9 + $0x114] sm:$0xff]  }
  0x34   : > { %10674 = vmatmul.mubr.msk.bf16.gmra.mrb[12].mxu1 %vm290_vm1, %v11787_v24  ;;  %10946 = vmatmul.mubr.msk.bf16.gmra.mrb[12].mxu0 %vm290_vm1, %v11788_v25  ;;  %v9771_v24 = vld [vmem:[%s12061_s9 + $0x18] sm:$0xf]  ;;  %v11811_v25 = vld [vmem:[%s12061_s9 + $0xf0] sm:$0xff]  }
  0x35   : > { %10677 = vmatprep.mubr.msk.bf16.mxu1 %vm290_vm1, %v11789_v26  ;;  %10949 = vmatprep.mubr.msk.bf16.mxu0 %vm290_vm1, %v11790_v27  ;;  %v5293_v26 = vor.u32 %v5292_v15, %v5289_v6  ;;  %v973_v27 = vrot.slane %v971_v18, 4  ;;  %v5314_v51 = vshll.u32 %v9771_v24, 16  ;;  %v903_v6 = vld [vmem:[%s12061_s9 + $0x20] sm:$0x1]  ;;  %v1008_v15 = vshrl.u32 %v902_v58, 16 }
  0x37   : > { %v5316_v61 = vrot.slane %v5314_v51, 5 }
  0x3c   : > { %10678 = vmatmul.mubr.msk.bf16.gmra.mrb[16].mxu1 %vm290_vm1, %v11791_v28  ;;  %10950 = vmatmul.mubr.msk.bf16.gmra.mrb[16].mxu0 %vm290_vm1, %v11792_v29  ;;  %v976_v28 = vrot.slane %v974_v19, 5  ;;  %v980_v29 = vshll.u32 %v899_v13, 16 }
  0x3d   : > { %10681 = vmatprep.mubr.msk.bf16.mxu1 %vm290_vm1, %v11793_v30  ;;  %10953 = vmatprep.mubr.msk.bf16.mxu0 %vm290_vm1, %v11794_v31  ;;  %v9897_v30 = vld [vmem:[%s13779_s1 + $0x2c] sm:$0xf]  ;;  %v11812_v31 = vld [vmem:[%s12061_s9 + $0xfc] sm:$0xff]  }
  0x3e   : > { %v12214_v3 = vsel %vm339_vm0, %v9897_v30, 0 }
  0x44   : > { %10682 = vmatmul.mubr.msk.bf16.gmra.mrb[20].mxu1 %vm290_vm1, %v11795_v32  ;;  %10954 = vmatmul.mubr.msk.bf16.gmra.mrb[20].mxu0 %vm290_vm1, %v11796_v33  ;;  %v11813_v32 = vld [vmem:[%s12061_s9 + $0xfc] sm:$0xff]   ;;  %v959_v33 = vsel %vm12174_vm4, %v954_v20, %v958_v2  ;;  %v997_v20 = vrot.slane %v995_v7, 4 }
  0x45   : > { %10685 = vmatprep.mubr.msk.bf16.mxu1 %vm290_vm1, %v11797_v34  ;;  %10957 = vmatprep.mubr.msk.bf16.mxu0 %vm290_vm1, %v11798_v35  ;;  %v969_v34 = vsel %vm12174_vm4, %v964_v21, %v968_v5  ;;  %v5303_v35 = vor.u32 %v5302_v22, %v5298_v16  ;;  %v1000_v21 = vrot.slane %v998_v8, 5  ;;  %v9775_v22 = vld [vmem:[%s12061_s9 + $0x28] sm:$0xf]  ;;  %v9778_v8 = vld [vmem:[%s12061_s9 + $0x34] sm:$0xf] }
  0x4c   : > { %10686 = vmatmul.mubr.msk.bf16.gmra.mrb[24].mxu1 %vm290_vm1, %v11799_v36  ;;  %10958 = vmatmul.mubr.msk.bf16.gmra.mrb[24].mxu0 %vm290_vm1, %v11800_v37  ;;  %v984_v36 = vshrl.u32 %v899_v13, 16  ;;  %v9772_v37 = vld [vmem:[%s12061_s9 + $0x1c] sm:$0xf] }
  0x4d   : > { %10689 = vmatprep.mubr.msk.bf16.mxu1 %vm290_vm1, %v11801_v38  ;;  %10961 = vmatprep.mubr.msk.bf16.mxu0 %vm290_vm1, %v11802_v39  ;;  %v11814_v38 = vld [vmem:[%s12061_s9 + $0x108] sm:$0xff]   ;;  %v12195_v39 = vcombine.low %v959_v33, %v969_v34  ;;  %v5320_v52 = vshll.u32 %v9772_v37, 16  ;;  %v5324_v1 = vshrl.u32 %v9772_v37, 16 }
  0x4f   : > { %v5322_v62 = vrot.slane %v5320_v52, 5  ;;  %v5326_v12 = vrot.slane %v5324_v1, 4 }
  0x54   : > { %10690 = vmatmul.mubr.msk.bf16.gmra.mrb[28].mxu1 %vm290_vm1, %v11803_v40  ;;  %10962 = vmatmul.mubr.msk.bf16.gmra.mrb[28].mxu0 %vm290_vm1, %v11804_v41  ;;  %v5294_v40 = vrot.slane %v5293_v26, 4  ;;  %v977_v41 = vor.u32 %v976_v28, %v973_v27  ;;  %v1014_v26 = vshll.u32 %v903_v6, 16  ;;  %v1001_v28 = vor.u32 %v1000_v21, %v997_v20  ;;  %v907_v20 = vld [vmem:[%s12061_s9 + $0x30] sm:$0xf] }
  0x55   : > { %10695 = vmatprep.mubr.msk.bf16.mxu1 %vm290_vm1, %v11805_v42  ;;  %10967 = vmatprep.mubr.msk.bf16.mxu0 %vm290_vm1, %v11806_v43  ;;  %v982_v42 = vrot.slane %v980_v29, 5  ;;  %v5304_v43 = vrot.slane %v5303_v35, 4  ;;  %v9776_v29 = vld [vmem:[%s12061_s9 + $0x2c] sm:$0x1]  ;;  %v5344_v35 = vshll.u32 %v9775_v22, 16 }
  0x56   : > { %v1016_v34 = vrot.slane %v1014_v26, 5 }
  0x57   : > { %v5309_v53 = vsel %vm12174_vm4, %v5304_v43, %v5308_v23  ;;  %v5327_v23 = vor.u32 %v5326_v12, %v5322_v62  ;;  %v9779_v12 = vld [vmem:[%s12061_s9 + $0x38] sm:$0x1] }
  0x5c   : > { %10696 = vmatmul.mubr.msk.bf16.vlgmr.msra.gmra.mrb[0].mxu1 %vm290_vm1, %v11807_v46  ;;  %10968 = vmatmul.mubr.msk.bf16.vlgmr.msra.gmra.mrb[0].mxu0 %vm290_vm1, %v11808_v48  ;;  %v5311_v46 = vshrl.u32 %v9771_v24, 16  ;;  %v978_v48 = vrot.slane %v977_v41, 4  ;;  %v1006_v24 = vrot.slane %v1004_v9, 5  ;;  %v904_v41 = vld [vmem:[%s12061_s9 + $0x24] sm:$0xf] }
  0x5d   : > { %10728 = vmatpush3.bf16.msra.mxu1 %v1429_v44  ;;  %11000 = vmatpush3.bf16.msra.mxu0 %v5769_v47  ;;  %v986_v44 = vrot.slane %v984_v36, 4  ;;  %v5299_v47 = vsel %vm12174_vm4, %v5294_v40, %v5298_v16  ;;  %v9774_v16 = vld [vmem:[%s12061_s9 + $0x24] sm:$0xf]  ;;  %v1002_v36 = vrot.slane %v1001_v28, 4  ;;  %v5348_v40 = vshrl.u32 %v9775_v22, 16 }
  0x5e   : > { %10699 = vmatprep.mubr.msk.bf16.mxu1 %vm290_vm1, %v11809_v50  ;;  %10971 = vmatprep.mubr.msk.bf16.mxu0 %vm290_vm1, %v11810_v54  ;;  %v9773_v50 = vld [vmem:[%s12061_s9 + $0x20] sm:$0x1]  ;;  %v5313_v56 = vrot.slane %v5311_v46, 4  ;;  %v12208_v59 = vcombine.low %v5299_v47, %v5309_v53  ;;  %v983_v60 = vsel %vm12174_vm4, %v978_v48, %v982_v42  ;;  %v905_v46 = vld [vmem:[%s12061_s9 + $0x28] sm:$0xf]  ;;  %v11820_v48 = vld [vmem:[%s12061_s9 + $0x12c] sm:$0xff]  }
  0x5f   : > { %11718 = vmatprep.subr.msk.bf16.mxu1 %vm339_vm0, %v9313_v45  ;;  %11726 = vmatprep.subr.msk.bf16.mxu0 %vm339_vm0, %v9897_v30  ;;  %v990_v45 = vshll.u32 %v900_v17, 16  ;;  %v987_v54 = vor.u32 %v986_v44, %v982_v42  ;;  %v5330_v2 = vshll.u32 %v9773_v50, 16  ;;  %v11818_v17 = vld [vmem:[%s12061_s9 + $0x120] sm:$0xff]   ;;  %v5335_v30 = vshrl.u32 %v9774_v16, 16 }
  0x60   : > { %v5317_v5 = vor.u32 %v5316_v61, %v5313_v56  ;;  %v5346_v44 = vrot.slane %v5344_v35, 5  ;;  %v11819_v47 = vld [vmem:[%s12061_s9 + $0x120] sm:$0xff]   ;;  %v1007_v51 = vsel %vm12174_vm4, %v1002_v36, %v1006_v24  ;;  %v5350_v53 = vrot.slane %v5348_v40, 4  ;;  %v9777_v61 = vld [vmem:[%s12061_s9 + $0x30] sm:$0xf] }
  0x61   : > { %v992_v55 = vrot.slane %v990_v45, 5  ;;  %v988_v0 = vrot.slane %v987_v54, 4  ;;  %v5332_v13 = vrot.slane %v5330_v2, 5  ;;  %v5337_v37 = vrot.slane %v5335_v30, 4  ;;  %v906_v54 = vld [vmem:[%s12061_s9 + $0x2c] sm:$0x1] }
  0x62   : > { %v5318_v19 = vrot.slane %v5317_v5, 4  ;;  %v5354_v45 = vshll.u32 %v9776_v29, 16  ;;  %v1019_v58 = vshrl.u32 %v904_v41, 16  ;;  %v5351_v1 = vor.u32 %v5350_v53, %v5346_v44  ;;  %v908_v29 = vld [vmem:[%s12061_s9 + $0x34] sm:$0xf]  ;;  %v11823_v30 = vld [vmem:[%s12061_s9 + $0x138] sm:$0xff]  }
  0x63   : > { %v993_v11 = vsel %vm12174_vm4, %v988_v0, %v992_v55  ;;  %v11821_v55 = vld [vmem:[%s12061_s9 + $0x12c] sm:$0xff]   ;;  %v1028_v2 = vshll.u32 %v905_v46, 16  ;;  %v1032_v6 = vshrl.u32 %v905_v46, 16  ;;  %v1038_v7 = vshll.u32 %v906_v54, 16  ;;  %v11824_v35 = vld [vmem:[%s12061_s9 + $0x144] sm:$0xff]  }
  0x64   : > { %10700 = vmatmul.mubr.msk.bf16.gmra.mrb[4].mxu1 %vm290_vm1, %v11811_v25  ;;  %10972 = vmatmul.mubr.msk.bf16.gmra.mrb[4].mxu0 %vm290_vm1, %v11812_v31  ;;  %v12223_v18 = vcombine.low %v983_v60, %v993_v11  ;;  %v1010_v25 = vrot.slane %v1008_v15, 4  ;;  %v5323_v27 = vsel %vm12174_vm4, %v5318_v19, %v5322_v62  ;;  %v5338_v31 = vshll.u32 %v9774_v16, 16  ;;  %v11822_v62 = vld [vmem:[%s12061_s9 + $0x138] sm:$0xff]   ;;  %v11825_v36 = vld [vmem:[%s12061_s9 + $0x144] sm:$0xff]  }
  0x65   : > { %10703 = vmatprep.mubr.msk.bf16.mxu1 %vm290_vm1, %v11813_v32  ;;  %10975 = vmatprep.mubr.msk.bf16.mxu0 %vm290_vm1, %v11814_v38  ;;  %v5328_v32 = vrot.slane %v5327_v23, 4  ;;  %v5356_v57 = vrot.slane %v5354_v45, 5  ;;  %v1022_v60 = vshll.u32 %v904_v41, 16  ;;  %v1030_v11 = vrot.slane %v1028_v2, 5  ;;  %v909_v41 = vld [vmem:[%s12061_s9 + $0x38] sm:$0x1] }
  0x66   : > { %v1011_v33 = vor.u32 %v1010_v25, %v1006_v24  ;;  %v5340_v38 = vrot.slane %v5338_v31, 5  ;;  %v1034_v16 = vrot.slane %v1032_v6, 4  ;;  %v5362_v19 = vshll.u32 %v9777_v61, 16 }
  0x67   : > { %v5333_v42 = vsel %vm12174_vm4, %v5328_v32, %v5332_v13  ;;  %v1024_v5 = vrot.slane %v1022_v60, 5  ;;  %v5359_v13 = vshrl.u32 %v9777_v61, 16  ;;  %v5368_v23 = vshll.u32 %v9778_v8, 16 }
  0x68   : > { %v1012_v43 = vrot.slane %v1011_v33, 4  ;;  %v12239_v50 = vcombine.low %v5323_v27, %v5333_v42  ;;  %v5341_v52 = vor.u32 %v5340_v38, %v5337_v37  ;;  %v5372_v24 = vshrl.u32 %v9778_v8, 16  ;;  %v910_v8 = vld [vmem:[%s12061_s9 + $0x3c] sm:$0xf] }
  0x69   : > { %v5361_v22 = vrot.slane %v5359_v13, 4  ;;  %v1035_v27 = vor.u32 %v1034_v16, %v1030_v11  ;;  %v5364_v28 = vrot.slane %v5362_v19, 5  ;;  %v5370_v31 = vrot.slane %v5368_v23, 5  ;;  %v911_v13 = vld [vmem:[%s12061_s9 + $0x40] sm:$0xf] }
  0x6a   : > { %v1017_v56 = vsel %vm12174_vm4, %v1012_v43, %v1016_v34  ;;  %v5342_v0 = vrot.slane %v5341_v52, 4  ;;  %v5374_v32 = vrot.slane %v5372_v24, 4  ;;  %v5378_v33 = vshll.u32 %v9779_v12, 16  ;;  %v11826_v43 = vld [vmem:[%s12061_s9 + $0x150] sm:$0xff]   ;;  %v11828_v16 = vld [vmem:[%s12061_s9 + $0x15c] sm:$0xff]  }
  0x6b   : > { %v1043_v34 = vshrl.u32 %v907_v20, 16  ;;  %v1036_v38 = vrot.slane %v1035_v27, 4  ;;  %v5365_v40 = vor.u32 %v5364_v28, %v5361_v22  ;;  %v1046_v42 = vshll.u32 %v907_v20, 16  ;;  %v11829_v22 = vld [vmem:[%s12061_s9 + $0x15c] sm:$0xff]  }
  0x6c   : > { %10704 = vmatmul.mubr.msk.bf16.gmra.mrb[8].mxu1 %vm290_vm1, %v11815_v63  ;;  %10976 = vmatmul.mubr.msk.bf16.gmra.mrb[8].mxu0 %vm290_vm1, %v11816_v4  ;;  %v12249_v63 = vcombine.low %v1007_v51, %v1017_v56  ;;  %v1021_v4 = vrot.slane %v1019_v58, 4  ;;  %v5347_v9 = vsel %vm12174_vm4, %v5342_v0, %v5346_v44  ;;  %v5375_v44 = vor.u32 %v5374_v32, %v5370_v31 }
  0x6d   : > { %10707 = vmatprep.mubr.msk.bf16.mxu1 %vm290_vm1, %v11817_v10  ;;  %10979 = vmatprep.mubr.msk.bf16.mxu0 %vm290_vm1, %v11818_v17  ;;  %v5352_v10 = vrot.slane %v5351_v1, 4  ;;  %v1040_v17 = vrot.slane %v1038_v7, 5  ;;  %v5380_v45 = vrot.slane %v5378_v33, 5  ;;  %v1045_v46 = vrot.slane %v1043_v34, 4  ;;  %v9782_v1 = vld [vmem:[%s12061_s9 + $0x44] sm:$0x1] }
  0x6e   : > { %v1025_v15 = vor.u32 %v1024_v5, %v1021_v4  ;;  %v5366_v52 = vrot.slane %v5365_v40, 4  ;;  %v1048_v53 = vrot.slane %v1046_v42, 5  ;;  %v1056_v54 = vshrl.u32 %v908_v29, 16  ;;  %v9783_v34 = vld [vmem:[%s12061_s9 + $0x48] sm:$0xf] }
  0x6f   : > { %v5357_v21 = vsel %vm12174_vm4, %v5352_v10, %v5356_v57  ;;  %v1041_v51 = vsel %vm12174_vm4, %v1036_v38, %v1040_v17  ;;  %v5376_v57 = vrot.slane %v5375_v44, 4  ;;  %v1062_v60 = vshll.u32 %v909_v41, 16  ;;  %v9784_v40 = vld [vmem:[%s12061_s9 + $0x4c] sm:$0xf] }
  0x70   : > { %v12262_v25 = vcombine.low %v5347_v9, %v5357_v21  ;;  %v1026_v26 = vrot.slane %v1025_v15, 4  ;;  %v5371_v61 = vsel %vm12174_vm4, %v5366_v52, %v5370_v31  ;;  %v1058_v0 = vrot.slane %v1056_v54, 4  ;;  %v11827_v15 = vld [vmem:[%s12061_s9 + $0x150] sm:$0xff]  }
  0x71   : > { %v5381_v4 = vsel %vm12174_vm4, %v5376_v57, %v5380_v45  ;;  %v1064_v5 = vrot.slane %v1062_v60, 5  ;;  %v5402_v21 = vshll.u32 %v9782_v1, 16  ;;  %v1067_v27 = vshrl.u32 %v910_v8, 16 }
  0x72   : > { %v1031_v37 = vsel %vm12174_vm4, %v1026_v26, %v1030_v11  ;;  %v12288_v9 = vcombine.low %v5371_v61, %v5381_v4  ;;  %v912_v26 = vld [vmem:[%s12061_s9 + $0x44] sm:$0x1]  ;;  %v1070_v28 = vshll.u32 %v910_v8, 16  ;;  %v1076_v33 = vshll.u32 %v911_v13, 16  ;;  %v11833_v8 = vld [vmem:[%s12061_s9 + $0x174] sm:$0xff]  }
  0x73   : > { %v12277_v56 = vcombine.low %v1031_v37, %v1041_v51  ;;  %v5404_v32 = vrot.slane %v5402_v21, 5  ;;  %v1080_v38 = vshrl.u32 %v911_v13, 16  ;;  %v5410_v54 = vshll.u32 %v9783_v34, 16 }
  0x74   : > { %10708 = vmatmul.mubr.msk.bf16.gmra.mrb[12].mxu1 %vm290_vm1, %v11819_v47  ;;  %10980 = vmatmul.mubr.msk.bf16.gmra.mrb[12].mxu0 %vm290_vm1, %v11820_v48  ;;  %v1052_v47 = vshll.u32 %v908_v29, 16  ;;  %v9780_v48 = vld [vmem:[%s12061_s9 + $0x3c] sm:$0xf]  ;;  %v11830_v29 = vld [vmem:[%s12061_s9 + $0x168] sm:$0xff]   ;;  %v1072_v37 = vrot.slane %v1070_v28, 5  ;;  %v1078_v44 = vrot.slane %v1076_v33, 5 }
  0x75   : > { %10711 = vmatprep.mubr.msk.bf16.mxu1 %vm290_vm1, %v11821_v55  ;;  %10983 = vmatprep.mubr.msk.bf16.mxu0 %vm290_vm1, %v11822_v62  ;;  %v9781_v55 = vld [vmem:[%s12061_s9 + $0x40] sm:$0xf]  ;;  %v1049_v62 = vor.u32 %v1048_v53, %v1045_v46  ;;  %v5383_v2 = vshrl.u32 %v9780_v48, 16  ;;  %v5386_v6 = vshll.u32 %v9780_v48, 16  ;;  %v1082_v46 = vrot.slane %v1080_v38, 4 }
  0x76   : > { %v1054_v58 = vrot.slane %v1052_v47, 5  ;;  %v5392_v7 = vshll.u32 %v9781_v55, 16  ;;  %v5396_v20 = vshrl.u32 %v9781_v55, 16  ;;  %v1086_v47 = vshll.u32 %v912_v26, 16  ;;  %v9785_v53 = vld [vmem:[%s12061_s9 + $0x50] sm:$0x1] }
  0x77   : > { %v1050_v10 = vrot.slane %v1049_v62, 4  ;;  %v5385_v12 = vrot.slane %v5383_v2, 4  ;;  %v5388_v17 = vrot.slane %v5386_v6, 5  ;;  %v5407_v48 = vshrl.u32 %v9783_v34, 16  ;;  %v913_v62 = vld [vmem:[%s12061_s9 + $0x48] sm:$0xf] }
  0x78   : > { %v1059_v11 = vor.u32 %v1058_v0, %v1054_v58  ;;  %v5394_v19 = vrot.slane %v5392_v7, 5  ;;  %v5398_v31 = vrot.slane %v5396_v20, 4  ;;  %v5416_v55 = vshll.u32 %v9784_v40, 16  ;;  %v11831_v0 = vld [vmem:[%s12061_s9 + $0x168] sm:$0xff]   ;;  %v11832_v7 = vld [vmem:[%s12061_s9 + $0x174] sm:$0xff]  }
  0x79   : > { %v1055_v23 = vsel %vm12174_vm4, %v1050_v10, %v1054_v58  ;;  %v1083_v58 = vor.u32 %v1082_v46, %v1078_v44  ;;  %v1088_v60 = vrot.slane %v1086_v47, 5  ;;  %v5409_v61 = vrot.slane %v5407_v48, 4  ;;  %v914_v6 = vld [vmem:[%s12061_s9 + $0x4c] sm:$0xf]  ;;  %v9788_v46 = vld [vmem:[%s12061_s9 + $0x5c] sm:$0x1] }
  0x7a   : > { %v1060_v24 = vrot.slane %v1059_v11, 4  ;;  %v5412_v2 = vrot.slane %v5410_v54, 5  ;;  %v5418_v4 = vrot.slane %v5416_v55, 5  ;;  %v5426_v13 = vshll.u32 %v9785_v53, 16  ;;  %v916_v48 = vld [vmem:[%s12061_s9 + $0x54] sm:$0xf] }
  0x7b   : > { %v1091_v20 = vshrl.u32 %v913_v62, 16  ;;  %v1094_v21 = vshll.u32 %v913_v62, 16  ;;  %v1104_v26 = vshrl.u32 %v914_v6, 16 }
  0x7c   : > { %10712 = vmatmul.mubr.msk.bf16.gmra.mrb[16].mxu1 %vm290_vm1, %v11823_v30  ;;  %10984 = vmatmul.mubr.msk.bf16.gmra.mrb[16].mxu0 %vm290_vm1, %v11824_v35  ;;  %v5389_v30 = vor.u32 %v5388_v17, %v5385_v12  ;;  %v1065_v35 = vsel %vm12174_vm4, %v1060_v24, %v1064_v5  ;;  %v5420_v5 = vshrl.u32 %v9784_v40, 16  ;;  %v1084_v12 = vrot.slane %v1083_v58, 4  ;;  %v11836_v58 = vld [vmem:[%s12061_s9 + $0x18c] sm:$0xff]  }
  0x7d   : > { %10715 = vmatprep.mubr.msk.bf16.mxu1 %vm290_vm1, %v11825_v36  ;;  %10987 = vmatprep.mubr.msk.bf16.mxu0 %vm290_vm1, %v11826_v43  ;;  %v1069_v36 = vrot.slane %v1067_v27, 4  ;;  %v12303_v41 = vcombine.low %v1055_v23, %v1065_v35  ;;  %v5399_v43 = vor.u32 %v5398_v31, %v5394_v19  ;;  %v5428_v23 = vrot.slane %v5426_v13, 5  ;;  %v9786_v27 = vld [vmem:[%s12061_s9 + $0x54] sm:$0xf]  ;;  %v9789_v13 = vld [vmem:[%s12061_s9 + $0x60] sm:$0xf] }
  0x7e   : > { %v5390_v42 = vrot.slane %v5389_v30, 4  ;;  %v5422_v17 = vrot.slane %v5420_v5, 4  ;;  %v1100_v24 = vshll.u32 %v914_v6, 16  ;;  %v1093_v31 = vrot.slane %v1091_v20, 4  ;;  %v9790_v20 = vld [vmem:[%s12061_s9 + $0x64] sm:$0xf] }
  0x7f   : > { %v1073_v45 = vor.u32 %v1072_v37, %v1069_v36  ;;  %v5400_v52 = vrot.slane %v5399_v43, 4  ;;  %v1096_v33 = vrot.slane %v1094_v21, 5  ;;  %v1106_v35 = vrot.slane %v1104_v26, 4 }
  0x80   : > { %v5395_v51 = vsel %vm12174_vm4, %v5390_v42, %v5394_v19  ;;  %v915_v19 = vld [vmem:[%s12061_s9 + $0x50] sm:$0x1]  ;;  %v5423_v30 = vor.u32 %v5422_v17, %v5418_v4  ;;  %v1102_v34 = vrot.slane %v1100_v24, 5  ;;  %v5431_v40 = vshrl.u32 %v9786_v27, 16 }
  0x81   : > { %v1074_v57 = vrot.slane %v1073_v45, 4  ;;  %v5405_v1 = vsel %vm12174_vm4, %v5400_v52, %v5404_v32  ;;  %v9787_v32 = vld [vmem:[%s12061_s9 + $0x58] sm:$0xf]  ;;  %v1110_v36 = vshll.u32 %v915_v19, 16  ;;  %v5434_v42 = vshll.u32 %v9786_v27, 16 }
  0x82   : > { %v12318_v10 = vcombine.low %v5395_v51, %v5405_v1  ;;  %v5424_v38 = vrot.slane %v5423_v30, 4  ;;  %v1097_v43 = vor.u32 %v1096_v33, %v1093_v31  ;;  %v5440_v47 = vshll.u32 %v9787_v32, 16  ;;  %v11835_v51 = vld [vmem:[%s12061_s9 + $0x180] sm:$0xff]   ;;  %v9791_v30 = vld [vmem:[%s12061_s9 + $0x68] sm:$0x1] }
  0x83   : > { %v1079_v11 = vsel %vm12174_vm4, %v1074_v57, %v1078_v44  ;;  %v1107_v44 = vor.u32 %v1106_v35, %v1102_v34  ;;  %v1112_v45 = vrot.slane %v1110_v36, 5  ;;  %v5433_v53 = vrot.slane %v5431_v40, 4  ;;  %v917_v57 = vld [vmem:[%s12061_s9 + $0x58] sm:$0xf] }
  0x84   : > { %10716 = vmatmul.mubr.msk.bf16.gmra.mrb[20].mxu1 %vm290_vm1, %v11827_v15  ;;  %10988 = vmatmul.mubr.msk.bf16.gmra.mrb[20].mxu0 %vm290_vm1, %v11828_v16  ;;  %v11834_v15 = vld [vmem:[%s12061_s9 + $0x180] sm:$0xff]   ;;  %v5413_v16 = vor.u32 %v5412_v2, %v5409_v61  ;;  %v5429_v52 = vsel %vm12174_vm4, %v5424_v38, %v5428_v23  ;;  %v5436_v54 = vrot.slane %v5434_v42, 5  ;;  %v5444_v55 = vshrl.u32 %v9787_v32, 16 }
  0x85   : > { %10719 = vmatprep.mubr.msk.bf16.mxu1 %vm290_vm1, %v11829_v22  ;;  %10991 = vmatprep.mubr.msk.bf16.mxu0 %vm290_vm1, %v11830_v29  ;;  %v1089_v22 = vsel %vm12174_vm4, %v1084_v12, %v1088_v60  ;;  %v1098_v61 = vrot.slane %v1097_v43, 4  ;;  %v1108_v62 = vrot.slane %v1107_v44, 4  ;;  %v1115_v5 = vshrl.u32 %v916_v48, 16 }
  0x86   : > { %v12328_v28 = vcombine.low %v1079_v11, %v1089_v22  ;;  %v5414_v29 = vrot.slane %v5413_v16, 4  ;;  %v5437_v1 = vor.u32 %v5436_v54, %v5433_v53  ;;  %v5446_v2 = vrot.slane %v5444_v55, 4  ;;  %v921_v55 = vld [vmem:[%s12061_s9 + $0x68] sm:$0x1] }
  0x87   : > { %v1103_v6 = vsel %vm12174_vm4, %v1098_v61, %v1102_v34  ;;  %v1118_v11 = vshll.u32 %v916_v48, 16  ;;  %v1124_v12 = vshll.u32 %v917_v57, 16  ;;  %v1117_v21 = vrot.slane %v1115_v5, 4 }
  0x88   : > { %v5419_v37 = vsel %vm12174_vm4, %v5414_v29, %v5418_v4  ;;  %v5450_v4 = vshll.u32 %v9788_v46, 16  ;;  %v5438_v16 = vrot.slane %v5437_v1, 4  ;;  %v1128_v24 = vshrl.u32 %v917_v57, 16  ;;  %v9792_v1 = vld [vmem:[%s12061_s9 + $0x6c] sm:$0xf] }
  0x89   : > { %v12343_v60 = vcombine.low %v5419_v37, %v5429_v52  ;;  %v1120_v22 = vrot.slane %v1118_v11, 5  ;;  %v1126_v23 = vrot.slane %v1124_v12, 5  ;;  %v5455_v31 = vshrl.u32 %v9789_v13, 16 }
  0x8a   : > { %v5452_v19 = vrot.slane %v5450_v4, 5  ;;  %v1130_v33 = vrot.slane %v1128_v24, 4  ;;  %v5458_v34 = vshll.u32 %v9789_v13, 16  ;;  %v5464_v35 = vshll.u32 %v9790_v20, 16 }
  0x8b   : > { %v1121_v32 = vor.u32 %v1120_v22, %v1117_v21  ;;  %v5457_v38 = vrot.slane %v5455_v31, 4  ;;  %v5474_v48 = vshll.u32 %v9791_v30, 16  ;;  %v1158_v11 = vshll.u32 %v921_v55, 16  ;;  %v922_v21 = vld [vmem:[%s12061_s9 + $0x6c] sm:$0xf] }
  0x8c   : > { %10720 = vmatmul.mubr.msk.bf16.gmra.mrb[24].mxu1 %vm290_vm1, %v11831_v0  ;;  %10992 = vmatmul.mubr.msk.bf16.gmra.mrb[24].mxu0 %vm290_vm1, %v11832_v7  ;;  %v5442_v0 = vrot.slane %v5440_v47, 5  ;;  %v1113_v7 = vsel %vm12174_vm4, %v1108_v62, %v1112_v45  ;;  %v1131_v43 = vor.u32 %v1130_v33, %v1126_v23  ;;  %v5460_v44 = vrot.slane %v5458_v34, 5  ;;  %v920_v45 = vld [vmem:[%s12061_s9 + $0x64] sm:$0xf] }
  0x8d   : > { %10723 = vmatprep.mubr.msk.bf16.mxu1 %vm290_vm1, %v11833_v8  ;;  %10995 = vmatprep.mubr.msk.bf16.mxu0 %vm290_vm1, %v11834_v15  ;;  %v918_v8 = vld [vmem:[%s12061_s9 + $0x5c] sm:$0x1]  ;;  %v12352_v15 = vcombine.low %v1103_v6, %v1113_v7  ;;  %v1122_v42 = vrot.slane %v1121_v32, 4  ;;  %v5466_v46 = vrot.slane %v5464_v35, 5  ;;  %v5476_v61 = vrot.slane %v5474_v48, 5 }
  0x8e   : > { %v5447_v17 = vor.u32 %v5446_v2, %v5442_v0  ;;  %v5443_v26 = vsel %vm12174_vm4, %v5438_v16, %v5442_v0  ;;  %v1134_v29 = vshll.u32 %v918_v8, 16  ;;  %v1132_v53 = vrot.slane %v1131_v43, 4  ;;  %v9793_v7 = vld [vmem:[%s12061_s9 + $0x70] sm:$0xf]  ;;  %v9794_v16 = vld [vmem:[%s12061_s9 + $0x74] sm:$0x1] }
  0x8f   : > { %v1127_v52 = vsel %vm12174_vm4, %v1122_v42, %v1126_v23  ;;  %v5461_v54 = vor.u32 %v5460_v44, %v5457_v38  ;;  %v1148_v0 = vshll.u32 %v920_v45, 16  ;;  %v1152_v6 = vshrl.u32 %v920_v45, 16  ;;  %v924_v32 = vld [vmem:[%s12061_s9 + $0x74] sm:$0x1]  ;;  %v9795_v43 = vld [vmem:[%s12061_s9 + $0x78] sm:$0xf] }
  0x90   : > { %v5448_v27 = vrot.slane %v5447_v17, 4  ;;  %v1136_v37 = vrot.slane %v1134_v29, 5  ;;  %v1160_v17 = vrot.slane %v1158_v11, 5  ;;  %v5492_v30 = vshrl.u32 %v9793_v7, 16  ;;  %v926_v11 = vld [vmem:[%s12061_s9 + $0x7c] sm:$0xf] }
  0x91   : > { %v5462_v4 = vrot.slane %v5461_v54, 4  ;;  %v1150_v8 = vrot.slane %v1148_v0, 5  ;;  %v1154_v13 = vrot.slane %v1152_v6, 4  ;;  %v5498_v31 = vshll.u32 %v9794_v16, 16 }
  0x92   : > { %v5453_v36 = vsel %vm12174_vm4, %v5448_v27, %v5452_v19  ;;  %v1137_v2 = vsel %vm12174_vm4, %v1132_v53, %v1136_v37  ;;  %v5482_v19 = vshll.u32 %v9792_v1, 16  ;;  %v1163_v35 = vshrl.u32 %v922_v21, 16 }
  0x93   : > { %v12366_v40 = vcombine.low %v5443_v26, %v5453_v36  ;;  %v1155_v24 = vor.u32 %v1154_v13, %v1150_v8  ;;  %v923_v26 = vld [vmem:[%s12061_s9 + $0x70] sm:$0xf]  ;;  %v5494_v38 = vrot.slane %v5492_v30, 4  ;;  %v5503_v55 = vshrl.u32 %v9795_v43, 16 }
  0x94   : > { %10724 = vmatmul.mubr.msk.bf16.gmra.mrb[28].mxu1 %vm290_vm1, %v11835_v51  ;;  %10996 = vmatmul.mubr.msk.bf16.gmra.mrb[28].mxu0 %vm290_vm1, %v11836_v58  ;;  %v5484_v27 = vrot.slane %v5482_v19, 5  ;;  %v12403_v36 = vld [vmem:[%s13779_s1 + $0x10] sm:$0xf]  ;;  %v1172_v42 = vshll.u32 %v923_v26, 16  ;;  %v1165_v45 = vrot.slane %v1163_v35, 4 }
  0x95   : > { %10729 = vmatprep.mubr.msk.bf16.mxu1 %vm290_vm1, %v12195_v39  ;;  %11001 = vmatprep.mubr.msk.bf16.mxu0 %vm290_vm1, %v12208_v59  ;;  %v919_v39 = vld [vmem:[%s12061_s9 + $0x60] sm:$0xf]  ;;  %v5468_v59 = vshrl.u32 %v9790_v20, 16  ;;  %v5488_v20 = vshll.u32 %v9793_v7, 16  ;;  %v1156_v34 = vrot.slane %v1155_v24, 4 }
  0x96   : > { %v1139_v51 = vshrl.u32 %v919_v39, 16  ;;  %v1142_v57 = vshll.u32 %v919_v39, 16  ;;  %v1166_v39 = vshll.u32 %v922_v21, 16  ;;  %v927_v19 = vld [vmem:[%s12061_s9 + $0x80] sm:$0x1] }
  0x97   : > { %v5470_v47 = vrot.slane %v5468_v59, 4  ;;  %v5490_v29 = vrot.slane %v5488_v20, 5  ;;  %v5500_v59 = vrot.slane %v5498_v31, 5  ;;  %v1161_v44 = vsel %vm12174_vm4, %v1156_v34, %v1160_v17  ;;  %v9799_v31 = vld [vmem:[%s12061_s9 + $0x88] sm:$0xf] }
  0x98   : > { %v1141_v62 = vrot.slane %v1139_v51, 4  ;;  %v1144_v5 = vrot.slane %v1142_v57, 5  ;;  %v1206_v34 = vshll.u32 %v927_v19, 16 }
  0x99   : > { %v5471_v58 = vor.u32 %v5470_v47, %v5466_v46  ;;  %v9796_v47 = vld [vmem:[%s12061_s9 + $0x7c] sm:$0xf] }
  0x9a   : > { %v1145_v12 = vor.u32 %v1144_v5, %v1141_v62  ;;  %v5506_v62 = vshll.u32 %v9795_v43, 16  ;;  %v5512_v0 = vshll.u32 %v9796_v47, 16  ;;  %v925_v5 = vld [vmem:[%s12061_s9 + $0x78] sm:$0xf]  ;;  %v9800_v43 = vld [vmem:[%s12061_s9 + $0x8c] sm:$0x1] }
  0x9b   : > { %v1187_v20 = vshrl.u32 %v925_v5, 16  ;;  %v1190_v21 = vshll.u32 %v925_v5, 16 }
  0x9c   : > { %10730 = vmatmul.mubr.msk.bf16.vlgmr.msra.gmra.mrb[0].mxu1 %vm290_vm1, %v12223_v18  ;;  %11002 = vmatmul.mubr.msk.bf16.vlgmr.msra.gmra.mrb[0].mxu0 %vm290_vm1, %v12239_v50  ;;  %v12384_v18 = vcombine.low %v1127_v52, %v1137_v2  ;;  %v5467_v50 = vsel %vm12174_vm4, %v5462_v4, %v5466_v46  ;;  %v1146_v23 = vrot.slane %v1145_v12, 4  ;;  %v1176_v46 = vshrl.u32 %v923_v26, 16  ;;  %v9798_v26 = vld [vmem:[%s12061_s9 + $0x84] sm:$0xf] }
  0x9d   : > { %10762 = vmatpush3.bf16.msra.mxu1 %v12157_v49  ;;  %11034 = vmatpush3.bf16.msra.mxu0 %v12214_v3  ;;  %v5472_v49 = vrot.slane %v5471_v58, 4  ;;  %v5479_v3 = vshrl.u32 %v9792_v1, 16  ;;  %v5495_v52 = vor.u32 %v5494_v38, %v5490_v29  ;;  %v5505_v4 = vrot.slane %v5503_v55, 4 }
  0x9e   : > { %10733 = vmatprep.mubr.msk.bf16.mxu1 %vm290_vm1, %v12249_v63  ;;  %11005 = vmatprep.mubr.msk.bf16.mxu0 %vm290_vm1, %v12262_v25  ;;  %v1151_v33 = vsel %vm12174_vm4, %v1146_v23, %v1150_v8  ;;  %v1178_v54 = vrot.slane %v1176_v46, 4  ;;  %v5508_v7 = vrot.slane %v5506_v62, 5  ;;  %v5516_v8 = vshrl.u32 %v9796_v47, 16 }
  0x9f   : > { %v5477_v63 = vsel %vm12174_vm4, %v5472_v49, %v5476_v61  ;;  %v5481_v25 = vrot.slane %v5479_v3, 4  ;;  %11719 = vmatprep.subr.msk.bf16.mxu1 %vm339_vm0, %v12403_v36  ;;  %v12419_v48 = vcombine.low %v1151_v33, %v1161_v44  ;;  %v5496_v58 = vrot.slane %v5495_v52, 4  ;;  %v9797_v61 = vld [vmem:[%s12061_s9 + $0x80] sm:$0x1]  ;;  %v12433_v3 = vld [vmem:[%s13779_s1 + $0x30] sm:$0xf] }
  0xa0   : > { %v12394_v22 = vcombine.low %v5467_v50, %v5477_v63  ;;  %v5514_v49 = vrot.slane %v5512_v0, 5  ;;  %v5522_v16 = vshll.u32 %v9797_v61, 16  ;;  %v5509_v63 = vor.u32 %v5508_v7, %v5505_v4  ;;  %11727 = vmatprep.subr.msk.bf16.mxu0 %vm339_vm0, %v12433_v3  ;;  %v929_v52 = vld [vmem:[%s12061_s9 + $0x88] sm:$0xf]  ;;  %v9802_v7 = vld [vmem:[%s12061_s9 + $0x94] sm:$0xf] }
  0xa1   : > { %v5485_v37 = vor.u32 %v5484_v27, %v5481_v25  ;;  %v5501_v6 = vsel %vm12174_vm4, %v5496_v58, %v5500_v59  ;;  %v5518_v17 = vrot.slane %v5516_v8, 4  ;;  %v1200_v25 = vshrl.u32 %v926_v11, 16 }
  0xa2   : > { %v5524_v24 = vrot.slane %v5522_v16, 5  ;;  %v5530_v38 = vshll.u32 %v9798_v26, 16  ;;  %v5536_v44 = vshll.u32 %v9799_v31, 16  ;;  %v5546_v58 = vshll.u32 %v9800_v43, 16 }
  0xa3   : > { %v5486_v51 = vrot.slane %v5485_v37, 4  ;;  %v5519_v30 = vor.u32 %v5518_v17, %v5514_v49  ;;  %v1202_v33 = vrot.slane %v1200_v25, 4  ;;  %v5527_v37 = vshrl.u32 %v9798_v26, 16 }
  0xa4   : > { %10734 = vmatmul.mubr.msk.bf16.gmra.mrb[4].mxu1 %vm290_vm1, %v12277_v56  ;;  %11006 = vmatmul.mubr.msk.bf16.gmra.mrb[4].mxu0 %vm290_vm1, %v12288_v9  ;;  %v1168_v56 = vrot.slane %v1166_v39, 5  ;;  %v1174_v9 = vrot.slane %v1172_v42, 5  ;;  %v1208_v42 = vrot.slane %v1206_v34, 5  ;;  %v5532_v47 = vrot.slane %v5530_v38, 5 }
  0xa5   : > { %10737 = vmatprep.mubr.msk.bf16.mxu1 %vm290_vm1, %v12303_v41  ;;  %11009 = vmatprep.mubr.msk.bf16.mxu0 %vm290_vm1, %v12318_v10  ;;  %v1182_v41 = vshll.u32 %v924_v32, 16  ;;  %v5491_v57 = vsel %vm12174_vm4, %v5486_v51, %v5490_v29  ;;  %v5510_v29 = vrot.slane %v5509_v63, 4  ;;  %v1192_v32 = vrot.slane %v1190_v21, 5  ;;  %v9803_v63 = vld [vmem:[%s12061_s9 + $0x98] sm:$0x1] }
  0xa6   : > { %v1169_v53 = vor.u32 %v1168_v56, %v1165_v45  ;;  %v1179_v10 = vor.u32 %v1178_v54, %v1174_v9  ;;  %v9825_v50 = vcombine.low %v5491_v57, %v5501_v6  ;;  %v5520_v39 = vrot.slane %v5519_v30, 4  ;;  %v928_v45 = vld [vmem:[%s12061_s9 + $0x84] sm:$0xf] }
  0xa7   : > { %v1184_v2 = vrot.slane %v1182_v41, 5  ;;  %v5515_v35 = vsel %vm12174_vm4, %v5510_v29, %v5514_v49  ;;  %v5529_v46 = vrot.slane %v5527_v37, 4  ;;  %v5540_v51 = vshrl.u32 %v9799_v31, 16 }
  0xa8   : > { %v1170_v1 = vrot.slane %v1169_v53, 4  ;;  %v1180_v13 = vrot.slane %v1179_v10, 4  ;;  %v5525_v56 = vsel %vm12174_vm4, %v5520_v39, %v5524_v24  ;;  %v5538_v41 = vrot.slane %v5536_v44, 5 }
  0xa9   : > { %v5533_v55 = vor.u32 %v5532_v47, %v5529_v46  ;;  %v5542_v57 = vrot.slane %v5540_v51, 4  ;;  %v1211_v61 = vshrl.u32 %v928_v45, 16  ;;  %v1214_v10 = vshll.u32 %v928_v45, 16  ;;  %v9804_v45 = vld [vmem:[%s12061_s9 + $0x9c] sm:$0xf] }
  0xaa   : > { %v1175_v12 = vsel %vm12174_vm4, %v1170_v1, %v1174_v9  ;;  %v1185_v23 = vsel %vm12174_vm4, %v1180_v13, %v1184_v2  ;;  %v9826_v9 = vcombine.low %v5515_v35, %v5525_v56  ;;  %v930_v1 = vld [vmem:[%s12061_s9 + $0x8c] sm:$0x1]  ;;  %v9801_v2 = vld [vmem:[%s12061_s9 + $0x90] sm:$0xf]  ;;  %v5560_v21 = vshll.u32 %v9802_v7, 16 }
  0xab   : > { %v12449_v27 = vcombine.low %v1175_v12, %v1185_v23  ;;  %v5534_v5 = vrot.slane %v5533_v55, 4  ;;  %v5543_v6 = vor.u32 %v5542_v57, %v5538_v41  ;;  %v1216_v49 = vrot.slane %v1214_v10, 5  ;;  %v931_v23 = vld [vmem:[%s12061_s9 + $0x90] sm:$0xf] }
  0xac   : > { %10738 = vmatmul.mubr.msk.bf16.gmra.mrb[8].mxu1 %vm290_vm1, %v12328_v28  ;;  %11010 = vmatmul.mubr.msk.bf16.gmra.mrb[8].mxu0 %vm290_vm1, %v12343_v60  ;;  %v1196_v28 = vshll.u32 %v926_v11, 16  ;;  %v1189_v60 = vrot.slane %v1187_v20, 4  ;;  %v1224_v11 = vshrl.u32 %v929_v52, 16  ;;  %v1230_v16 = vshll.u32 %v930_v1, 16 }
  0xad   : > { %10741 = vmatprep.mubr.msk.bf16.mxu1 %vm290_vm1, %v12352_v15  ;;  %11013 = vmatprep.mubr.msk.bf16.mxu0 %vm290_vm1, %v12366_v40  ;;  %v5539_v12 = vsel %vm12174_vm4, %v5534_v5, %v5538_v41  ;;  %v5544_v13 = vrot.slane %v5543_v6, 4  ;;  %v5551_v17 = vshrl.u32 %v9801_v2, 16  ;;  %v5554_v20 = vshll.u32 %v9801_v2, 16  ;;  %v934_v2 = vld [vmem:[%s12061_s9 + $0x9c] sm:$0xf] }
  0xae   : > { %v1198_v15 = vrot.slane %v1196_v28, 5  ;;  %v1193_v40 = vor.u32 %v1192_v32, %v1189_v60  ;;  %v1232_v28 = vrot.slane %v1230_v16, 5  ;;  %v5564_v26 = vshrl.u32 %v9802_v7, 16  ;;  %v932_v32 = vld [vmem:[%s12061_s9 + $0x94] sm:$0xf] }
  0xaf   : > { %v5553_v25 = vrot.slane %v5551_v17, 4  ;;  %v5556_v31 = vrot.slane %v5554_v20, 5  ;;  %v5570_v34 = vshll.u32 %v9803_v63, 16  ;;  %v1235_v35 = vshrl.u32 %v931_v23, 16  ;;  %v935_v7 = vld [vmem:[%s12061_s9 + $0xa0] sm:$0xf] }
  0xb0   : > { %v1203_v59 = vor.u32 %v1202_v33, %v1198_v15  ;;  %v1194_v53 = vrot.slane %v1193_v40, 4  ;;  %v5566_v33 = vrot.slane %v5564_v26, 4  ;;  %v933_v40 = vld [vmem:[%s12061_s9 + $0x98] sm:$0x1]  ;;  %v1244_v44 = vshll.u32 %v932_v32, 16 }
  0xb1   : > { %v5557_v38 = vor.u32 %v5556_v31, %v5553_v25  ;;  %v1237_v43 = vrot.slane %v1235_v35, 4  ;;  %v1248_v51 = vshrl.u32 %v932_v32, 16  ;;  %v1254_v41 = vshll.u32 %v933_v40, 16  ;;  %v936_v16 = vld [vmem:[%s12061_s9 + $0xa4] sm:$0x1] }
  0xb2   : > { %v1204_v54 = vrot.slane %v1203_v59, 4  ;;  %v1199_v62 = vsel %vm12174_vm4, %v1194_v53, %v1198_v15  ;;  %v5562_v15 = vrot.slane %v5560_v21, 5  ;;  %v1238_v59 = vshll.u32 %v931_v23, 16  ;;  %v9807_v23 = vld [vmem:[%s12061_s9 + $0xa8] sm:$0xf] }
  0xb3   : > { %v5558_v46 = vrot.slane %v5557_v38, 4  ;;  %v1256_v1 = vrot.slane %v1254_v41, 5  ;;  %v5578_v10 = vshll.u32 %v9804_v45, 16  ;;  %v1259_v63 = vshrl.u32 %v934_v2, 16  ;;  %v9809_v38 = vld [vmem:[%s12061_s9 + $0xb0] sm:$0x1] }
  0xb4   : > { %10742 = vmatmul.mubr.msk.bf16.gmra.mrb[12].mxu1 %vm290_vm1, %v12384_v18  ;;  %11014 = vmatmul.mubr.msk.bf16.gmra.mrb[12].mxu0 %vm290_vm1, %v12394_v22  ;;  %v1209_v0 = vsel %vm12174_vm4, %v1204_v54, %v1208_v42  ;;  %v1220_v18 = vshll.u32 %v929_v52, 16  ;;  %v5548_v22 = vrot.slane %v5546_v58, 5  ;;  %v5572_v42 = vrot.slane %v5570_v34, 5  ;;  %v9805_v52 = vld [vmem:[%s12061_s9 + $0xa0] sm:$0xf] }
  0xb5   : > { %10745 = vmatprep.mubr.msk.bf16.mxu1 %vm290_vm1, %v12419_v48  ;;  %11017 = vmatprep.mubr.msk.bf16.mxu0 %vm290_vm1, %v9825_v50  ;;  %v9243_v4 = vcombine.low %v1199_v62, %v1209_v0  ;;  %v1213_v48 = vrot.slane %v1211_v61, 4  ;;  %v1226_v50 = vrot.slane %v1224_v11, 4  ;;  %v1240_v47 = vrot.slane %v1238_v59, 5  ;;  %v9806_v61 = vld [vmem:[%s12061_s9 + $0xa4] sm:$0x1] }
  0xb6   : > { %v1222_v8 = vrot.slane %v1220_v18, 5  ;;  %v5549_v24 = vsel %vm12174_vm4, %v5544_v13, %v5548_v22  ;;  %v1246_v54 = vrot.slane %v1244_v44, 5  ;;  %v5563_v55 = vsel %vm12174_vm4, %v5558_v46, %v5562_v15 }
  0xb7   : > { %v1217_v19 = vor.u32 %v1216_v49, %v1213_v48  ;;  %v9827_v29 = vcombine.low %v5539_v12, %v5549_v24  ;;  %v1241_v57 = vor.u32 %v1240_v47, %v1237_v43  ;;  %v1250_v58 = vrot.slane %v1248_v51, 4 }
  0xb8   : > { %v1227_v60 = vor.u32 %v1226_v50, %v1222_v8  ;;  %v5575_v62 = vshrl.u32 %v9804_v45, 16  ;;  %v5584_v18 = vshll.u32 %v9805_v52, 16  ;;  %v5580_v48 = vrot.slane %v5578_v10, 5  ;;  %v937_v45 = vld [vmem:[%s12061_s9 + $0xa8] sm:$0xf] }
  0xb9   : > { %v1218_v30 = vrot.slane %v1217_v19, 4  ;;  %v1242_v5 = vrot.slane %v1241_v57, 4  ;;  %v1251_v6 = vor.u32 %v1250_v58, %v1246_v54  ;;  %v5594_v11 = vshll.u32 %v9806_v61, 16  ;;  %v939_v58 = vld [vmem:[%s12061_s9 + $0xb0] sm:$0x1] }
  0xba   : > { %v1228_v37 = vrot.slane %v1227_v60, 4  ;;  %v5577_v22 = vrot.slane %v5575_v62, 4  ;;  %v5586_v49 = vrot.slane %v5584_v18, 5  ;;  %v1262_v17 = vshll.u32 %v934_v2, 16  ;;  %v9810_v2 = vld [vmem:[%s12061_s9 + $0xb4] sm:$0xf] }
  0xbb   : > { %v1223_v39 = vsel %vm12174_vm4, %v1218_v30, %v1222_v8  ;;  %v5588_v8 = vshrl.u32 %v9805_v52, 16  ;;  %v1247_v12 = vsel %vm12174_vm4, %v1242_v5, %v1246_v54  ;;  %v1252_v13 = vrot.slane %v1251_v6, 4  ;;  %v938_v52 = vld [vmem:[%s12061_s9 + $0xac] sm:$0xf] }
  0xbc   : > { %10746 = vmatmul.mubr.msk.bf16.gmra.mrb[16].mxu1 %vm290_vm1, %v12449_v27  ;;  %11018 = vmatmul.mubr.msk.bf16.gmra.mrb[16].mxu0 %vm290_vm1, %v9826_v9  ;;  %v5567_v27 = vor.u32 %v5566_v33, %v5562_v15  ;;  %v1233_v56 = vsel %vm12174_vm4, %v1228_v37, %v1232_v28  ;;  %v5581_v19 = vor.u32 %v5580_v48, %v5577_v22  ;;  %v5596_v20 = vrot.slane %v5594_v11, 5 }
  0xbd   : > { %10749 = vmatprep.mubr.msk.bf16.mxu1 %vm290_vm1, %v9243_v4  ;;  %11021 = vmatprep.mubr.msk.bf16.mxu0 %vm290_vm1, %v9827_v29  ;;  %v9244_v9 = vcombine.low %v1223_v39, %v1233_v56  ;;  %v5590_v50 = vrot.slane %v5588_v8, 4  ;;  %v1268_v21 = vshll.u32 %v935_v7, 16  ;;  %v1257_v24 = vsel %vm12174_vm4, %v1252_v13, %v1256_v1  ;;  %v9808_v29 = vld [vmem:[%s12061_s9 + $0xac] sm:$0xf] }
  0xbe   : > { %v5568_v53 = vrot.slane %v5567_v27, 4  ;;  %v1261_v28 = vrot.slane %v1259_v63, 4  ;;  %v1264_v25 = vrot.slane %v1262_v17, 5  ;;  %v1272_v26 = vshrl.u32 %v935_v7, 16  ;;  %v9811_v7 = vld [vmem:[%s12061_s9 + $0xb8] sm:$0xf] }
  0xbf   : > { %v9245_v30 = vcombine.low %v1247_v12, %v1257_v24  ;;  %v5582_v60 = vrot.slane %v5581_v19, 4  ;;  %v5591_v31 = vor.u32 %v5590_v50, %v5586_v49  ;;  %v1270_v32 = vrot.slane %v1268_v21, 5 }
  0xc0   : > { %v5573_v0 = vsel %vm12174_vm4, %v5568_v53, %v5572_v42  ;;  %v1265_v15 = vor.u32 %v1264_v25, %v1261_v28  ;;  %v1274_v33 = vrot.slane %v1272_v26, 4  ;;  %v1278_v34 = vshll.u32 %v936_v16, 16 }
  0xc1   : > { %v9828_v4 = vcombine.low %v5563_v55, %v5573_v0  ;;  %v5599_v35 = vshrl.u32 %v9807_v23, 16  ;;  %v5587_v39 = vsel %vm12174_vm4, %v5582_v60, %v5586_v49  ;;  %v5592_v37 = vrot.slane %v5591_v31, 4 }
  0xc2   : > { %v5602_v40 = vshll.u32 %v9807_v23, 16  ;;  %v5608_v59 = vshll.u32 %v9808_v29, 16  ;;  %v1266_v27 = vrot.slane %v1265_v15, 4  ;;  %v1275_v42 = vor.u32 %v1274_v33, %v1270_v32  ;;  %v940_v23 = vld [vmem:[%s12061_s9 + $0xb4] sm:$0xf] }
  0xc3   : > { %v1280_v43 = vrot.slane %v1278_v34, 5  ;;  %v5601_v44 = vrot.slane %v5599_v35, 4  ;;  %v5597_v56 = vsel %vm12174_vm4, %v5592_v37, %v5596_v20  ;;  %v5612_v51 = vshrl.u32 %v9808_v29, 16  ;;  %v9812_v20 = vld [vmem:[%s12061_s9 + $0xbc] sm:$0x1] }
  0xc4   : > { %10750 = vmatmul.mubr.msk.bf16.gmra.mrb[20].mxu1 %vm290_vm1, %v9244_v9  ;;  %11022 = vmatmul.mubr.msk.bf16.gmra.mrb[20].mxu0 %vm290_vm1, %v9828_v4  ;;  %v5604_v46 = vrot.slane %v5602_v40, 5  ;;  %v5610_v47 = vrot.slane %v5608_v59, 5  ;;  %v9829_v9 = vcombine.low %v5587_v39, %v5597_v56  ;;  %v1271_v53 = vsel %vm12174_vm4, %v1266_v27, %v1270_v32  ;;  %v941_v29 = vld [vmem:[%s12061_s9 + $0xb8] sm:$0xf]  ;;  %v9813_v27 = vld [vmem:[%s12061_s9 + $0xc0] sm:$0xf] }
  0xc5   : > { %10753 = vmatprep.mubr.msk.bf16.mxu1 %vm290_vm1, %v9245_v30  ;;  %v1276_v54 = vrot.slane %v1275_v42, 4  ;;  %v5618_v41 = vshll.u32 %v9809_v38, 16  ;;  %v5614_v57 = vrot.slane %v5612_v51, 4  ;;  %v1283_v61 = vshrl.u32 %v937_v45, 16  ;;  %v942_v38 = vld [vmem:[%s12061_s9 + $0xbc] sm:$0x1] }
  0xc6   : > { %v5605_v55 = vor.u32 %v5604_v46, %v5601_v44  ;;  %v1286_v62 = vshll.u32 %v937_v45, 16  ;;  %11025 = vmatprep.mubr.msk.bf16.mxu0 %vm290_vm1, %v9829_v9  ;;  %v1292_v10 = vshll.u32 %v938_v52, 16  ;;  %v1296_v18 = vshrl.u32 %v938_v52, 16  ;;  %v9814_v56 = vld [vmem:[%s12061_s9 + $0xc4] sm:$0xf] }
  0xc7   : > { %v1281_v0 = vsel %vm12174_vm4, %v1276_v54, %v1280_v43  ;;  %v5620_v1 = vrot.slane %v5618_v41, 5  ;;  %v5615_v6 = vor.u32 %v5614_v57, %v5610_v47  ;;  %v1285_v22 = vrot.slane %v1283_v61, 4  ;;  %v9815_v41 = vld [vmem:[%s12061_s9 + $0xc8] sm:$0x1] }
  0xc8   : > { %v9246_v4 = vcombine.low %v1271_v53, %v1281_v0  ;;  %v5606_v5 = vrot.slane %v5605_v55, 4  ;;  %v1288_v48 = vrot.slane %v1286_v62, 5  ;;  %v1294_v49 = vrot.slane %v1292_v10, 5  ;;  %v9265_v0 = vld [vmem:[%s12061_s9 + $0xcc] sm:$0xf] }
  0xc9   : > { %v1298_v8 = vrot.slane %v1296_v18, 4  ;;  %v1302_v11 = vshll.u32 %v939_v58, 16  ;;  %v5616_v13 = vrot.slane %v5615_v6, 4  ;;  %v5623_v16 = vshrl.u32 %v9810_v2, 16 }
  0xca   : > { %v5611_v12 = vsel %vm12174_vm4, %v5606_v5, %v5610_v47  ;;  %v5626_v63 = vshll.u32 %v9810_v2, 16  ;;  %v1289_v17 = vor.u32 %v1288_v48, %v1285_v22  ;;  %v5632_v21 = vshll.u32 %v9811_v7, 16 }
  0xcb   : > { %v1299_v19 = vor.u32 %v1298_v8, %v1294_v49  ;;  %v1304_v50 = vrot.slane %v1302_v11, 5  ;;  %v5621_v24 = vsel %vm12174_vm4, %v5616_v13, %v5620_v1  ;;  %v5625_v28 = vrot.slane %v5623_v16, 4 }
  0xcc   : > { %10754 = vmatmul.mubr.msk.bf16.gmra.mrb[24].mxu1 %vm290_vm1, %v9246_v4  ;;  %v5628_v25 = vrot.slane %v5626_v63, 5  ;;  %v5636_v26 = vshrl.u32 %v9811_v7, 16  ;;  %v9830_v30 = vcombine.low %v5611_v12, %v5621_v24  ;;  %v1290_v60 = vrot.slane %v1289_v17, 4  ;;  %v9266_v7 = vld [vmem:[%s12061_s9 + $0xd0] sm:$0xf] }
  0xcd   : > { %v1300_v31 = vrot.slane %v1299_v19, 4  ;;  %v5634_v32 = vrot.slane %v5632_v21, 5  ;;  %v5642_v34 = vshll.u32 %v9812_v20, 16  ;;  %v1307_v35 = vshrl.u32 %v940_v23, 16  ;;  %v9267_v63 = vld [vmem:[%s12061_s9 + $0xd4] sm:$0x1] }
  0xce   : > { %v5629_v15 = vor.u32 %v5628_v25, %v5625_v28  ;;  %v5638_v33 = vrot.slane %v5636_v26, 4  ;;  %11026 = vmatmul.mubr.msk.bf16.gmra.mrb[24].mxu0 %vm290_vm1, %v9830_v30  ;;  %v1295_v39 = vsel %vm12174_vm4, %v1290_v60, %v1294_v49  ;;  %v1310_v40 = vshll.u32 %v940_v23, 16  ;;  %v9849_v23 = vld [vmem:[%s12061_s9 + $0xd8] sm:$0xf] }
  0xcf   : > { %v1305_v37 = vsel %vm12174_vm4, %v1300_v31, %v1304_v50  ;;  %v1316_v59 = vshll.u32 %v941_v29, 16  ;;  %v5644_v45 = vrot.slane %v5642_v34, 5  ;;  %v1309_v46 = vrot.slane %v1307_v35, 4  ;;  %v9851_v35 = vld [vmem:[%s12061_s9 + $0xe0] sm:$0x1] }
  0xd0   : > { %v9247_v42 = vcombine.low %v1295_v39, %v1305_v37  ;;  %v5630_v43 = vrot.slane %v5629_v15, 4  ;;  %v5639_v44 = vor.u32 %v5638_v33, %v5634_v32  ;;  %v1312_v47 = vrot.slane %v1310_v40, 5 }
  0xd1   : > { %v1318_v51 = vrot.slane %v1316_v59, 5  ;;  %v1320_v52 = vshrl.u32 %v941_v29, 16  ;;  %v1326_v54 = vshll.u32 %v942_v38, 16  ;;  %v5647_v55 = vshrl.u32 %v9813_v27, 16  ;;  %v9850_v29 = vld [vmem:[%s12061_s9 + $0xdc] sm:$0xf] }
  0xd2   : > { %10757 = vmatprep.mubr.msk.bf16.mxu1 %vm290_vm1, %v9247_v42  ;;  %v5635_v9 = vsel %vm12174_vm4, %v5630_v43, %v5634_v32  ;;  %v5640_v53 = vrot.slane %v5639_v44, 4  ;;  %v1313_v57 = vor.u32 %v1312_v47, %v1309_v46  ;;  %v5650_v61 = vshll.u32 %v9813_v27, 16  ;;  %v9268_v27 = vld [vmem:[%s12061_s9 + $0xd8] sm:$0xf] }
  0xd3   : > { %v1322_v58 = vrot.slane %v1320_v52, 4  ;;  %v5656_v62 = vshll.u32 %v9814_v56, 16  ;;  %v1328_v10 = vrot.slane %v1326_v54, 5  ;;  %v5649_v18 = vrot.slane %v5647_v55, 4 }
  0xd4   : > { %v5645_v1 = vsel %vm12174_vm4, %v5640_v53, %v5644_v45  ;;  %v5660_v2 = vshrl.u32 %v9814_v56, 16  ;;  %v1314_v5 = vrot.slane %v1313_v57, 4  ;;  %v5652_v22 = vrot.slane %v5650_v61, 5  ;;  %v9269_v56 = vld [vmem:[%s12061_s9 + $0xdc] sm:$0xf] }
  0xd5   : > { %v9831_v4 = vcombine.low %v5635_v9, %v5645_v1  ;;  %v1323_v6 = vor.u32 %v1322_v58, %v1318_v51  ;;  %v5658_v48 = vrot.slane %v5656_v62, 5  ;;  %v5666_v8 = vshll.u32 %v9815_v41, 16  ;;  %v9270_v61 = vld [vmem:[%s12061_s9 + $0xe0] sm:$0x1] }
  0xd6   : > { %v5662_v49 = vrot.slane %v5660_v2, 4  ;;  %v1673_v11 = vshrl.u32 %v9265_v0, 16  ;;  %v1319_v12 = vsel %vm12174_vm4, %v1314_v5, %v1318_v51  ;;  %v5653_v16 = vor.u32 %v5652_v22, %v5649_v18  ;;  %v9852_v2 = vld [vmem:[%s12061_s9 + $0xe4] sm:$0xf] }
  0xd7   : > { %11029 = vmatprep.mubr.msk.bf16.mxu0 %vm290_vm1, %v9831_v4  ;;  %v1324_v13 = vrot.slane %v1323_v6, 4  ;;  %v1676_v17 = vshll.u32 %v9265_v0, 16  ;;  %v5668_v50 = vrot.slane %v5666_v8, 5  ;;  %v1682_v21 = vshll.u32 %v9266_v7, 16 }
  0xd8   : > { %v5663_v19 = vor.u32 %v5662_v49, %v5658_v48  ;;  %v1675_v20 = vrot.slane %v1673_v11, 4  ;;  %v5654_v28 = vrot.slane %v5653_v16, 4  ;;  %v1686_v26 = vshrl.u32 %v9266_v7, 16  ;;  %v9853_v7 = vld [vmem:[%s12061_s9 + $0xe8] sm:$0xf] }
  0xd9   : > { %v1329_v24 = vsel %vm12174_vm4, %v1324_v13, %v1328_v10  ;;  %v1678_v25 = vrot.slane %v1676_v17, 5  ;;  %v1684_v31 = vrot.slane %v1682_v21, 5  ;;  %v1692_v32 = vshll.u32 %v9267_v63, 16 }
  0xda   : > { %v9248_v30 = vcombine.low %v1319_v12, %v1329_v24  ;;  %v5664_v60 = vrot.slane %v5663_v19, 4  ;;  %v5659_v15 = vsel %vm12174_vm4, %v5654_v28, %v5658_v48  ;;  %v1688_v34 = vrot.slane %v1686_v26, 4  ;;  %v9854_v12 = vld [vmem:[%s12061_s9 + $0xec] sm:$0x1]  ;;  %v9271_v19 = vld [vmem:[%s12061_s9 + $0xe4] sm:$0xf] }
  0xdb   : > { %v1679_v33 = vor.u32 %v1678_v25, %v1675_v20  ;;  %v6013_v39 = vshrl.u32 %v9849_v23, 16  ;;  %v1694_v38 = vrot.slane %v1692_v32, 5  ;;  %v6016_v40 = vshll.u32 %v9849_v23, 16  ;;  %v9273_v32 = vld [vmem:[%s12061_s9 + $0xec] sm:$0x1] }
  0xdc   : > { %10758 = vmatmul.mubr.msk.bf16.gmra.mrb[28].mxu1 %vm290_vm1, %v9248_v30  ;;  %v5669_v37 = vsel %vm12174_vm4, %v5664_v60, %v5668_v50  ;;  %v6022_v59 = vshll.u32 %v9850_v29, 16  ;;  %v1689_v44 = vor.u32 %v1688_v34, %v1684_v31  ;;  %v6026_v51 = vshrl.u32 %v9850_v29, 16  ;;  %v9272_v50 = vld [vmem:[%s12061_s9 + $0xe8] sm:$0xf] }
  0xdd   : > { %v9832_v42 = vcombine.low %v5659_v15, %v5669_v37  ;;  %v1680_v43 = vrot.slane %v1679_v33, 4  ;;  %v6015_v45 = vrot.slane %v6013_v39, 4  ;;  %v6018_v46 = vrot.slane %v6016_v40, 5  ;;  %v9855_v15 = vld [vmem:[%s12061_s9 + $0xf0] sm:$0xf] }
  0xde   : > { %v6024_v47 = vrot.slane %v6022_v59, 5  ;;  %v6032_v52 = vshll.u32 %v9851_v35, 16  ;;  %v1690_v53 = vrot.slane %v1689_v44, 4  ;;  %v1697_v54 = vshrl.u32 %v9268_v27, 16 }
  0xdf   : > { %11030 = vmatmul.mubr.msk.bf16.gmra.mrb[28].mxu0 %vm290_vm1, %v9832_v42  ;;  %v1685_v9 = vsel %vm12174_vm4, %v1680_v43, %v1684_v31  ;;  %v1700_v41 = vshll.u32 %v9268_v27, 16  ;;  %v6019_v55 = vor.u32 %v6018_v46, %v6015_v45  ;;  %v6028_v57 = vrot.slane %v6026_v51, 4  ;;  %v9856_v27 = vld [vmem:[%s12061_s9 + $0xf4] sm:$0xf] }
  0xe0   : > { %v6034_v58 = vrot.slane %v6032_v52, 5  ;;  %v1706_v62 = vshll.u32 %v9269_v56, 16  ;;  %v1695_v0 = vsel %vm12174_vm4, %v1690_v53, %v1694_v38  ;;  %v1699_v1 = vrot.slane %v1697_v54, 4  ;;  %v9857_v52 = vld [vmem:[%s12061_s9 + $0xf8] sm:$0x1] }
  0xe1   : > { %v1702_v10 = vrot.slane %v1700_v41, 5  ;;  %v1710_v18 = vshrl.u32 %v9269_v56, 16  ;;  %v9314_v4 = vcombine.low %v1685_v9, %v1695_v0  ;;  %v6020_v5 = vrot.slane %v6019_v55, 4  ;;  %v9443_v56 = vld [vmem:[%s13779_s1 + $0x14] sm:$0xf] }
  0xe2   : > { %v6029_v6 = vor.u32 %v6028_v57, %v6024_v47  ;;  %v1708_v22 = vrot.slane %v1706_v62, 5  ;;  %v1716_v8 = vshll.u32 %v9270_v61, 16  ;;  %v2514_v11 = vsel %vm339_vm0, %v12403_v36, 0  ;;  %v9274_v9 = vld [vmem:[%s12061_s9 + $0xf0] sm:$0xf] }
  0xe3   : > { %v1703_v48 = vor.u32 %v1702_v10, %v1699_v1  ;;  %v1712_v49 = vrot.slane %v1710_v18, 4  ;;  %10763 = vmatprep.mubr.msk.bf16.mxu1 %vm290_vm1, %v9314_v4  ;;  %v6025_v13 = vsel %vm12174_vm4, %v6020_v5, %v6024_v47  ;;  %v6037_v63 = vshrl.u32 %v9852_v2, 16  ;;  %v9275_v0 = vld [vmem:[%s12061_s9 + $0xf4] sm:$0xf] }
  0xe4   : > { %v6030_v16 = vrot.slane %v6029_v6, 4  ;;  %v6040_v17 = vshll.u32 %v9852_v2, 16  ;;  %v1718_v23 = vrot.slane %v1716_v8, 5  ;;  %v6046_v24 = vshll.u32 %v9853_v7, 16 }
  0xe5   : > { %v1704_v20 = vrot.slane %v1703_v48, 4  ;;  %v1713_v21 = vor.u32 %v1712_v49, %v1708_v22  ;;  %v6039_v28 = vrot.slane %v6037_v63, 4  ;;  %v6050_v26 = vshrl.u32 %v9853_v7, 16  ;;  %v9276_v7 = vld [vmem:[%s12061_s9 + $0xf8] sm:$0x1] }
  0xe6   : > { %v6035_v36 = vsel %vm12174_vm4, %v6030_v16, %v6034_v58  ;;  %v6042_v25 = vrot.slane %v6040_v17, 5  ;;  %v6048_v31 = vrot.slane %v6046_v24, 5  ;;  %v6056_v35 = vshll.u32 %v9854_v12, 16  ;;  %v9858_v12 = vld [vmem:[%s12061_s9 + $0xfc] sm:$0xf] }
  0xe7   : > { %v9898_v29 = vcombine.low %v6025_v13, %v6035_v36  ;;  %v1709_v30 = vsel %vm12174_vm4, %v1704_v20, %v1708_v22  ;;  %v1714_v60 = vrot.slane %v1713_v21, 4  ;;  %v6052_v34 = vrot.slane %v6050_v26, 4  ;;  %v9859_v24 = vld [vmem:[%s12061_s9 + $0x100] sm:$0xf] }
  0xe8   : > { %v6043_v33 = vor.u32 %v6042_v25, %v6039_v28  ;;  %v6854_v39 = vsel %vm339_vm0, %v12433_v3, 0  ;;  %v1721_v38 = vshrl.u32 %v9271_v19, 16  ;;  %v1724_v40 = vshll.u32 %v9271_v19, 16  ;;  %v10027_v19 = vld [vmem:[%s13779_s1 + $0x34] sm:$0xf] }
  0xe9   : > { %11035 = vmatprep.mubr.msk.bf16.mxu0 %vm290_vm1, %v9898_v29  ;;  %v1719_v37 = vsel %vm12174_vm4, %v1714_v60, %v1718_v23  ;;  %v1730_v59 = vshll.u32 %v9272_v50, 16  ;;  %v6053_v44 = vor.u32 %v6052_v34, %v6048_v31  ;;  %v6058_v45 = vrot.slane %v6056_v35, 5  ;;  %v9860_v29 = vld [vmem:[%s12061_s9 + $0x104] sm:$0x1] }
  0xea   : > { %v9315_v42 = vcombine.low %v1709_v30, %v1719_v37  ;;  %v6044_v43 = vrot.slane %v6043_v33, 4  ;;  %v1723_v3 = vrot.slane %v1721_v38, 4  ;;  %v1726_v46 = vrot.slane %v1724_v40, 5  ;;  %v9278_v37 = vld [vmem:[%s12061_s9 + $0x100] sm:$0xf] }
  0xeb   : > { %v1732_v47 = vrot.slane %v1730_v59, 5  ;;  %v1734_v51 = vshrl.u32 %v9272_v50, 16  ;;  %v6054_v54 = vrot.slane %v6053_v44, 4  ;;  %v1740_v41 = vshll.u32 %v9273_v32, 16 }
  0xec   : > { %10764 = vmatmul.mubr.msk.bf16.vlgmr.msra.gmra.mrb[0].mxu1 %vm290_vm1, %v9315_v42  ;;  %v6049_v53 = vsel %vm12174_vm4, %v6044_v43, %v6048_v31  ;;  %v6061_v55 = vshrl.u32 %v9855_v15, 16  ;;  %v1727_v57 = vor.u32 %v1726_v46, %v1723_v3  ;;  %v6064_v61 = vshll.u32 %v9855_v15, 16  ;;  %v9277_v15 = vld [vmem:[%s12061_s9 + $0xfc] sm:$0xf] }
  0xed   : > { %10796 = vmatpush3.bf16.msra.mxu1 %v2514_v11  ;;  %v1736_v58 = vrot.slane %v1734_v51, 4  ;;  %v6070_v62 = vshll.u32 %v9856_v27, 16  ;;  %v6059_v1 = vsel %vm12174_vm4, %v6054_v54, %v6058_v45  ;;  %v1742_v10 = vrot.slane %v1740_v41, 5  ;;  %v9279_v51 = vld [vmem:[%s12061_s9 + $0x104] sm:$0x1] }
  0xee   : > { %v6063_v18 = vrot.slane %v6061_v55, 4  ;;  %v6074_v2 = vshrl.u32 %v9856_v27, 16  ;;  %11720 = vmatprep.subr.msk.bf16.mxu1 %vm339_vm0, %v9443_v56  ;;  %v9899_v4 = vcombine.low %v6049_v53, %v6059_v1  ;;  %v1728_v5 = vrot.slane %v1727_v57, 4  ;;  %v9862_v55 = vld [vmem:[%s12061_s9 + $0x10c] sm:$0xf] }
  0xef   : > { %v1737_v6 = vor.u32 %v1736_v58, %v1732_v47  ;;  %v6066_v22 = vrot.slane %v6064_v61, 5  ;;  %v6072_v48 = vrot.slane %v6070_v62, 5  ;;  %v6080_v8 = vshll.u32 %v9857_v52, 16  ;;  %v9861_v52 = vld [vmem:[%s12061_s9 + $0x108] sm:$0xf] }
  0xf0   : > { %v6076_v49 = vrot.slane %v6074_v2, 4  ;;  %v1745_v11 = vshrl.u32 %v9274_v9, 16  ;;  %11036 = vmatmul.mubr.msk.bf16.vlgmr.msra.gmra.mrb[0].mxu0 %vm290_vm1, %v9899_v4  ;;  %v1733_v13 = vsel %vm12174_vm4, %v1728_v5, %v1732_v47  ;;  %v1748_v17 = vshll.u32 %v9274_v9, 16 }
  0xf1   : > { %v1738_v16 = vrot.slane %v1737_v6, 4  ;;  %v6067_v63 = vor.u32 %v6066_v22, %v6063_v18  ;;  %11068 = vmatpush3.bf16.msra.mxu0 %v6854_v39  ;;  %v6082_v20 = vrot.slane %v6080_v8, 5  ;;  %v1754_v23 = vshll.u32 %v9275_v0, 16  ;;  %v9863_v22 = vld [vmem:[%s12061_s9 + $0x110] sm:$0x1] }
  0xf2   : > { %v6077_v50 = vor.u32 %v6076_v49, %v6072_v48  ;;  %v1747_v21 = vrot.slane %v1745_v11, 4  ;;  %v1750_v25 = vrot.slane %v1748_v17, 5  ;;  %v1758_v26 = vshrl.u32 %v9275_v0, 16  ;;  %11728 = vmatprep.subr.msk.bf16.mxu0 %vm339_vm0, %v10027_v19  ;;  %v9280_v11 = vld [vmem:[%s12061_s9 + $0x108] sm:$0xf] }
  0xf3   : > { %v1743_v36 = vsel %vm12174_vm4, %v1738_v16, %v1742_v10  ;;  %v6068_v28 = vrot.slane %v6067_v63, 4  ;;  %v1756_v31 = vrot.slane %v1754_v23, 5  ;;  %v1764_v32 = vshll.u32 %v9276_v7, 16  ;;  %v9281_v17 = vld [vmem:[%s12061_s9 + $0x10c] sm:$0xf] }
  0xf4   : > { %v9316_v30 = vcombine.low %v1733_v13, %v1743_v36  ;;  %v6078_v60 = vrot.slane %v6077_v50, 4  ;;  %v1751_v34 = vor.u32 %v1750_v25, %v1747_v21  ;;  %v1760_v35 = vrot.slane %v1758_v26, 4  ;;  %v9282_v25 = vld [vmem:[%s12061_s9 + $0x110] sm:$0x1] }
  0xf5   : > { %v6073_v33 = vsel %vm12174_vm4, %v6068_v28, %v6072_v48  ;;  %v6085_v39 = vshrl.u32 %v9858_v12, 16  ;;  %v1766_v40 = vrot.slane %v1764_v32, 5  ;;  %v6088_v59 = vshll.u32 %v9858_v12, 16 }
  0xf6   : > { %10767 = vmatprep.mubr.msk.bf16.mxu1 %vm290_vm1, %v9316_v30  ;;  %v6083_v38 = vsel %vm12174_vm4, %v6078_v60, %v6082_v20  ;;  %v6094_v27 = vshll.u32 %v9859_v24, 16  ;;  %v1752_v43 = vrot.slane %v1751_v34, 4  ;;  %v1761_v44 = vor.u32 %v1760_v35, %v1756_v31 }
  0xf7   : > { %v9900_v42 = vcombine.low %v6073_v33, %v6083_v38  ;;  %v6087_v45 = vrot.slane %v6085_v39, 4  ;;  %v6090_v56 = vrot.slane %v6088_v59, 5  ;;  %v6098_v46 = vshrl.u32 %v9859_v24, 16 }
  0xf8   : > { %v6096_v3 = vrot.slane %v6094_v27, 5  ;;  %v6104_v47 = vshll.u32 %v9860_v29, 16  ;;  %v1757_v9 = vsel %vm12174_vm4, %v1752_v43, %v1756_v31  ;;  %v1762_v53 = vrot.slane %v1761_v44, 4  ;;  %v9864_v31 = vld [vmem:[%s12061_s9 + $0x114] sm:$0xf] }
  0xf9   : > { %11039 = vmatprep.mubr.msk.bf16.mxu0 %vm290_vm1, %v9900_v42  ;;  %v1769_v54 = vshrl.u32 %v9277_v15, 16  ;;  %v1772_v41 = vshll.u32 %v9277_v15, 16  ;;  %v6091_v57 = vor.u32 %v6090_v56, %v6087_v45  ;;  %v6100_v58 = vrot.slane %v6098_v46, 4  ;;  %v9865_v43 = vld [vmem:[%s12061_s9 + $0x118] sm:$0xf] }
  0xfa   : > { %v6106_v61 = vrot.slane %v6104_v47, 5  ;;  %v1778_v62 = vshll.u32 %v9278_v37, 16  ;;  %v1767_v0 = vsel %vm12174_vm4, %v1762_v53, %v1766_v40  ;;  %v1782_v18 = vshrl.u32 %v9278_v37, 16  ;;  %v9866_v46 = vld [vmem:[%s12061_s9 + $0x11c] sm:$0x1] }
  0xfb   : > { %v1771_v1 = vrot.slane %v1769_v54, 4  ;;  %v1774_v10 = vrot.slane %v1772_v41, 5  ;;  %v9317_v2 = vcombine.low %v1757_v9, %v1767_v0  ;;  %v6092_v4 = vrot.slane %v6091_v57, 4  ;;  %v9283_v47 = vld [vmem:[%s12061_s9 + $0x114] sm:$0xf] }
  0xfc   : > { %v6101_v5 = vor.u32 %v6100_v58, %v6096_v3  ;;  %v1780_v6 = vrot.slane %v1778_v62, 5  ;;  %v1784_v48 = vrot.slane %v1782_v18, 4  ;;  %v1788_v49 = vshll.u32 %v9279_v51, 16  ;;  %v9284_v54 = vld [vmem:[%s12061_s9 + $0x118] sm:$0xf] }
  0xfd   : > { %v1775_v7 = vor.u32 %v1774_v10, %v1771_v1  ;;  %v6109_v8 = vshrl.u32 %v9861_v52, 16  ;;  %10768 = vmatmul.mubr.msk.bf16.gmra.mrb[4].mxu1 %vm290_vm1, %v9317_v2  ;;  %v6097_v12 = vsel %vm12174_vm4, %v6092_v4, %v6096_v3  ;;  %v6112_v16 = vshll.u32 %v9861_v52, 16 }
  0xfe   : > { %v6102_v13 = vrot.slane %v6101_v5, 4  ;;  %v6118_v63 = vshll.u32 %v9862_v55, 16  ;;  %v1785_v50 = vor.u32 %v1784_v48, %v1780_v6  ;;  %v1790_v20 = vrot.slane %v1788_v49, 5  ;;  %v9285_v5 = vld [vmem:[%s12061_s9 + $0x11c] sm:$0x1] }
  0xff   : > { %v1776_v19 = vrot.slane %v1775_v7, 4  ;;  %v6111_v21 = vrot.slane %v6109_v8, 4  ;;  %v6114_v24 = vrot.slane %v6112_v16, 5  ;;  %v6122_v28 = vshrl.u32 %v9862_v55, 16 }
 0x100   : > { %v6107_v23 = vsel %vm12174_vm4, %v6102_v13, %v6106_v61  ;;  %v6120_v36 = vrot.slane %v6118_v63, 5  ;;  %v1786_v30 = vrot.slane %v1785_v50, 4  ;;  %v6128_v60 = vshll.u32 %v9863_v22, 16  ;;  %v9868_v50 = vld [vmem:[%s12061_s9 + $0x124] sm:$0xf] }
 0x101   : > { %v9901_v26 = vcombine.low %v6097_v12, %v6107_v23  ;;  %v1781_v29 = vsel %vm12174_vm4, %v1776_v19, %v1780_v6  ;;  %v6115_v32 = vor.u32 %v6114_v24, %v6111_v21  ;;  %v6124_v15 = vrot.slane %v6122_v28, 4  ;;  %v9867_v6 = vld [vmem:[%s12061_s9 + $0x120] sm:$0xf] }
 0x102   : > { %v1793_v33 = vshrl.u32 %v9280_v11, 16  ;;  %v1796_v34 = vshll.u32 %v9280_v11, 16  ;;  %v1791_v35 = vsel %vm12174_vm4, %v1786_v30, %v1790_v20  ;;  %v6130_v39 = vrot.slane %v6128_v60, 5  ;;  %v9286_v28 = vld [vmem:[%s12061_s9 + $0x120] sm:$0xf] }
 0x103   : > { %11040 = vmatmul.mubr.msk.bf16.gmra.mrb[4].mxu0 %vm290_vm1, %v9901_v26  ;;  %v1802_v37 = vshll.u32 %v9281_v17, 16  ;;  %v1806_v38 = vshrl.u32 %v9281_v17, 16  ;;  %v9318_v40 = vcombine.low %v1781_v29, %v1791_v35  ;;  %v6116_v59 = vrot.slane %v6115_v32, 4 }
 0x104   : > { %v6125_v27 = vor.u32 %v6124_v15, %v6120_v36  ;;  %v1795_v42 = vrot.slane %v1793_v33, 4  ;;  %v1798_v44 = vrot.slane %v1796_v34, 5  ;;  %v1812_v3 = vshll.u32 %v9282_v25, 16  ;;  %v9287_v33 = vld [vmem:[%s12061_s9 + $0x124] sm:$0xf] }
 0x105   : > { %v1804_v45 = vrot.slane %v1802_v37, 5  ;;  %v1808_v56 = vrot.slane %v1806_v38, 4  ;;  %10771 = vmatprep.mubr.msk.bf16.mxu1 %vm290_vm1, %v9318_v40  ;;  %v6121_v51 = vsel %vm12174_vm4, %v6116_v59, %v6120_v36  ;;  %v6133_v9 = vshrl.u32 %v9864_v31, 16  ;;  %v9869_v36 = vld [vmem:[%s12061_s9 + $0x128] sm:$0x1] }
 0x106   : > { %v6126_v52 = vrot.slane %v6125_v27, 4  ;;  %v6136_v53 = vshll.u32 %v9864_v31, 16  ;;  %v1799_v41 = vor.u32 %v1798_v44, %v1795_v42  ;;  %v1814_v57 = vrot.slane %v1812_v3, 5  ;;  %v9288_v42 = vld [vmem:[%s12061_s9 + $0x128] sm:$0x1] }
 0x107   : > { %v1809_v55 = vor.u32 %v1808_v56, %v1804_v45  ;;  %v6142_v58 = vshll.u32 %v9865_v43, 16  ;;  %v6135_v62 = vrot.slane %v6133_v9, 4  ;;  %v6146_v1 = vshrl.u32 %v9865_v43, 16  ;;  %v9870_v3 = vld [vmem:[%s12061_s9 + $0x12c] sm:$0xf] }
 0x108   : > { %v6131_v61 = vsel %vm12174_vm4, %v6126_v52, %v6130_v39  ;;  %v6138_v0 = vrot.slane %v6136_v53, 5  ;;  %v1800_v18 = vrot.slane %v1799_v41, 4  ;;  %v6152_v48 = vshll.u32 %v9866_v46, 16  ;;  %v9871_v9 = vld [vmem:[%s12061_s9 + $0x130] sm:$0xf] }
 0x109   : > { %v9902_v10 = vcombine.low %v6121_v51, %v6131_v61  ;;  %v1810_v2 = vrot.slane %v1809_v55, 4  ;;  %v6144_v4 = vrot.slane %v6142_v58, 5  ;;  %v6148_v7 = vrot.slane %v6146_v1, 4 }
 0x10a   : > { %v6139_v22 = vor.u32 %v6138_v0, %v6135_v62  ;;  %v1817_v49 = vshrl.u32 %v9283_v47, 16  ;;  %v1805_v8 = vsel %vm12174_vm4, %v1800_v18, %v1804_v45  ;;  %v1820_v12 = vshll.u32 %v9283_v47, 16  ;;  %v9872_v0 = vld [vmem:[%s12061_s9 + $0x134] sm:$0x1] }
 0x10b   : > { %11043 = vmatprep.mubr.msk.bf16.mxu0 %vm290_vm1, %v9902_v10  ;;  %v1815_v11 = vsel %vm12174_vm4, %v1810_v2, %v1814_v57  ;;  %v1826_v13 = vshll.u32 %v9284_v54, 16  ;;  %v6149_v17 = vor.u32 %v6148_v7, %v6144_v4  ;;  %v6154_v19 = vrot.slane %v6152_v48, 5 }
 0x10c   : > { %v9319_v16 = vcombine.low %v1805_v8, %v1815_v11  ;;  %v6140_v63 = vrot.slane %v6139_v22, 4  ;;  %v1819_v20 = vrot.slane %v1817_v49, 4  ;;  %v1822_v21 = vrot.slane %v1820_v12, 5 }
 0x10d   : > { %v1828_v23 = vrot.slane %v1826_v13, 5  ;;  %v1830_v24 = vshrl.u32 %v9284_v54, 16  ;;  %v6150_v26 = vrot.slane %v6149_v17, 4  ;;  %v1836_v29 = vshll.u32 %v9285_v5, 16  ;;  %v9290_v17 = vld [vmem:[%s12061_s9 + $0x130] sm:$0xf] }
 0x10e   : > { %10772 = vmatmul.mubr.msk.bf16.gmra.mrb[8].mxu1 %vm290_vm1, %v9319_v16  ;;  %v6145_v25 = vsel %vm12174_vm4, %v6140_v63, %v6144_v4  ;;  %v6157_v30 = vshrl.u32 %v9867_v6, 16  ;;  %v1823_v60 = vor.u32 %v1822_v21, %v1819_v20  ;;  %v6160_v32 = vshll.u32 %v9867_v6, 16  ;;  %v9289_v4 = vld [vmem:[%s12061_s9 + $0x12c] sm:$0xf] }
 0x10f   : > { %v1832_v31 = vrot.slane %v1830_v24, 4  ;;  %v6166_v15 = vshll.u32 %v9868_v50, 16  ;;  %v6155_v34 = vsel %vm12174_vm4, %v6150_v26, %v6154_v19  ;;  %v1838_v35 = vrot.slane %v1836_v29, 5  ;;  %v9873_v24 = vld [vmem:[%s12061_s9 + $0x138] sm:$0xf] }
 0x110   : > { %v6159_v39 = vrot.slane %v6157_v30, 4  ;;  %v6170_v37 = vshrl.u32 %v9868_v50, 16  ;;  %v9903_v38 = vcombine.low %v6145_v25, %v6155_v34  ;;  %v1824_v40 = vrot.slane %v1823_v60, 4  ;;  %v9874_v29 = vld [vmem:[%s12061_s9 + $0x13c] sm:$0xf] }
 0x111   : > { %v1833_v59 = vor.u32 %v1832_v31, %v1828_v23  ;;  %v6162_v27 = vrot.slane %v6160_v32, 5  ;;  %v6168_v43 = vrot.slane %v6166_v15, 5  ;;  %v6176_v45 = vshll.u32 %v9869_v36, 16 }
 0x112   : > { %v6172_v44 = vrot.slane %v6170_v37, 4  ;;  %v1841_v56 = vshrl.u32 %v9286_v28, 16  ;;  %11044 = vmatmul.mubr.msk.bf16.gmra.mrb[8].mxu0 %vm290_vm1, %v9903_v38  ;;  %v1829_v46 = vsel %vm12174_vm4, %v1824_v40, %v1828_v23  ;;  %v1844_v52 = vshll.u32 %v9286_v28, 16  ;;  %v9291_v23 = vld [vmem:[%s12061_s9 + $0x134] sm:$0x1] }
 0x113   : > { %v1834_v47 = vrot.slane %v1833_v59, 4  ;;  %v6163_v51 = vor.u32 %v6162_v27, %v6159_v39  ;;  %v6178_v54 = vrot.slane %v6176_v45, 5  ;;  %v1850_v55 = vshll.u32 %v9287_v33, 16  ;;  %v9875_v59 = vld [vmem:[%s12061_s9 + $0x140] sm:$0x1] }
 0x114   : > { %v6173_v53 = vor.u32 %v6172_v44, %v6168_v43  ;;  %v1843_v41 = vrot.slane %v1841_v56, 4  ;;  %v1846_v61 = vrot.slane %v1844_v52, 5  ;;  %v1854_v62 = vshrl.u32 %v9287_v33, 16  ;;  %v9292_v45 = vld [vmem:[%s12061_s9 + $0x138] sm:$0xf] }
 0x115   : > { %v1839_v57 = vsel %vm12174_vm4, %v1834_v47, %v1838_v35  ;;  %v6164_v58 = vrot.slane %v6163_v51, 4  ;;  %v1852_v18 = vrot.slane %v1850_v55, 5  ;;  %v1860_v2 = vshll.u32 %v9288_v42, 16 }
 0x116   : > { %v9320_v1 = vcombine.low %v1829_v46, %v1839_v57  ;;  %v6174_v10 = vrot.slane %v6173_v53, 4  ;;  %v1847_v6 = vor.u32 %v1846_v61, %v1843_v41  ;;  %v1856_v22 = vrot.slane %v1854_v62, 4  ;;  %v9294_v61 = vld [vmem:[%s12061_s9 + $0x140] sm:$0x1] }
 0x117   : > { %v6169_v5 = vsel %vm12174_vm4, %v6164_v58, %v6168_v43  ;;  %v6181_v7 = vshrl.u32 %v9870_v3, 16  ;;  %v1862_v49 = vrot.slane %v1860_v2, 5  ;;  %v6184_v8 = vshll.u32 %v9870_v3, 16 }
 0x118   : > { %10775 = vmatprep.mubr.msk.bf16.mxu1 %vm290_vm1, %v9320_v1  ;;  %v6179_v48 = vsel %vm12174_vm4, %v6174_v10, %v6178_v54  ;;  %v6190_v11 = vshll.u32 %v9871_v9, 16  ;;  %v1848_v13 = vrot.slane %v1847_v6, 4  ;;  %v1857_v16 = vor.u32 %v1856_v22, %v1852_v18  ;;  %v9293_v54 = vld [vmem:[%s12061_s9 + $0x13c] sm:$0xf]  ;;  %v9877_v22 = vld [vmem:[%s12061_s9 + $0x148] sm:$0xf] }
 0x119   : > { %v9904_v12 = vcombine.low %v6169_v5, %v6179_v48  ;;  %v6183_v63 = vrot.slane %v6181_v7, 4  ;;  %v6186_v19 = vrot.slane %v6184_v8, 5  ;;  %v6194_v20 = vshrl.u32 %v9871_v9, 16 }
 0x11a   : > { %v6192_v50 = vrot.slane %v6190_v11, 5  ;;  %v6200_v21 = vshll.u32 %v9872_v0, 16  ;;  %v1853_v36 = vsel %vm12174_vm4, %v1848_v13, %v1852_v18  ;;  %v1858_v28 = vrot.slane %v1857_v16, 4  ;;  %v9876_v18 = vld [vmem:[%s12061_s9 + $0x144] sm:$0xf] }
 0x11b   : > { %11047 = vmatprep.mubr.msk.bf16.mxu0 %vm290_vm1, %v9904_v12  ;;  %v1865_v25 = vshrl.u32 %v9289_v4, 16  ;;  %v1868_v26 = vshll.u32 %v9289_v4, 16  ;;  %v6187_v30 = vor.u32 %v6186_v19, %v6183_v63  ;;  %v6196_v60 = vrot.slane %v6194_v20, 4  ;;  %v9878_v20 = vld [vmem:[%s12061_s9 + $0x14c] sm:$0x1] }
 0x11c   : > { %v6202_v31 = vrot.slane %v6200_v21, 5  ;;  %v1874_v32 = vshll.u32 %v9290_v17, 16  ;;  %v1863_v15 = vsel %vm12174_vm4, %v1858_v28, %v1862_v49  ;;  %v1878_v35 = vshrl.u32 %v9290_v17, 16 }
 0x11d   : > { %v1867_v33 = vrot.slane %v1865_v25, 4  ;;  %v1870_v34 = vrot.slane %v1868_v26, 5  ;;  %v9321_v39 = vcombine.low %v1853_v36, %v1863_v15  ;;  %v6188_v37 = vrot.slane %v6187_v30, 4  ;;  %v9295_v30 = vld [vmem:[%s12061_s9 + $0x144] sm:$0xf] }
 0x11e   : > { %v6197_v38 = vor.u32 %v6196_v60, %v6192_v50  ;;  %v1876_v40 = vrot.slane %v1874_v32, 5  ;;  %v1880_v42 = vrot.slane %v1878_v35, 4  ;;  %v1884_v43 = vshll.u32 %v9291_v23, 16  ;;  %v9296_v60 = vld [vmem:[%s12061_s9 + $0x148] sm:$0xf] }
 0x11f   : > { %v1871_v27 = vor.u32 %v1870_v34, %v1867_v33  ;;  %v6205_v44 = vshrl.u32 %v9873_v24, 16  ;;  %10776 = vmatmul.mubr.msk.bf16.gmra.mrb[12].mxu1 %vm290_vm1, %v9321_v39  ;;  %v6193_v56 = vsel %vm12174_vm4, %v6188_v37, %v6192_v50  ;;  %v6208_v46 = vshll.u32 %v9873_v24, 16 }
 0x120   : > { %v6198_v3 = vrot.slane %v6197_v38, 4  ;;  %v6214_v47 = vshll.u32 %v9874_v29, 16  ;;  %v1881_v52 = vor.u32 %v1880_v42, %v1876_v40  ;;  %v1886_v9 = vrot.slane %v1884_v43, 5  ;;  %v9297_v38 = vld [vmem:[%s12061_s9 + $0x14c] sm:$0x1] }
 0x121   : > { %v1872_v51 = vrot.slane %v1871_v27, 4  ;;  %v6207_v53 = vrot.slane %v6205_v44, 4  ;;  %v6210_v55 = vrot.slane %v6208_v46, 5  ;;  %v6218_v58 = vshrl.u32 %v9874_v29, 16  ;;  %v9880_v46 = vld [vmem:[%s12061_s9 + $0x154] sm:$0xf] }
 0x122   : > { %v6203_v41 = vsel %vm12174_vm4, %v6198_v3, %v6202_v31  ;;  %v6216_v57 = vrot.slane %v6214_v47, 5  ;;  %v1882_v1 = vrot.slane %v1881_v52, 4  ;;  %v6224_v10 = vshll.u32 %v9875_v59, 16 }
 0x123   : > { %v9905_v62 = vcombine.low %v6193_v56, %v6203_v41  ;;  %v1877_v0 = vsel %vm12174_vm4, %v1872_v51, %v1876_v40  ;;  %v6211_v2 = vor.u32 %v6210_v55, %v6207_v53  ;;  %v6220_v4 = vrot.slane %v6218_v58, 4  ;;  %v9879_v40 = vld [vmem:[%s12061_s9 + $0x150] sm:$0xf] }
 0x124   : > { %v1889_v5 = vshrl.u32 %v9292_v45, 16  ;;  %v1892_v6 = vshll.u32 %v9292_v45, 16  ;;  %v1887_v7 = vsel %vm12174_vm4, %v1882_v1, %v1886_v9  ;;  %v6226_v48 = vrot.slane %v6224_v10, 5 }
 0x125   : > { %11048 = vmatmul.mubr.msk.bf16.gmra.mrb[12].mxu0 %vm290_vm1, %v9905_v62  ;;  %v1898_v49 = vshll.u32 %v9293_v54, 16  ;;  %v1902_v8 = vshrl.u32 %v9293_v54, 16  ;;  %v9322_v11 = vcombine.low %v1877_v0, %v1887_v7  ;;  %v6212_v12 = vrot.slane %v6211_v2, 4 }
 0x126   : > { %v6221_v13 = vor.u32 %v6220_v4, %v6216_v57  ;;  %v1891_v16 = vrot.slane %v1889_v5, 4  ;;  %v1894_v63 = vrot.slane %v1892_v6, 5  ;;  %v1908_v50 = vshll.u32 %v9294_v61, 16  ;;  %v9298_v4 = vld [vmem:[%s12061_s9 + $0x150] sm:$0xf] }
 0x127   : > { %v1900_v17 = vrot.slane %v1898_v49, 5  ;;  %v1904_v19 = vrot.slane %v1902_v8, 4  ;;  %10779 = vmatprep.mubr.msk.bf16.mxu1 %vm290_vm1, %v9322_v11  ;;  %v6217_v21 = vsel %vm12174_vm4, %v6212_v12, %v6216_v57  ;;  %v6229_v24 = vshrl.u32 %v9876_v18, 16  ;;  %v9881_v57 = vld [vmem:[%s12061_s9 + $0x158] sm:$0x1] }
 0x128   : > { %v6222_v23 = vrot.slane %v6221_v13, 4  ;;  %v6232_v36 = vshll.u32 %v9876_v18, 16  ;;  %v1895_v28 = vor.u32 %v1894_v63, %v1891_v16  ;;  %v1910_v26 = vrot.slane %v1908_v50, 5  ;;  %v9300_v13 = vld [vmem:[%s12061_s9 + $0x158] sm:$0x1] }
 0x129   : > { %v1905_v25 = vor.u32 %v1904_v19, %v1900_v17  ;;  %v6238_v29 = vshll.u32 %v9877_v22, 16  ;;  %v6231_v32 = vrot.slane %v6229_v24, 4  ;;  %v6242_v33 = vshrl.u32 %v9877_v22, 16  ;;  %v9882_v50 = vld [vmem:[%s12061_s9 + $0x15c] sm:$0xf] }
 0x12a   : > { %v6227_v31 = vsel %vm12174_vm4, %v6222_v23, %v6226_v48  ;;  %v6234_v15 = vrot.slane %v6232_v36, 5  ;;  %v1896_v35 = vrot.slane %v1895_v28, 4  ;;  %v6248_v42 = vshll.u32 %v9878_v20, 16  ;;  %v9299_v48 = vld [vmem:[%s12061_s9 + $0x154] sm:$0xf] }
 0x12b   : > { %v9906_v34 = vcombine.low %v6217_v21, %v6227_v31  ;;  %v1906_v39 = vrot.slane %v1905_v25, 4  ;;  %v6240_v37 = vrot.slane %v6238_v29, 5  ;;  %v6244_v27 = vrot.slane %v6242_v33, 4  ;;  %v9883_v36 = vld [vmem:[%s12061_s9 + $0x160] sm:$0xf] }
 0x12c   : > { %v6235_v59 = vor.u32 %v6234_v15, %v6231_v32  ;;  %v1913_v43 = vshrl.u32 %v9295_v30, 16  ;;  %v1901_v44 = vsel %vm12174_vm4, %v1896_v35, %v1900_v17  ;;  %v1916_v56 = vshll.u32 %v9295_v30, 16  ;;  %v9884_v15 = vld [vmem:[%s12061_s9 + $0x164] sm:$0x1] }
 0x12d   : > { %11051 = vmatprep.mubr.msk.bf16.mxu0 %vm290_vm1, %v9906_v34  ;;  %v1911_v45 = vsel %vm12174_vm4, %v1906_v39, %v1910_v26  ;;  %v1922_v3 = vshll.u32 %v9296_v60, 16  ;;  %v6245_v52 = vor.u32 %v6244_v27, %v6240_v37  ;;  %v6250_v9 = vrot.slane %v6248_v42, 5  ;;  %v9302_v42 = vld [vmem:[%s12061_s9 + $0x160] sm:$0xf] }
 0x12e   : > { %v9323_v47 = vcombine.low %v1901_v44, %v1911_v45  ;;  %v6236_v51 = vrot.slane %v6235_v59, 4  ;;  %v1915_v53 = vrot.slane %v1913_v43, 4  ;;  %v1918_v54 = vrot.slane %v1916_v56, 5 }
 0x12f   : > { %v1924_v41 = vrot.slane %v1922_v3, 5  ;;  %v1926_v55 = vshrl.u32 %v9296_v60, 16  ;;  %v6246_v61 = vrot.slane %v6245_v52, 4  ;;  %v1932_v62 = vshll.u32 %v9297_v38, 16 }
 0x130   : > { %10780 = vmatmul.mubr.msk.bf16.gmra.mrb[16].mxu1 %vm290_vm1, %v9323_v47  ;;  %v6241_v58 = vsel %vm12174_vm4, %v6236_v51, %v6240_v37  ;;  %v6253_v0 = vshrl.u32 %v9879_v40, 16  ;;  %v1919_v1 = vor.u32 %v1918_v54, %v1915_v53  ;;  %v6256_v18 = vshll.u32 %v9879_v40, 16  ;;  %v9301_v37 = vld [vmem:[%s12061_s9 + $0x15c] sm:$0xf] }
 0x131   : > { %v1928_v10 = vrot.slane %v1926_v55, 4  ;;  %v6262_v2 = vshll.u32 %v9880_v46, 16  ;;  %v6251_v5 = vsel %vm12174_vm4, %v6246_v61, %v6250_v9  ;;  %v1934_v6 = vrot.slane %v1932_v62, 5  ;;  %v9885_v55 = vld [vmem:[%s12061_s9 + $0x168] sm:$0xf] }
 0x132   : > { %v6255_v22 = vrot.slane %v6253_v0, 4  ;;  %v6266_v7 = vshrl.u32 %v9880_v46, 16  ;;  %v9907_v49 = vcombine.low %v6241_v58, %v6251_v5  ;;  %v1920_v8 = vrot.slane %v1919_v1, 4  ;;  %v9886_v0 = vld [vmem:[%s12061_s9 + $0x16c] sm:$0xf] }
 0x133   : > { %v1929_v11 = vor.u32 %v1928_v10, %v1924_v41  ;;  %v6258_v12 = vrot.slane %v6256_v18, 5  ;;  %v6264_v16 = vrot.slane %v6262_v2, 5  ;;  %v6272_v17 = vshll.u32 %v9881_v57, 16 }
 0x134   : > { %v6268_v63 = vrot.slane %v6266_v7, 4  ;;  %v1937_v19 = vshrl.u32 %v9298_v4, 16  ;;  %11052 = vmatmul.mubr.msk.bf16.gmra.mrb[16].mxu0 %vm290_vm1, %v9907_v49  ;;  %v1925_v20 = vsel %vm12174_vm4, %v1920_v8, %v1924_v41  ;;  %v1940_v24 = vshll.u32 %v9298_v4, 16  ;;  %v9303_v41 = vld [vmem:[%s12061_s9 + $0x164] sm:$0x1] }
 0x135   : > { %v1930_v21 = vrot.slane %v1929_v11, 4  ;;  %v6259_v23 = vor.u32 %v6258_v12, %v6255_v22  ;;  %v6274_v25 = vrot.slane %v6272_v17, 5  ;;  %v1946_v29 = vshll.u32 %v9299_v48, 16  ;;  %v9887_v11 = vld [vmem:[%s12061_s9 + $0x170] sm:$0x1] }
 0x136   : > { %v6269_v28 = vor.u32 %v6268_v63, %v6264_v16  ;;  %v1939_v26 = vrot.slane %v1937_v19, 4  ;;  %v1942_v31 = vrot.slane %v1940_v24, 5  ;;  %v1950_v32 = vshrl.u32 %v9299_v48, 16  ;;  %v9304_v17 = vld [vmem:[%s12061_s9 + $0x168] sm:$0xf] }
 0x137   : > { %v1935_v30 = vsel %vm12174_vm4, %v1930_v21, %v1934_v6  ;;  %v6260_v60 = vrot.slane %v6259_v23, 4  ;;  %v1948_v35 = vrot.slane %v1946_v29, 5  ;;  %v1956_v39 = vshll.u32 %v9300_v13, 16  ;;  %v9305_v23 = vld [vmem:[%s12061_s9 + $0x16c] sm:$0xf] }
 0x138   : > { %v9324_v33 = vcombine.low %v1925_v20, %v1935_v30  ;;  %v6270_v34 = vrot.slane %v6269_v28, 4  ;;  %v1943_v40 = vor.u32 %v1942_v31, %v1939_v26  ;;  %v1952_v59 = vrot.slane %v1950_v32, 4  ;;  %v9306_v31 = vld [vmem:[%s12061_s9 + $0x170] sm:$0x1] }
 0x139   : > { %v6265_v38 = vsel %vm12174_vm4, %v6260_v60, %v6264_v16  ;;  %v6277_v27 = vshrl.u32 %v9882_v50, 16  ;;  %v1958_v44 = vrot.slane %v1956_v39, 5  ;;  %v6280_v45 = vshll.u32 %v9882_v50, 16 }
 0x13a   : > { %10783 = vmatprep.mubr.msk.bf16.mxu1 %vm290_vm1, %v9324_v33  ;;  %v6275_v43 = vsel %vm12174_vm4, %v6270_v34, %v6274_v25  ;;  %v6286_v56 = vshll.u32 %v9883_v36, 16  ;;  %v1944_v46 = vrot.slane %v1943_v40, 4  ;;  %v1953_v47 = vor.u32 %v1952_v59, %v1948_v35  ;;  %v9889_v59 = vld [vmem:[%s12061_s9 + $0x178] sm:$0xf] }
 0x13b   : > { %v9908_v3 = vcombine.low %v6265_v38, %v6275_v43  ;;  %v6279_v51 = vrot.slane %v6277_v27, 4  ;;  %v6282_v52 = vrot.slane %v6280_v45, 5  ;;  %v6290_v53 = vshrl.u32 %v9883_v36, 16 }
 0x13c   : > { %v6288_v9 = vrot.slane %v6286_v56, 5  ;;  %v6296_v54 = vshll.u32 %v9884_v15, 16  ;;  %v1949_v57 = vsel %vm12174_vm4, %v1944_v46, %v1948_v35  ;;  %v1954_v58 = vrot.slane %v1953_v47, 4  ;;  %v9888_v35 = vld [vmem:[%s12061_s9 + $0x174] sm:$0xf] }
 0x13d   : > { %11055 = vmatprep.mubr.msk.bf16.mxu0 %vm290_vm1, %v9908_v3  ;;  %v1961_v61 = vshrl.u32 %v9301_v37, 16  ;;  %v1964_v62 = vshll.u32 %v9301_v37, 16  ;;  %v6283_v1 = vor.u32 %v6282_v52, %v6279_v51  ;;  %v6292_v10 = vrot.slane %v6290_v53, 4  ;;  %v9890_v53 = vld [vmem:[%s12061_s9 + $0x17c] sm:$0x1] }
 0x13e   : > { %v6298_v18 = vrot.slane %v6296_v54, 5  ;;  %v1970_v2 = vshll.u32 %v9302_v42, 16  ;;  %v1959_v4 = vsel %vm12174_vm4, %v1954_v58, %v1958_v44  ;;  %v1974_v22 = vshrl.u32 %v9302_v42, 16  ;;  %v9307_v54 = vld [vmem:[%s12061_s9 + $0x174] sm:$0xf] }
 0x13f   : > { %v1963_v5 = vrot.slane %v1961_v61, 4  ;;  %v1966_v6 = vrot.slane %v1964_v62, 5  ;;  %v9325_v7 = vcombine.low %v1949_v57, %v1959_v4  ;;  %v6284_v48 = vrot.slane %v6283_v1, 4  ;;  %v9308_v61 = vld [vmem:[%s12061_s9 + $0x178] sm:$0xf] }
 0x140   : > { %v6293_v49 = vor.u32 %v6292_v10, %v6288_v9  ;;  %v1972_v8 = vrot.slane %v1970_v2, 5  ;;  %v1976_v13 = vrot.slane %v1974_v22, 4  ;;  %v1980_v16 = vshll.u32 %v9303_v41, 16 }
 0x141   : > { %v1967_v12 = vor.u32 %v1966_v6, %v1963_v5  ;;  %v6301_v63 = vshrl.u32 %v9885_v55, 16  ;;  %10784 = vmatmul.mubr.msk.bf16.gmra.mrb[20].mxu1 %vm290_vm1, %v9325_v7  ;;  %v6289_v19 = vsel %vm12174_vm4, %v6284_v48, %v6288_v9  ;;  %v6304_v20 = vshll.u32 %v9885_v55, 16 }
 0x142   : > { %v6294_v50 = vrot.slane %v6293_v49, 4  ;;  %v6310_v21 = vshll.u32 %v9886_v0, 16  ;;  %v1977_v36 = vor.u32 %v1976_v13, %v1972_v8  ;;  %v1982_v28 = vrot.slane %v1980_v16, 5  ;;  %v9309_v49 = vld [vmem:[%s12061_s9 + $0x17c] sm:$0x1] }
 0x143   : > { %v1968_v24 = vrot.slane %v1967_v12, 4  ;;  %v6303_v25 = vrot.slane %v6301_v63, 4  ;;  %v6306_v29 = vrot.slane %v6304_v20, 5  ;;  %v6314_v60 = vshrl.u32 %v9886_v0, 16  ;;  %v9892_v63 = vld [vmem:[%s12061_s9 + $0x184] sm:$0xf] }
 0x144   : > { %v6299_v26 = vsel %vm12174_vm4, %v6294_v50, %v6298_v18  ;;  %v6312_v30 = vrot.slane %v6310_v21, 5  ;;  %v1978_v33 = vrot.slane %v1977_v36, 4  ;;  %v6320_v34 = vshll.u32 %v9887_v11, 16 }
 0x145   : > { %v9909_v32 = vcombine.low %v6289_v19, %v6299_v26  ;;  %v1973_v15 = vsel %vm12174_vm4, %v1968_v24, %v1972_v8  ;;  %v6307_v39 = vor.u32 %v6306_v29, %v6303_v25  ;;  %v6316_v37 = vrot.slane %v6314_v60, 4  ;;  %v9891_v8 = vld [vmem:[%s12061_s9 + $0x180] sm:$0xf] }
 0x146   : > { %v1985_v38 = vshrl.u32 %v9304_v17, 16  ;;  %v1988_v40 = vshll.u32 %v9304_v17, 16  ;;  %v1983_v27 = vsel %vm12174_vm4, %v1978_v33, %v1982_v28  ;;  %v6322_v42 = vrot.slane %v6320_v34, 5  ;;  %v9310_v60 = vld [vmem:[%s12061_s9 + $0x180] sm:$0xf] }
 0x147   : > { %11056 = vmatmul.mubr.msk.bf16.gmra.mrb[20].mxu0 %vm290_vm1, %v9909_v32  ;;  %v1994_v43 = vshll.u32 %v9305_v23, 16  ;;  %v1998_v44 = vshrl.u32 %v9305_v23, 16  ;;  %v9326_v45 = vcombine.low %v1973_v15, %v1983_v27  ;;  %v6308_v56 = vrot.slane %v6307_v39, 4 }
 0x148   : > { %v6317_v3 = vor.u32 %v6316_v37, %v6312_v30  ;;  %v1987_v46 = vrot.slane %v1985_v38, 4  ;;  %v1990_v47 = vrot.slane %v1988_v40, 5  ;;  %v2004_v9 = vshll.u32 %v9306_v31, 16  ;;  %v9311_v38 = vld [vmem:[%s12061_s9 + $0x184] sm:$0xf] }
 0x149   : > { %v1996_v51 = vrot.slane %v1994_v43, 5  ;;  %v2000_v52 = vrot.slane %v1998_v44, 4  ;;  %10787 = vmatprep.mubr.msk.bf16.mxu1 %vm290_vm1, %v9326_v45  ;;  %v6313_v41 = vsel %vm12174_vm4, %v6308_v56, %v6312_v30  ;;  %v6325_v57 = vshrl.u32 %v9888_v35, 16  ;;  %v9893_v30 = vld [vmem:[%s12061_s9 + $0x188] sm:$0x1] }
 0x14a   : > { %v6318_v55 = vrot.slane %v6317_v3, 4  ;;  %v6328_v58 = vshll.u32 %v9888_v35, 16  ;;  %v1991_v62 = vor.u32 %v1990_v47, %v1987_v46  ;;  %v2006_v1 = vrot.slane %v2004_v9, 5  ;;  %v9312_v3 = vld [vmem:[%s12061_s9 + $0x188] sm:$0x1] }
 0x14b   : > { %v2001_v0 = vor.u32 %v2000_v52, %v1996_v51  ;;  %v6334_v10 = vshll.u32 %v9889_v59, 16  ;;  %v6327_v2 = vrot.slane %v6325_v57, 4  ;;  %v6338_v5 = vshrl.u32 %v9889_v59, 16  ;;  %v9894_v9 = vld [vmem:[%s12061_s9 + $0x18c] sm:$0xf] }
 0x14c   : > { %v6323_v18 = vsel %vm12174_vm4, %v6318_v55, %v6322_v42  ;;  %v6330_v4 = vrot.slane %v6328_v58, 5  ;;  %v1992_v22 = vrot.slane %v1991_v62, 4  ;;  %v6344_v13 = vshll.u32 %v9890_v53, 16  ;;  %v9895_v57 = vld [vmem:[%s12061_s9 + $0x190] sm:$0xf] }
 0x14d   : > { %v9910_v6 = vcombine.low %v6313_v41, %v6323_v18  ;;  %v2002_v7 = vrot.slane %v2001_v0, 4  ;;  %v6336_v48 = vrot.slane %v6334_v10, 5  ;;  %v6340_v12 = vrot.slane %v6338_v5, 4 }
 0x14e   : > { %v6331_v11 = vor.u32 %v6330_v4, %v6327_v2  ;;  %v2009_v16 = vshrl.u32 %v9307_v54, 16  ;;  %v1997_v17 = vsel %vm12174_vm4, %v1992_v22, %v1996_v51  ;;  %v2012_v50 = vshll.u32 %v9307_v54, 16  ;;  %v9896_v4 = vld [vmem:[%s12061_s9 + $0x194] sm:$0x1] }
 0x14f   : > { %11059 = vmatprep.mubr.msk.bf16.mxu0 %vm290_vm1, %v9910_v6  ;;  %v2007_v19 = vsel %vm12174_vm4, %v2002_v7, %v2006_v1  ;;  %v2018_v20 = vshll.u32 %v9308_v61, 16  ;;  %v6341_v24 = vor.u32 %v6340_v12, %v6336_v48  ;;  %v6346_v36 = vrot.slane %v6344_v13, 5 }
 0x150   : > { %v9327_v21 = vcombine.low %v1997_v17, %v2007_v19  ;;  %v6332_v23 = vrot.slane %v6331_v11, 4  ;;  %v2011_v28 = vrot.slane %v2009_v16, 4  ;;  %v2014_v25 = vrot.slane %v2012_v50, 5 }
 0x151   : > { %v2020_v26 = vrot.slane %v2018_v20, 5  ;;  %v2022_v29 = vshrl.u32 %v9308_v61, 16  ;;  %v6342_v32 = vrot.slane %v6341_v24, 4  ;;  %v2028_v15 = vshll.u32 %v9309_v49, 16 }
 0x152   : > { %10788 = vmatmul.mubr.msk.bf16.gmra.mrb[24].mxu1 %vm290_vm1, %v9327_v21  ;;  %v6337_v31 = vsel %vm12174_vm4, %v6332_v23, %v6336_v48  ;;  %v6349_v33 = vshrl.u32 %v9891_v8, 16  ;;  %v2015_v34 = vor.u32 %v2014_v25, %v2011_v28  ;;  %v6352_v39 = vshll.u32 %v9891_v8, 16 }
 0x153   : > { %v2024_v35 = vrot.slane %v2022_v29, 4  ;;  %v6358_v37 = vshll.u32 %v9892_v63, 16  ;;  %v6347_v40 = vsel %vm12174_vm4, %v6342_v32, %v6346_v36  ;;  %v2030_v59 = vrot.slane %v2028_v15, 5 }
 0x154   : > { %v6351_v27 = vrot.slane %v6349_v33, 4  ;;  %v6362_v42 = vshrl.u32 %v9892_v63, 16  ;;  %v9911_v43 = vcombine.low %v6337_v31, %v6347_v40  ;;  %v2016_v44 = vrot.slane %v2015_v34, 4  ;;  %v12823_v31 = vld [vmem:[%s13779_s1 + $0x18] sm:$0xf] }
 0x155   : > { %v2025_v45 = vor.u32 %v2024_v35, %v2020_v26  ;;  %v6354_v56 = vrot.slane %v6352_v39, 5  ;;  %v6360_v46 = vrot.slane %v6358_v37, 5  ;;  %v6368_v51 = vshll.u32 %v9893_v30, 16  ;;  %v11901_v35 = vld [vmem:[%s13779_s1 + $0x14] sm:$0xf] }
 0x156   : > { %v6364_v47 = vrot.slane %v6362_v42, 4  ;;  %v2033_v52 = vshrl.u32 %v9310_v60, 16  ;;  %11060 = vmatmul.mubr.msk.bf16.gmra.mrb[24].mxu0 %vm290_vm1, %v9911_v43  ;;  %v2021_v53 = vsel %vm12174_vm4, %v2016_v44, %v2020_v26  ;;  %v2036_v55 = vshll.u32 %v9310_v60, 16  ;;  %v11837_v60 = vld [vmem:[%s12061_s9 + $0x198] sm:$0xff]   ;;  %v11902_v37 = vld [vmem:[%s13779_s1 + $0x34] sm:$0xf] }
 0x157   : > { %v2026_v54 = vrot.slane %v2025_v45, 4  ;;  %v6355_v41 = vor.u32 %v6354_v56, %v6351_v27  ;;  %v6370_v61 = vrot.slane %v6368_v51, 5  ;;  %v2042_v0 = vshll.u32 %v9311_v38, 16  ;;  %v12838_v40 = vld [vmem:[%s13779_s1 + $0x38] sm:$0xf] }
 0x158   : > { %v6365_v58 = vor.u32 %v6364_v47, %v6360_v46  ;;  %v2035_v62 = vrot.slane %v2033_v52, 4  ;;  %v2038_v18 = vrot.slane %v2036_v55, 5  ;;  %v2046_v2 = vshrl.u32 %v9311_v38, 16  ;;  %v9476_v43 = vld [vmem:[%s12061_s9 + $0x198] sm:$0xf]  ;;  %v11838_v52 = vld [vmem:[%s12061_s9 + $0x1a4] sm:$0xff]  }
 0x159   : > { %v2031_v1 = vsel %vm12174_vm4, %v2026_v54, %v2030_v59  ;;  %v6356_v10 = vrot.slane %v6355_v41, 4  ;;  %v2044_v22 = vrot.slane %v2042_v0, 5  ;;  %v2052_v7 = vshll.u32 %v9312_v3, 16  ;;  %v9477_v44 = vld [vmem:[%s12061_s9 + $0x19c] sm:$0xf] }
 0x15a   : > { %v9328_v5 = vcombine.low %v2021_v53, %v2031_v1  ;;  %v6366_v6 = vrot.slane %v6365_v58, 4  ;;  %v2039_v49 = vor.u32 %v2038_v18, %v2035_v62  ;;  %v2048_v8 = vrot.slane %v2046_v2, 4  ;;  %v10060_v47 = vld [vmem:[%s12061_s9 + $0x1a4] sm:$0xf]  ;;  %v10061_v53 = vld [vmem:[%s12061_s9 + $0x1a8] sm:$0xf] }
 0x15b   : > { %v6361_v48 = vsel %vm12174_vm4, %v6356_v10, %v6360_v46  ;;  %v6373_v11 = vshrl.u32 %v9894_v9, 16  ;;  %v2054_v13 = vrot.slane %v2052_v7, 5  ;;  %v6376_v16 = vshll.u32 %v9894_v9, 16  ;;  %v9479_v0 = vld [vmem:[%s12061_s9 + $0x1a4] sm:$0xf] }
 0x15c   : > { %10791 = vmatprep.mubr.msk.bf16.mxu1 %vm290_vm1, %v9328_v5  ;;  %v6371_v12 = vsel %vm12174_vm4, %v6366_v6, %v6370_v61  ;;  %v6382_v63 = vshll.u32 %v9895_v57, 16  ;;  %v2040_v19 = vrot.slane %v2039_v49, 4  ;;  %v2049_v50 = vor.u32 %v2048_v8, %v2044_v22  ;;  %v9478_v1 = vld [vmem:[%s12061_s9 + $0x1a0] sm:$0x1]  ;;  %v10062_v18 = vld [vmem:[%s12061_s9 + $0x1ac] sm:$0x1] }
 0x15d   : > { %v9912_v17 = vcombine.low %v6361_v48, %v6371_v12  ;;  %v6375_v20 = vrot.slane %v6373_v11, 4  ;;  %v6378_v21 = vrot.slane %v6376_v16, 5  ;;  %v6386_v24 = vshrl.u32 %v9895_v57, 16  ;;  %v11839_v57 = vld [vmem:[%s12061_s9 + $0x1a4] sm:$0xff]  }
 0x15e   : > { %v6384_v23 = vrot.slane %v6382_v63, 5  ;;  %v6392_v36 = vshll.u32 %v9896_v4, 16  ;;  %v2045_v28 = vsel %vm12174_vm4, %v2040_v19, %v2044_v22  ;;  %v2050_v25 = vrot.slane %v2049_v50, 4  ;;  %v11841_v4 = vld [vmem:[%s12061_s9 + $0x1b0] sm:$0xff]   ;;  %v9480_v11 = vld [vmem:[%s12061_s9 + $0x1a8] sm:$0xf] }
 0x15f   : > { %11063 = vmatprep.mubr.msk.bf16.mxu0 %vm290_vm1, %v9912_v17  ;;  %v6379_v26 = vor.u32 %v6378_v21, %v6375_v20  ;;  %v6388_v29 = vrot.slane %v6386_v24, 4  ;;  %v2873_v39 = vsel %vm339_vm0, %v11901_v35, 0  ;;  %v12833_v38 = vsel %vm339_vm0, %v11902_v37, 0  ;;  %v9481_v19 = vld [vmem:[%s12061_s9 + $0x1ac] sm:$0x1]  ;;  %v11840_v50 = vld [vmem:[%s12061_s9 + $0x1b0] sm:$0xff]  }
 0x160   : > { %v2055_v30 = vsel %vm12174_vm4, %v2050_v25, %v2054_v13  ;;  %v6394_v34 = vrot.slane %v6392_v36, 5  ;;  %v12845_v42 = vsel %vm339_vm0, %v12823_v31, 0  ;;  %v3117_v45 = vshrl.u32 %v9476_v43, 16  ;;  %v11842_v36 = vld [vmem:[%s12061_s9 + $0x1bc] sm:$0xff]   ;;  %v10064_v35 = vld [vmem:[%s12061_s9 + $0x1b4] sm:$0xf] }
 0x161   : > { %v9329_v32 = vcombine.low %v2045_v28, %v2055_v30  ;;  %v6380_v15 = vrot.slane %v6379_v26, 4  ;;  %v6389_v33 = vor.u32 %v6388_v29, %v6384_v23  ;;  %v3120_v56 = vshll.u32 %v9476_v43, 16  ;;  %v12877_v25 = vld [vmem:[%s13779_s1 + $0x1c] sm:$0xf]  ;;  %v10065_v43 = vld [vmem:[%s12061_s9 + $0x1b8] sm:$0x1] }
 0x162   : > { %v3126_v3 = vshll.u32 %v9477_v44, 16  ;;  %v3130_v46 = vshrl.u32 %v9477_v44, 16  ;;  %v12856_v9 = vsel %vm339_vm0, %v12838_v40, 0  ;;  %v7457_v54 = vshrl.u32 %v10060_v47, 16  ;;  %v11843_v44 = vld [vmem:[%s12061_s9 + $0x1bc] sm:$0xff]  }
 0x163   : > { %10792 = vmatmul.mubr.msk.bf16.gmra.mrb[28].mxu1 %vm290_vm1, %v9329_v32  ;;  %v6385_v59 = vsel %vm12174_vm4, %v6380_v15, %v6384_v23  ;;  %v6390_v27 = vrot.slane %v6389_v33, 4  ;;  %v7460_v41 = vshll.u32 %v10060_v47, 16  ;;  %v3119_v58 = vrot.slane %v3117_v45, 4 }
 0x164   : > { %10797 = vmatprep.mubr.msk.bf16.mxu1 %vm290_vm1, %v11837_v60  ;;  %v3122_v61 = vrot.slane %v3120_v56, 5  ;;  %v3128_v62 = vrot.slane %v3126_v3, 5  ;;  %v3132_v10 = vrot.slane %v3130_v46, 4  ;;  %v7459_v2 = vrot.slane %v7457_v54, 4  ;;  %v11845_v46 = vld [vmem:[%s12061_s9 + $0x1c8] sm:$0xff]  }
 0x165   : > { %v6395_v51 = vsel %vm12174_vm4, %v6390_v27, %v6394_v34  ;;  %v3136_v6 = vshll.u32 %v9478_v1, 16  ;;  %v7462_v22 = vrot.slane %v7460_v41, 5  ;;  %v7466_v7 = vshll.u32 %v10061_v53, 16  ;;  %v10063_v34 = vld [vmem:[%s12061_s9 + $0x1b0] sm:$0xf] }
 0x166   : > { %v9913_v55 = vcombine.low %v6385_v59, %v6395_v51  ;;  %v3123_v5 = vor.u32 %v3122_v61, %v3119_v58  ;;  %v3133_v48 = vor.u32 %v3132_v10, %v3128_v62  ;;  %v7470_v49 = vshrl.u32 %v10061_v53, 16  ;;  %v12904_v58 = vld [vmem:[%s13779_s1 + $0x3c] sm:$0xf]  ;;  %v9482_v61 = vld [vmem:[%s12061_s9 + $0x1b0] sm:$0xf] }
 0x167   : > { %v7476_v8 = vshll.u32 %v10062_v18, 16  ;;  %v3141_v12 = vshrl.u32 %v9479_v0, 16  ;;  %v3138_v16 = vrot.slane %v3136_v6, 5  ;;  %v7463_v63 = vor.u32 %v7462_v22, %v7459_v2  ;;  %v9483_v10 = vld [vmem:[%s12061_s9 + $0x1b4] sm:$0xf]  ;;  %v11844_v6 = vld [vmem:[%s12061_s9 + $0x1c8] sm:$0xff]  }
 0x168   : > { %11064 = vmatmul.mubr.msk.bf16.gmra.mrb[28].mxu0 %vm290_vm1, %v9913_v55  ;;  %v3124_v13 = vrot.slane %v3123_v5, 4  ;;  %v7468_v17 = vrot.slane %v7466_v7, 5  ;;  %v3134_v20 = vrot.slane %v3133_v48, 4  ;;  %v7472_v21 = vrot.slane %v7470_v49, 4  ;;  %v9484_v48 = vld [vmem:[%s12061_s9 + $0x1b8] sm:$0x1] }
 0x169   : > { %11069 = vmatprep.mubr.msk.bf16.mxu0 %vm290_vm1, %v11838_v52  ;;  %v7478_v23 = vrot.slane %v7476_v8, 5  ;;  %v3143_v24 = vrot.slane %v3141_v12, 4  ;;  %v7464_v26 = vrot.slane %v7463_v63, 4  ;;  %v3144_v29 = vshll.u32 %v9479_v0, 16  ;;  %v11846_v8 = vld [vmem:[%s12061_s9 + $0x1d4] sm:$0xff]  }
 0x16a   : > { %v3129_v28 = vsel %vm12174_vm4, %v3124_v13, %v3128_v62  ;;  %v3150_v30 = vshll.u32 %v9480_v11, 16  ;;  %v3139_v60 = vsel %vm12174_vm4, %v3134_v20, %v3138_v16  ;;  %v7473_v32 = vor.u32 %v7472_v21, %v7468_v17  ;;  %v10066_v63 = vld [vmem:[%s12061_s9 + $0x1bc] sm:$0xf]  ;;  %v10067_v21 = vld [vmem:[%s12061_s9 + $0x1c0] sm:$0xf] }
 0x16b   : > { %10798 = vmatmul.mubr.msk.bf16.vlgmr.msra.gmra.mrb[0].mxu1 %vm290_vm1, %v11839_v57  ;;  %v3154_v15 = vshrl.u32 %v9480_v11, 16  ;;  %v3160_v33 = vshll.u32 %v9481_v19, 16  ;;  %v7469_v37 = vsel %vm12174_vm4, %v7464_v26, %v7468_v17  ;;  %v3146_v59 = vrot.slane %v3144_v29, 5  ;;  %v11849_v29 = vld [vmem:[%s12061_s9 + $0x1e0] sm:$0xff]  }
 0x16c   : > { %10830 = vmatpush3.bf16.msra.mxu1 %v2873_v39  ;;  %10801 = vmatprep.mubr.msk.bf16.mxu1 %vm290_vm1, %v11841_v4  ;;  %v12885_v39 = vcombine.low %v3129_v28, %v3139_v60  ;;  %v3152_v27 = vrot.slane %v3150_v30, 5  ;;  %v7474_v45 = vrot.slane %v7473_v32, 4  ;;  %v12893_v3 = vsel %vm339_vm0, %v12877_v25, 0  ;;  %v10068_v32 = vld [vmem:[%s12061_s9 + $0x1c4] sm:$0x1] }
 0x16d   : > { %11721 = vmatprep.subr.msk.bf16.mxu1 %vm339_vm0, %v12823_v31  ;;  %v3156_v31 = vrot.slane %v3154_v15, 4  ;;  %v3162_v56 = vrot.slane %v3160_v33, 5  ;;  %v3147_v47 = vor.u32 %v3146_v59, %v3143_v24  ;;  %v7481_v51 = vshrl.u32 %v10063_v34, 16 }
 0x16e   : > { %v7484_v52 = vshll.u32 %v10063_v34, 16  ;;  %v7490_v53 = vshll.u32 %v10064_v35, 16  ;;  %v7479_v54 = vsel %vm12174_vm4, %v7474_v45, %v7478_v23  ;;  %v7494_v55 = vshrl.u32 %v10064_v35, 16  ;;  %v11847_v23 = vld [vmem:[%s12061_s9 + $0x1d4] sm:$0xff]  }
 0x16f   : > { %v3157_v41 = vor.u32 %v3156_v31, %v3152_v27  ;;  %v7500_v57 = vshll.u32 %v10065_v43, 16  ;;  %v3148_v62 = vrot.slane %v3147_v47, 4  ;;  %v7483_v0 = vrot.slane %v7481_v51, 4 }
 0x170   : > { %11070 = vmatmul.mubr.msk.bf16.vlgmr.msra.gmra.mrb[0].mxu0 %vm290_vm1, %v11840_v50  ;;  %v7486_v1 = vrot.slane %v7484_v52, 5  ;;  %v7492_v2 = vrot.slane %v7490_v53, 5  ;;  %v7496_v4 = vrot.slane %v7494_v55, 4  ;;  %v12919_v7 = vsel %vm339_vm0, %v12904_v58, 0  ;;  %v11848_v53 = vld [vmem:[%s12061_s9 + $0x1e0] sm:$0xff]  }
 0x171   : > { %11102 = vmatpush3.bf16.msra.mxu0 %v12833_v38  ;;  %11073 = vmatprep.mubr.msk.bf16.mxu0 %vm290_vm1, %v11842_v36  ;;  %v12909_v38 = vcombine.low %v7469_v37, %v7479_v54  ;;  %v3158_v18 = vrot.slane %v3157_v41, 4  ;;  %v7502_v5 = vrot.slane %v7500_v57, 5  ;;  %v3165_v49 = vshrl.u32 %v9482_v61, 16  ;;  %v9487_v55 = vld [vmem:[%s12061_s9 + $0x1c4] sm:$0x1] }
 0x172   : > { %11729 = vmatprep.subr.msk.bf16.mxu0 %vm339_vm0, %v12838_v40  ;;  %v3153_v40 = vsel %vm12174_vm4, %v3148_v62, %v3152_v27  ;;  %v7487_v22 = vor.u32 %v7486_v1, %v7483_v0  ;;  %v7497_v12 = vor.u32 %v7496_v4, %v7492_v2  ;;  %v3168_v13 = vshll.u32 %v9482_v61, 16  ;;  %v9485_v27 = vld [vmem:[%s12061_s9 + $0x1bc] sm:$0xf]  ;;  %v11850_v62 = vld [vmem:[%s12061_s9 + $0x1ec] sm:$0xff]  }
 0x173   : > { %10802 = vmatmul.mubr.msk.bf16.gmra.mrb[4].mxu1 %vm290_vm1, %v11843_v44  ;;  %v3163_v11 = vsel %vm12174_vm4, %v3158_v18, %v3162_v56  ;;  %v3174_v16 = vshll.u32 %v9483_v10, 16  ;;  %v3167_v50 = vrot.slane %v3165_v49, 4  ;;  %v3178_v20 = vshrl.u32 %v9483_v10, 16  ;;  %v9486_v56 = vld [vmem:[%s12061_s9 + $0x1c0] sm:$0xf] }
 0x174   : > { %10805 = vmatprep.mubr.msk.bf16.mxu1 %vm290_vm1, %v11845_v46  ;;  %v12926_v17 = vcombine.low %v3153_v40, %v3163_v11  ;;  %v7488_v19 = vrot.slane %v7487_v22, 4  ;;  %v7498_v24 = vrot.slane %v7497_v12, 4  ;;  %v3170_v36 = vrot.slane %v3168_v13, 5  ;;  %v10070_v22 = vld [vmem:[%s12061_s9 + $0x1cc] sm:$0xf]  ;;  %v11853_v13 = vld [vmem:[%s12061_s9 + $0x1f8] sm:$0xff]  }
 0x175   : > { %v3176_v28 = vrot.slane %v3174_v16, 5  ;;  %v3184_v26 = vshll.u32 %v9484_v48, 16  ;;  %v3180_v60 = vrot.slane %v3178_v20, 4  ;;  %v7505_v15 = vshrl.u32 %v10066_v63, 16  ;;  %v11851_v48 = vld [vmem:[%s12061_s9 + $0x1ec] sm:$0xff]  }
 0x176   : > { %v7493_v30 = vsel %vm12174_vm4, %v7488_v19, %v7492_v2  ;;  %v7508_v33 = vshll.u32 %v10066_v63, 16  ;;  %v7503_v34 = vsel %vm12174_vm4, %v7498_v24, %v7502_v5  ;;  %v3171_v35 = vor.u32 %v3170_v36, %v3167_v50  ;;  %v10069_v2 = vld [vmem:[%s12061_s9 + $0x1c8] sm:$0xf] }
 0x177   : > { %v3186_v37 = vrot.slane %v3184_v26, 5  ;;  %v7514_v59 = vshll.u32 %v10067_v21, 16  ;;  %v12939_v43 = vcombine.low %v7493_v30, %v7503_v34  ;;  %v3181_v44 = vor.u32 %v3180_v60, %v3176_v28  ;;  %v9488_v60 = vld [vmem:[%s12061_s9 + $0x1c8] sm:$0xf] }
 0x178   : > { %11074 = vmatmul.mubr.msk.bf16.gmra.mrb[4].mxu0 %vm290_vm1, %v11844_v6  ;;  %v7507_v45 = vrot.slane %v7505_v15, 4  ;;  %v7510_v31 = vrot.slane %v7508_v33, 5  ;;  %v3172_v46 = vrot.slane %v3171_v35, 4  ;;  %v7518_v51 = vshrl.u32 %v10067_v21, 16  ;;  %v9489_v35 = vld [vmem:[%s12061_s9 + $0x1cc] sm:$0xf] }
 0x179   : > { %11077 = vmatprep.mubr.msk.bf16.mxu0 %vm290_vm1, %v11846_v8  ;;  %v7516_v47 = vrot.slane %v7514_v59, 5  ;;  %v7524_v52 = vshll.u32 %v10068_v32, 16  ;;  %v3182_v54 = vrot.slane %v3181_v44, 4  ;;  %v3189_v57 = vshrl.u32 %v9485_v27, 16 }
 0x17a   : > { %v7511_v41 = vor.u32 %v7510_v31, %v7507_v45  ;;  %v3192_v61 = vshll.u32 %v9485_v27, 16  ;;  %v3177_v0 = vsel %vm12174_vm4, %v3172_v46, %v3176_v28  ;;  %v7520_v1 = vrot.slane %v7518_v51, 4  ;;  %v11854_v31 = vld [vmem:[%s12061_s9 + $0x204] sm:$0xff]  }
 0x17b   : > { %10806 = vmatmul.mubr.msk.bf16.gmra.mrb[8].mxu1 %vm290_vm1, %v11847_v23  ;;  %v7526_v10 = vrot.slane %v7524_v52, 5  ;;  %v3198_v18 = vshll.u32 %v9486_v56, 16  ;;  %v3187_v4 = vsel %vm12174_vm4, %v3182_v54, %v3186_v37  ;;  %v3191_v6 = vrot.slane %v3189_v57, 4  ;;  %v10071_v23 = vld [vmem:[%s12061_s9 + $0x1d0] sm:$0x1]  ;;  %v11852_v37 = vld [vmem:[%s12061_s9 + $0x1f8] sm:$0xff]  }
 0x17c   : > { %10809 = vmatprep.mubr.msk.bf16.mxu1 %vm290_vm1, %v11849_v29  ;;  %v7512_v5 = vrot.slane %v7511_v41, 4  ;;  %v3194_v40 = vrot.slane %v3192_v61, 5  ;;  %v12954_v49 = vcombine.low %v3177_v0, %v3187_v4  ;;  %v7521_v8 = vor.u32 %v7520_v1, %v7516_v47  ;;  %v10072_v57 = vld [vmem:[%s12061_s9 + $0x1d4] sm:$0xf]  ;;  %v11855_v61 = vld [vmem:[%s12061_s9 + $0x204] sm:$0xff]  }
 0x17d   : > { %v3200_v11 = vrot.slane %v3198_v18, 5  ;;  %v3202_v12 = vshrl.u32 %v9486_v56, 16  ;;  %v3208_v19 = vshll.u32 %v9487_v55, 16  ;;  %v7529_v50 = vshrl.u32 %v10069_v2, 16  ;;  %v10073_v18 = vld [vmem:[%s12061_s9 + $0x1d8] sm:$0xf] }
 0x17e   : > { %v7517_v16 = vsel %vm12174_vm4, %v7512_v5, %v7516_v47  ;;  %v3195_v63 = vor.u32 %v3194_v40, %v3191_v6  ;;  %v7522_v20 = vrot.slane %v7521_v8, 4  ;;  %v7532_v24 = vshll.u32 %v10069_v2, 16  ;;  %v9490_v47 = vld [vmem:[%s12061_s9 + $0x1d0] sm:$0x1] }
 0x17f   : > { %v3204_v21 = vrot.slane %v3202_v12, 4  ;;  %v7538_v36 = vshll.u32 %v10070_v22, 16  ;;  %v3210_v26 = vrot.slane %v3208_v19, 5  ;;  %v7531_v29 = vrot.slane %v7529_v50, 4  ;;  %v11857_v2 = vld [vmem:[%s12061_s9 + $0x210] sm:$0xff]  }
 0x180   : > { %11078 = vmatmul.mubr.msk.bf16.gmra.mrb[8].mxu0 %vm290_vm1, %v11848_v53  ;;  %v3196_v28 = vrot.slane %v3195_v63, 4  ;;  %v7542_v30 = vshrl.u32 %v10070_v22, 16  ;;  %v7527_v32 = vsel %vm12174_vm4, %v7522_v20, %v7526_v10  ;;  %v7534_v33 = vrot.slane %v7532_v24, 5  ;;  %v9491_v50 = vld [vmem:[%s12061_s9 + $0x1d4] sm:$0xf] }
 0x181   : > { %11081 = vmatprep.mubr.msk.bf16.mxu0 %vm290_vm1, %v11850_v62  ;;  %v3205_v15 = vor.u32 %v3204_v21, %v3200_v11  ;;  %v7540_v34 = vrot.slane %v7538_v36, 5  ;;  %v12969_v59 = vcombine.low %v7517_v16, %v7527_v32  ;;  %v7548_v45 = vshll.u32 %v10071_v23, 16  ;;  %v10074_v16 = vld [vmem:[%s12061_s9 + $0x1dc] sm:$0x1]  ;;  %v9492_v36 = vld [vmem:[%s12061_s9 + $0x1d8] sm:$0xf] }
 0x182   : > { %v3201_v27 = vsel %vm12174_vm4, %v3196_v28, %v3200_v11  ;;  %v7544_v44 = vrot.slane %v7542_v30, 4  ;;  %v7535_v46 = vor.u32 %v7534_v33, %v7531_v29  ;;  %v3213_v51 = vshrl.u32 %v9488_v60, 16  ;;  %v11856_v28 = vld [vmem:[%s12061_s9 + $0x210] sm:$0xff]   ;;  %v11858_v32 = vld [vmem:[%s12061_s9 + $0x21c] sm:$0xff]  }
 0x183   : > { %10810 = vmatmul.mubr.msk.bf16.gmra.mrb[12].mxu1 %vm290_vm1, %v11851_v48  ;;  %v3206_v56 = vrot.slane %v3205_v15, 4  ;;  %v3216_v52 = vshll.u32 %v9488_v60, 16  ;;  %v7550_v54 = vrot.slane %v7548_v45, 5  ;;  %v3222_v41 = vshll.u32 %v9489_v35, 16  ;;  %v9493_v45 = vld [vmem:[%s12061_s9 + $0x1dc] sm:$0x1] }
 0x184   : > { %10813 = vmatprep.mubr.msk.bf16.mxu1 %vm290_vm1, %v11853_v13  ;;  %v7545_v53 = vor.u32 %v7544_v44, %v7540_v34  ;;  %v3226_v55 = vshrl.u32 %v9489_v35, 16  ;;  %v7536_v0 = vrot.slane %v7535_v46, 4  ;;  %v3215_v1 = vrot.slane %v3213_v51, 4  ;;  %v11859_v46 = vld [vmem:[%s12061_s9 + $0x21c] sm:$0xff]  }
 0x185   : > { %v3211_v62 = vsel %vm12174_vm4, %v3206_v56, %v3210_v26  ;;  %v3218_v10 = vrot.slane %v3216_v52, 5  ;;  %v3224_v6 = vrot.slane %v3222_v41, 5  ;;  %v3232_v8 = vshll.u32 %v9490_v47, 16  ;;  %v10075_v56 = vld [vmem:[%s12061_s9 + $0x1e0] sm:$0xf]  ;;  %v11861_v41 = vld [vmem:[%s12061_s9 + $0x228] sm:$0xff]  }
 0x186   : > { %v12982_v4 = vcombine.low %v3201_v27, %v3211_v62  ;;  %v7546_v5 = vrot.slane %v7545_v53, 4  ;;  %v3228_v40 = vrot.slane %v3226_v55, 4  ;;  %v7541_v22 = vsel %vm12174_vm4, %v7536_v0, %v7540_v34 }
 0x187   : > { %v3219_v48 = vor.u32 %v3218_v10, %v3215_v1  ;;  %v7553_v11 = vshrl.u32 %v10072_v57, 16  ;;  %v7556_v63 = vshll.u32 %v10072_v57, 16  ;;  %v7562_v19 = vshll.u32 %v10073_v18, 16 }
 0x188   : > { %11082 = vmatmul.mubr.msk.bf16.gmra.mrb[12].mxu0 %vm290_vm1, %v11852_v37  ;;  %v7551_v12 = vsel %vm12174_vm4, %v7546_v5, %v7550_v54  ;;  %v3229_v13 = vor.u32 %v3228_v40, %v3224_v6  ;;  %v3234_v23 = vrot.slane %v3232_v8, 5  ;;  %v7566_v60 = vshrl.u32 %v10073_v18, 16  ;;  %v10076_v54 = vld [vmem:[%s12061_s9 + $0x1e4] sm:$0xf]  ;;  %v10077_v40 = vld [vmem:[%s12061_s9 + $0x1e8] sm:$0x1] }
 0x189   : > { %11085 = vmatprep.mubr.msk.bf16.mxu0 %vm290_vm1, %v11854_v31  ;;  %v12992_v20 = vcombine.low %v7541_v22, %v7551_v12  ;;  %v3220_v21 = vrot.slane %v3219_v48, 4  ;;  %v7555_v24 = vrot.slane %v7553_v11, 4  ;;  %v7558_v29 = vrot.slane %v7556_v63, 5 }
 0x18a   : > { %v3230_v26 = vrot.slane %v3229_v13, 4  ;;  %v7564_v30 = vrot.slane %v7562_v19, 5  ;;  %v7572_v33 = vshll.u32 %v10074_v16, 16  ;;  %v3237_v34 = vshrl.u32 %v9491_v50, 16  ;;  %v9494_v13 = vld [vmem:[%s12061_s9 + $0x1e0] sm:$0xf] }
 0x18b   : > { %10814 = vmatmul.mubr.msk.bf16.gmra.mrb[16].mxu1 %vm290_vm1, %v11855_v61  ;;  %v3225_v15 = vsel %vm12174_vm4, %v3220_v21, %v3224_v6  ;;  %v3240_v35 = vshll.u32 %v9491_v50, 16  ;;  %v7559_v27 = vor.u32 %v7558_v29, %v7555_v24  ;;  %v7568_v44 = vrot.slane %v7566_v60, 4  ;;  %v11860_v16 = vld [vmem:[%s12061_s9 + $0x228] sm:$0xff]   ;;  %v11862_v24 = vld [vmem:[%s12061_s9 + $0x234] sm:$0xff]  }
 0x18c   : > { %10817 = vmatprep.mubr.msk.bf16.mxu1 %vm290_vm1, %v11857_v2  ;;  %v3235_v37 = vsel %vm12174_vm4, %v3230_v26, %v3234_v23  ;;  %v3246_v31 = vshll.u32 %v9492_v36, 16  ;;  %v7574_v51 = vrot.slane %v7572_v33, 5  ;;  %v3239_v52 = vrot.slane %v3237_v34, 4  ;;  %v9495_v23 = vld [vmem:[%s12061_s9 + $0x1e4] sm:$0xf] }
 0x18d   : > { %v13005_v47 = vcombine.low %v3225_v15, %v3235_v37  ;;  %v3242_v53 = vrot.slane %v3240_v35, 5  ;;  %v7560_v55 = vrot.slane %v7559_v27, 4  ;;  %v7569_v57 = vor.u32 %v7568_v44, %v7564_v30  ;;  %v9496_v15 = vld [vmem:[%s12061_s9 + $0x1e8] sm:$0x1] }
 0x18e   : > { %v3248_v61 = vrot.slane %v3246_v31, 5  ;;  %v3250_v62 = vshrl.u32 %v9492_v36, 16  ;;  %v3256_v1 = vshll.u32 %v9493_v45, 16  ;;  %v7577_v10 = vshrl.u32 %v10075_v56, 16  ;;  %v11863_v36 = vld [vmem:[%s12061_s9 + $0x234] sm:$0xff]   ;;  %v11865_v31 = vld [vmem:[%s12061_s9 + $0x240] sm:$0xff]  }
 0x18f   : > { %v3243_v0 = vor.u32 %v3242_v53, %v3239_v52  ;;  %v7580_v18 = vshll.u32 %v10075_v56, 16  ;;  %v7565_v2 = vsel %vm12174_vm4, %v7560_v55, %v7564_v30  ;;  %v7570_v5 = vrot.slane %v7569_v57, 4  ;;  %v10078_v45 = vld [vmem:[%s12061_s9 + $0x1ec] sm:$0xf]  ;;  %v10079_v53 = vld [vmem:[%s12061_s9 + $0x1f0] sm:$0xf] }
 0x190   : > { %11086 = vmatmul.mubr.msk.bf16.gmra.mrb[16].mxu0 %vm290_vm1, %v11856_v28  ;;  %v3252_v6 = vrot.slane %v3250_v62, 4  ;;  %v7586_v22 = vshll.u32 %v10076_v54, 16  ;;  %v3258_v8 = vrot.slane %v3256_v1, 5  ;;  %v7579_v11 = vrot.slane %v7577_v10, 4  ;;  %v10080_v1 = vld [vmem:[%s12061_s9 + $0x1f4] sm:$0x1] }
 0x191   : > { %11089 = vmatprep.mubr.msk.bf16.mxu0 %vm290_vm1, %v11858_v32  ;;  %v3244_v48 = vrot.slane %v3243_v0, 4  ;;  %v7582_v12 = vrot.slane %v7580_v18, 5  ;;  %v7575_v63 = vsel %vm12174_vm4, %v7570_v5, %v7574_v51  ;;  %v7590_v21 = vshrl.u32 %v10076_v54, 16 }
 0x192   : > { %v3253_v19 = vor.u32 %v3252_v6, %v3248_v61  ;;  %v7588_v50 = vrot.slane %v7586_v22, 5  ;;  %v13023_v28 = vcombine.low %v7565_v2, %v7575_v63  ;;  %v7596_v30 = vshll.u32 %v10077_v40, 16  ;;  %v9497_v40 = vld [vmem:[%s12061_s9 + $0x1ec] sm:$0xf]  ;;  %v11864_v22 = vld [vmem:[%s12061_s9 + $0x240] sm:$0xff]  }
 0x193   : > { %10818 = vmatmul.mubr.msk.bf16.gmra.mrb[20].mxu1 %vm290_vm1, %v11859_v46  ;;  %v3249_v26 = vsel %vm12174_vm4, %v3244_v48, %v3248_v61  ;;  %v7583_v29 = vor.u32 %v7582_v12, %v7579_v11  ;;  %v7592_v32 = vrot.slane %v7590_v21, 4  ;;  %v3261_v33 = vshrl.u32 %v9494_v13, 16 }
 0x194   : > { %10821 = vmatprep.mubr.msk.bf16.mxu1 %vm290_vm1, %v11861_v41  ;;  %v3254_v60 = vrot.slane %v3253_v19, 4  ;;  %v3264_v34 = vshll.u32 %v9494_v13, 16  ;;  %v7598_v37 = vrot.slane %v7596_v30, 5  ;;  %v3270_v27 = vshll.u32 %v9495_v23, 16  ;;  %v9498_v13 = vld [vmem:[%s12061_s9 + $0x1f0] sm:$0xf] }
 0x195   : > { %v7584_v35 = vrot.slane %v7583_v29, 4  ;;  %v3274_v44 = vshrl.u32 %v9495_v23, 16  ;;  %v7593_v46 = vor.u32 %v7592_v32, %v7588_v50  ;;  %v3263_v51 = vrot.slane %v3261_v33, 4  ;;  %v11867_v23 = vld [vmem:[%s12061_s9 + $0x24c] sm:$0xff]   ;;  %v9499_v32 = vld [vmem:[%s12061_s9 + $0x1f4] sm:$0x1] }
 0x196   : > { %v3259_v56 = vsel %vm12174_vm4, %v3254_v60, %v3258_v8  ;;  %v3266_v52 = vrot.slane %v3264_v34, 5  ;;  %v3272_v55 = vrot.slane %v3270_v27, 5  ;;  %v3280_v0 = vshll.u32 %v9496_v15, 16  ;;  %v10081_v34 = vld [vmem:[%s12061_s9 + $0x1f8] sm:$0xf] }
 0x197   : > { %v13035_v54 = vcombine.low %v3249_v26, %v3259_v56  ;;  %v7589_v41 = vsel %vm12174_vm4, %v7584_v35, %v7588_v50  ;;  %v3276_v57 = vrot.slane %v3274_v44, 4  ;;  %v7594_v61 = vrot.slane %v7593_v46, 4  ;;  %v11869_v35 = vld [vmem:[%s12061_s9 + $0x264] sm:$0xff]  }
 0x198   : > { %11090 = vmatmul.mubr.msk.bf16.gmra.mrb[20].mxu0 %vm290_vm1, %v11860_v16  ;;  %v3267_v62 = vor.u32 %v3266_v52, %v3263_v51  ;;  %v7601_v10 = vshrl.u32 %v10078_v45, 16  ;;  %v7604_v2 = vshll.u32 %v10078_v45, 16  ;;  %v7610_v5 = vshll.u32 %v10079_v53, 16  ;;  %v11866_v16 = vld [vmem:[%s12061_s9 + $0x24c] sm:$0xff]  }
 0x199   : > { %11093 = vmatprep.mubr.msk.bf16.mxu0 %vm290_vm1, %v11862_v24  ;;  %v3277_v18 = vor.u32 %v3276_v57, %v3272_v55  ;;  %v7614_v6 = vshrl.u32 %v10079_v53, 16  ;;  %v7599_v48 = vsel %vm12174_vm4, %v7594_v61, %v7598_v37  ;;  %v3282_v11 = vrot.slane %v3280_v0, 5 }
 0x19a   : > { %v3268_v8 = vrot.slane %v3267_v62, 4  ;;  %v7603_v12 = vrot.slane %v7601_v10, 4  ;;  %v13048_v63 = vcombine.low %v7589_v41, %v7599_v48  ;;  %v7606_v50 = vrot.slane %v7604_v2, 5  ;;  %v11868_v2 = vld [vmem:[%s12061_s9 + $0x258] sm:$0xff]  }
 0x19b   : > { %10822 = vmatmul.mubr.msk.bf16.gmra.mrb[24].mxu1 %vm290_vm1, %v11863_v36  ;;  %v3278_v19 = vrot.slane %v3277_v18, 4  ;;  %v7612_v21 = vrot.slane %v7610_v5, 5  ;;  %v7616_v36 = vrot.slane %v7614_v6, 4  ;;  %v7620_v26 = vshll.u32 %v10080_v1, 16  ;;  %v10083_v1 = vld [vmem:[%s12061_s9 + $0x200] sm:$0x1] }
 0x19c   : > { %10825 = vmatprep.mubr.msk.bf16.mxu1 %vm290_vm1, %v11865_v31  ;;  %v3273_v24 = vsel %vm12174_vm4, %v3268_v8, %v3272_v55  ;;  %v3285_v29 = vshrl.u32 %v9497_v40, 16  ;;  %v7607_v60 = vor.u32 %v7606_v50, %v7603_v12  ;;  %v3288_v15 = vshll.u32 %v9497_v40, 16  ;;  %v10082_v31 = vld [vmem:[%s12061_s9 + $0x1fc] sm:$0xf]  ;;  %v9500_v18 = vld [vmem:[%s12061_s9 + $0x1f8] sm:$0xf] }
 0x19d   : > { %v3283_v30 = vsel %vm12174_vm4, %v3278_v19, %v3282_v11  ;;  %v3294_v33 = vshll.u32 %v9498_v13, 16  ;;  %v7617_v27 = vor.u32 %v7616_v36, %v7612_v21  ;;  %v7622_v44 = vrot.slane %v7620_v26, 5  ;;  %v9501_v48 = vld [vmem:[%s12061_s9 + $0x1fc] sm:$0xf]  ;;  %v11870_v8 = vld [vmem:[%s12061_s9 + $0x270] sm:$0xff]  }
 0x19e   : > { %v13059_v37 = vcombine.low %v3273_v24, %v3283_v30  ;;  %v3287_v45 = vrot.slane %v3285_v29, 4  ;;  %v7608_v56 = vrot.slane %v7607_v60, 4  ;;  %v3290_v46 = vrot.slane %v3288_v15, 5  ;;  %v11871_v19 = vld [vmem:[%s12061_s9 + $0x270] sm:$0xff]   ;;  %v11873_v36 = vld [vmem:[%s12061_s9 + $0x27c] sm:$0xff]  }
 0x19f   : > { %v3296_v51 = vrot.slane %v3294_v33, 5  ;;  %v3298_v52 = vshrl.u32 %v9498_v13, 16  ;;  %v7618_v53 = vrot.slane %v7617_v27, 4  ;;  %v3304_v41 = vshll.u32 %v9499_v32, 16  ;;  %v9502_v30 = vld [vmem:[%s12061_s9 + $0x200] sm:$0x1] }
 0x1a0   : > { %11094 = vmatmul.mubr.msk.bf16.gmra.mrb[24].mxu0 %vm290_vm1, %v11864_v22  ;;  %v7625_v55 = vshrl.u32 %v10081_v34, 16  ;;  %v7628_v57 = vshll.u32 %v10081_v34, 16  ;;  %v7613_v61 = vsel %vm12174_vm4, %v7608_v56, %v7612_v21  ;;  %v3291_v62 = vor.u32 %v3290_v46, %v3287_v45  ;;  %v10084_v27 = vld [vmem:[%s12061_s9 + $0x204] sm:$0xf]  ;;  %v10085_v46 = vld [vmem:[%s12061_s9 + $0x208] sm:$0xf] }
 0x1a1   : > { %11097 = vmatprep.mubr.msk.bf16.mxu0 %vm290_vm1, %v11866_v16  ;;  %v3300_v0 = vrot.slane %v3298_v52, 4  ;;  %v7634_v10 = vshll.u32 %v10082_v31, 16  ;;  %v7623_v5 = vsel %vm12174_vm4, %v7618_v53, %v7622_v44  ;;  %v3306_v6 = vrot.slane %v3304_v41, 5 }
 0x1a2   : > { %v7627_v40 = vrot.slane %v7625_v55, 4  ;;  %v7630_v22 = vrot.slane %v7628_v57, 5  ;;  %v13074_v11 = vcombine.low %v7613_v61, %v7623_v5  ;;  %v3292_v12 = vrot.slane %v3291_v62, 4  ;;  %v10086_v61 = vld [vmem:[%s12061_s9 + $0x20c] sm:$0x1] }
 0x1a3   : > { %10826 = vmatmul.mubr.msk.bf16.gmra.mrb[28].mxu1 %vm290_vm1, %v11867_v23  ;;  %v3301_v13 = vor.u32 %v3300_v0, %v3296_v51  ;;  %v7636_v16 = vrot.slane %v7634_v10, 5  ;;  %v7638_v21 = vshrl.u32 %v10082_v31, 16  ;;  %v7644_v23 = vshll.u32 %v10083_v1, 16  ;;  %v11872_v1 = vld [vmem:[%s12061_s9 + $0x27c] sm:$0xff]  }
 0x1a4   : > { %10831 = vmatprep.mubr.msk.bf16.mxu1 %vm290_vm1, %v11869_v35  ;;  %v7631_v50 = vor.u32 %v7630_v22, %v7627_v40  ;;  %v3309_v24 = vshrl.u32 %v9500_v18, 16  ;;  %v3297_v26 = vsel %vm12174_vm4, %v3292_v12, %v3296_v51  ;;  %v3312_v60 = vshll.u32 %v9500_v18, 16 }
 0x1a5   : > { %v3302_v29 = vrot.slane %v3301_v13, 4  ;;  %v3318_v32 = vshll.u32 %v9501_v48, 16  ;;  %v7640_v33 = vrot.slane %v7638_v21, 4  ;;  %v7646_v34 = vrot.slane %v7644_v23, 5  ;;  %v11875_v21 = vld [vmem:[%s12061_s9 + $0x288] sm:$0xff]  }
 0x1a6   : > { %v7632_v15 = vrot.slane %v7631_v50, 4  ;;  %v3311_v35 = vrot.slane %v3309_v24, 4  ;;  %v3314_v45 = vrot.slane %v3312_v60, 5  ;;  %v3322_v56 = vshrl.u32 %v9501_v48, 16  ;;  %v9504_v50 = vld [vmem:[%s12061_s9 + $0x208] sm:$0xf] }
 0x1a7   : > { %v3307_v44 = vsel %vm12174_vm4, %v3302_v29, %v3306_v6  ;;  %v3320_v31 = vrot.slane %v3318_v32, 5  ;;  %v7641_v53 = vor.u32 %v7640_v33, %v7636_v16  ;;  %v3328_v41 = vshll.u32 %v9502_v30, 16  ;;  %v11874_v6 = vld [vmem:[%s12061_s9 + $0x288] sm:$0xff]  }
 0x1a8   : > { %11098 = vmatmul.mubr.msk.bf16.gmra.mrb[28].mxu0 %vm290_vm1, %v11868_v2  ;;  %v13087_v51 = vcombine.low %v3297_v26, %v3307_v44  ;;  %v7637_v52 = vsel %vm12174_vm4, %v7632_v15, %v7636_v16  ;;  %v3315_v55 = vor.u32 %v3314_v45, %v3311_v35  ;;  %v3324_v57 = vrot.slane %v3322_v56, 4  ;;  %v11877_v26 = vld [vmem:[%s12061_s9 + $0x294] sm:$0xff]   ;;  %v9505_v60 = vld [vmem:[%s12061_s9 + $0x20c] sm:$0x1]  ;;  %v10087_v44 = vld [vmem:[%s12061_s9 + $0x210] sm:$0xf] }
 0x1a9   : > { %11103 = vmatprep.mubr.msk.bf16.mxu0 %vm290_vm1, %v11870_v8  ;;  %v7649_v62 = vshrl.u32 %v10084_v27, 16  ;;  %v7652_v0 = vshll.u32 %v10084_v27, 16  ;;  %v7642_v10 = vrot.slane %v7641_v53, 4  ;;  %v3330_v18 = vrot.slane %v3328_v41, 5 }
 0x1aa   : > { %v7658_v2 = vshll.u32 %v10085_v46, 16  ;;  %v7662_v5 = vshrl.u32 %v10085_v46, 16  ;;  %v3316_v40 = vrot.slane %v3315_v55, 4  ;;  %v3325_v22 = vor.u32 %v3324_v57, %v3320_v31  ;;  %v10088_v46 = vld [vmem:[%s12061_s9 + $0x214] sm:$0xf] }
 0x1ab   : > { %10832 = vmatmul.mubr.msk.bf16.vlgmr.msra.gmra.mrb[0].mxu1 %vm290_vm1, %v11871_v19  ;;  %v7651_v48 = vrot.slane %v7649_v62, 4  ;;  %v7654_v8 = vrot.slane %v7652_v0, 5  ;;  %v7647_v12 = vsel %vm12174_vm4, %v7642_v10, %v7646_v34  ;;  %v7668_v19 = vshll.u32 %v10086_v61, 16  ;;  %v10089_v62 = vld [vmem:[%s12061_s9 + $0x218] sm:$0x1] }
 0x1ac   : > { %10864 = vmatpush3.bf16.msra.mxu1 %v12845_v42  ;;  %10835 = vmatprep.mubr.msk.bf16.mxu1 %vm290_vm1, %v11873_v36  ;;  %v9503_v42 = vld [vmem:[%s12061_s9 + $0x204] sm:$0xf]  ;;  %v7660_v13 = vrot.slane %v7658_v2, 5  ;;  %v7664_v16 = vrot.slane %v7662_v5, 4  ;;  %v13104_v23 = vcombine.low %v7637_v52, %v7647_v12  ;;  %v3326_v24 = vrot.slane %v3325_v22, 4  ;;  %v11876_v52 = vld [vmem:[%s12061_s9 + $0x294] sm:$0xff]  }
 0x1ad   : > { %11722 = vmatprep.subr.msk.bf16.mxu1 %vm339_vm0, %v12877_v25  ;;  %v3321_v25 = vsel %vm12174_vm4, %v3316_v40, %v3320_v31  ;;  %v7655_v36 = vor.u32 %v7654_v8, %v7651_v48  ;;  %v7670_v30 = vrot.slane %v7668_v19, 5  ;;  %v3333_v32 = vshrl.u32 %v9503_v42, 16  ;;  %v9506_v10 = vld [vmem:[%s12061_s9 + $0x210] sm:$0xf]  ;;  %v9507_v12 = vld [vmem:[%s12061_s9 + $0x214] sm:$0xf] }
 0x1ae   : > { %v7665_v29 = vor.u32 %v7664_v16, %v7660_v13  ;;  %v3336_v15 = vshll.u32 %v9503_v42, 16  ;;  %v3331_v33 = vsel %vm12174_vm4, %v3326_v24, %v3330_v18  ;;  %v3342_v35 = vshll.u32 %v9504_v50, 16  ;;  %v11878_v18 = vld [vmem:[%s12061_s9 + $0x2a0] sm:$0xff]   ;;  %v11881_v16 = vld [vmem:[%s12061_s9 + $0x2ac] sm:$0xff]  }
 0x1af   : > { %v7656_v34 = vrot.slane %v7655_v36, 4  ;;  %v3346_v27 = vshrl.u32 %v9504_v50, 16  ;;  %v13118_v45 = vcombine.low %v3321_v25, %v3331_v33  ;;  %v3335_v56 = vrot.slane %v3333_v32, 4 }
 0x1b0   : > { %11104 = vmatmul.mubr.msk.bf16.vlgmr.msra.gmra.mrb[0].mxu0 %vm290_vm1, %v11872_v1  ;;  %v7666_v31 = vrot.slane %v7665_v29, 4  ;;  %v3344_v41 = vrot.slane %v3342_v35, 5  ;;  %v3352_v57 = vshll.u32 %v9505_v60, 16  ;;  %v7673_v0 = vshrl.u32 %v10087_v44, 16  ;;  %v9508_v29 = vld [vmem:[%s12061_s9 + $0x218] sm:$0x1] }
 0x1b1   : > { %11136 = vmatpush3.bf16.msra.mxu0 %v12856_v9  ;;  %11107 = vmatprep.mubr.msk.bf16.mxu0 %vm290_vm1, %v11874_v6  ;;  %v3338_v9 = vrot.slane %v3336_v15, 5  ;;  %v7661_v53 = vsel %vm12174_vm4, %v7656_v34, %v7660_v13  ;;  %v3348_v55 = vrot.slane %v3346_v27, 4  ;;  %v7676_v1 = vshll.u32 %v10087_v44, 16  ;;  %v11879_v13 = vld [vmem:[%s12061_s9 + $0x2a0] sm:$0xff]   ;;  %v10090_v60 = vld [vmem:[%s12061_s9 + $0x21c] sm:$0xf] }
 0x1b2   : > { %11730 = vmatprep.subr.msk.bf16.mxu0 %vm339_vm0, %v12904_v58  ;;  %v7671_v58 = vsel %vm12174_vm4, %v7666_v31, %v7670_v30  ;;  %v3354_v6 = vrot.slane %v3352_v57, 5  ;;  %v7682_v40 = vshll.u32 %v10088_v46, 16  ;;  %v7675_v48 = vrot.slane %v7673_v0, 4 }
 0x1b3   : > { %10836 = vmatmul.mubr.msk.bf16.gmra.mrb[4].mxu1 %vm290_vm1, %v11875_v21  ;;  %v3339_v61 = vor.u32 %v3338_v9, %v3335_v56  ;;  %v13131_v2 = vcombine.low %v7661_v53, %v7671_v58  ;;  %v3349_v5 = vor.u32 %v3348_v55, %v3344_v41  ;;  %v7678_v8 = vrot.slane %v7676_v1, 5  ;;  %v10091_v56 = vld [vmem:[%s12061_s9 + $0x220] sm:$0xf]  ;;  %v11882_v55 = vld [vmem:[%s12061_s9 + $0x2b8] sm:$0xff]  }
 0x1b4   : > { %10839 = vmatprep.mubr.msk.bf16.mxu1 %vm290_vm1, %v11877_v26  ;;  %v7686_v42 = vshrl.u32 %v10088_v46, 16  ;;  %v7684_v50 = vrot.slane %v7682_v40, 5  ;;  %v7692_v21 = vshll.u32 %v10089_v62, 16  ;;  %v3357_v25 = vshrl.u32 %v9506_v10, 16  ;;  %v10092_v62 = vld [vmem:[%s12061_s9 + $0x224] sm:$0x1] }
 0x1b5   : > { %v3340_v22 = vrot.slane %v3339_v61, 4  ;;  %v3350_v19 = vrot.slane %v3349_v5, 4  ;;  %v7679_v36 = vor.u32 %v7678_v8, %v7675_v48  ;;  %v3360_v30 = vshll.u32 %v9506_v10, 16 }
 0x1b6   : > { %v7688_v26 = vrot.slane %v7686_v42, 4  ;;  %v7694_v15 = vrot.slane %v7692_v21, 5  ;;  %v3359_v33 = vrot.slane %v3357_v25, 4  ;;  %v3366_v34 = vshll.u32 %v9507_v12, 16  ;;  %v9510_v42 = vld [vmem:[%s12061_s9 + $0x220] sm:$0xf] }
 0x1b7   : > { %v3345_v24 = vsel %vm12174_vm4, %v3340_v22, %v3344_v41  ;;  %v3355_v32 = vsel %vm12174_vm4, %v3350_v19, %v3354_v6  ;;  %v7680_v27 = vrot.slane %v7679_v36, 4  ;;  %v3362_v31 = vrot.slane %v3360_v30, 5  ;;  %v11880_v41 = vld [vmem:[%s12061_s9 + $0x2ac] sm:$0xff]   ;;  %v9509_v6 = vld [vmem:[%s12061_s9 + $0x21c] sm:$0xf]  ;;  %v11885_v21 = vld [vmem:[%s12061_s9 + $0x2c4] sm:$0xff]  }
 0x1b8   : > { %11108 = vmatmul.mubr.msk.bf16.gmra.mrb[4].mxu0 %vm290_vm1, %v11876_v52  ;;  %v13144_v35 = vcombine.low %v3345_v24, %v3355_v32  ;;  %v7689_v44 = vor.u32 %v7688_v26, %v7684_v50  ;;  %v3368_v9 = vrot.slane %v3366_v34, 5  ;;  %v3370_v46 = vshrl.u32 %v9507_v12, 16  ;;  %v11883_v12 = vld [vmem:[%s12061_s9 + $0x2b8] sm:$0xff]   ;;  %v9511_v26 = vld [vmem:[%s12061_s9 + $0x224] sm:$0x1] }
 0x1b9   : > { %11111 = vmatprep.mubr.msk.bf16.mxu0 %vm290_vm1, %v11878_v18  ;;  %v3376_v52 = vshll.u32 %v9508_v29, 16  ;;  %v7697_v53 = vshrl.u32 %v10090_v60, 16  ;;  %v7685_v57 = vsel %vm12174_vm4, %v7680_v27, %v7684_v50  ;;  %v3363_v61 = vor.u32 %v3362_v31, %v3359_v33  ;;  %v10093_v31 = vld [vmem:[%s12061_s9 + $0x228] sm:$0xf] }
 0x1ba   : > { %v7690_v58 = vrot.slane %v7689_v44, 4  ;;  %v7700_v0 = vshll.u32 %v10090_v60, 16  ;;  %v3372_v1 = vrot.slane %v3370_v46, 4  ;;  %v7706_v5 = vshll.u32 %v10091_v56, 16 }
 0x1bb   : > { %10840 = vmatmul.mubr.msk.bf16.gmra.mrb[8].mxu1 %vm290_vm1, %v11879_v13  ;;  %v3378_v10 = vrot.slane %v3376_v52, 5  ;;  %v7699_v18 = vrot.slane %v7697_v53, 4  ;;  %v3364_v22 = vrot.slane %v3363_v61, 4  ;;  %v7710_v8 = vshrl.u32 %v10091_v56, 16  ;;  %v10094_v53 = vld [vmem:[%s12061_s9 + $0x22c] sm:$0xf] }
 0x1bc   : > { %10843 = vmatprep.mubr.msk.bf16.mxu1 %vm290_vm1, %v11881_v16  ;;  %v7695_v40 = vsel %vm12174_vm4, %v7690_v58, %v7694_v15  ;;  %v7702_v48 = vrot.slane %v7700_v0, 5  ;;  %v3373_v16 = vor.u32 %v3372_v1, %v3368_v9  ;;  %v7708_v19 = vrot.slane %v7706_v5, 5 }
 0x1bd   : > { %v13159_v13 = vcombine.low %v7685_v57, %v7695_v40  ;;  %v7716_v50 = vshll.u32 %v10092_v62, 16  ;;  %v3369_v25 = vsel %vm12174_vm4, %v3364_v22, %v3368_v9  ;;  %v7712_v36 = vrot.slane %v7710_v8, 4  ;;  %v11886_v62 = vld [vmem:[%s12061_s9 + $0x2d0] sm:$0xff]   ;;  %v9512_v8 = vld [vmem:[%s12061_s9 + $0x228] sm:$0xf] }
 0x1be   : > { %v7703_v24 = vor.u32 %v7702_v48, %v7699_v18  ;;  %v3381_v29 = vshrl.u32 %v9509_v6, 16  ;;  %v3374_v30 = vrot.slane %v3373_v16, 4  ;;  %v3384_v32 = vshll.u32 %v9509_v6, 16 }
 0x1bf   : > { %v7718_v60 = vrot.slane %v7716_v50, 5  ;;  %v3390_v15 = vshll.u32 %v9510_v42, 16  ;;  %v7713_v34 = vor.u32 %v7712_v36, %v7708_v19  ;;  %v3394_v44 = vshrl.u32 %v9510_v42, 16  ;;  %v11887_v42 = vld [vmem:[%s12061_s9 + $0x2d0] sm:$0xff]  }
 0x1c0   : > { %11112 = vmatmul.mubr.msk.bf16.gmra.mrb[8].mxu0 %vm290_vm1, %v11880_v41  ;;  %v7704_v33 = vrot.slane %v7703_v24, 4  ;;  %v3383_v27 = vrot.slane %v3381_v29, 4  ;;  %v3379_v56 = vsel %vm12174_vm4, %v3374_v30, %v3378_v10  ;;  %v3386_v9 = vrot.slane %v3384_v32, 5  ;;  %v11884_v41 = vld [vmem:[%s12061_s9 + $0x2c4] sm:$0xff]   ;;  %v10095_v10 = vld [vmem:[%s12061_s9 + $0x230] sm:$0x1] }
 0x1c1   : > { %11115 = vmatprep.mubr.msk.bf16.mxu0 %vm290_vm1, %v11882_v55  ;;  %v3392_v46 = vrot.slane %v3390_v15, 5  ;;  %v3400_v52 = vshll.u32 %v9511_v26, 16  ;;  %v13174_v55 = vcombine.low %v3369_v25, %v3379_v56  ;;  %v7714_v58 = vrot.slane %v7713_v34, 4  ;;  %v11889_v25 = vld [vmem:[%s12061_s9 + $0x2dc] sm:$0xff]   ;;  %v9514_v32 = vld [vmem:[%s12061_s9 + $0x230] sm:$0x1] }
 0x1c2   : > { %v7709_v57 = vsel %vm12174_vm4, %v7704_v33, %v7708_v19  ;;  %v3396_v61 = vrot.slane %v3394_v44, 4  ;;  %v3387_v0 = vor.u32 %v3386_v9, %v3383_v27  ;;  %v7721_v18 = vshrl.u32 %v10093_v31, 16  ;;  %v10096_v56 = vld [vmem:[%s12061_s9 + $0x234] sm:$0xf] }
 0x1c3   : > { %10844 = vmatmul.mubr.msk.bf16.gmra.mrb[12].mxu1 %vm290_vm1, %v11883_v12  ;;  %v3402_v1 = vrot.slane %v3400_v52, 5  ;;  %v7724_v5 = vshll.u32 %v10093_v31, 16  ;;  %v7719_v6 = vsel %vm12174_vm4, %v7714_v58, %v7718_v60  ;;  %v7730_v22 = vshll.u32 %v10094_v53, 16 }
 0x1c4   : > { %10847 = vmatprep.mubr.msk.bf16.mxu1 %vm290_vm1, %v11885_v21  ;;  %v3397_v40 = vor.u32 %v3396_v61, %v3392_v46  ;;  %v7734_v48 = vshrl.u32 %v10094_v53, 16  ;;  %v13184_v12 = vcombine.low %v7709_v57, %v7719_v6  ;;  %v3388_v16 = vrot.slane %v3387_v0, 4  ;;  %v9513_v21 = vld [vmem:[%s12061_s9 + $0x22c] sm:$0xf]  ;;  %v11888_v57 = vld [vmem:[%s12061_s9 + $0x2dc] sm:$0xff]  }
 0x1c5   : > { %v7723_v19 = vrot.slane %v7721_v18, 4  ;;  %v7726_v50 = vrot.slane %v7724_v5, 5  ;;  %v7732_v36 = vrot.slane %v7730_v22, 5  ;;  %v7740_v29 = vshll.u32 %v10095_v10, 16  ;;  %v10098_v5 = vld [vmem:[%s12061_s9 + $0x23c] sm:$0x1] }
 0x1c6   : > { %v3398_v24 = vrot.slane %v3397_v40, 4  ;;  %v7736_v26 = vrot.slane %v7734_v48, 4  ;;  %v3393_v30 = vsel %vm12174_vm4, %v3388_v16, %v3392_v46  ;;  %v3405_v15 = vshrl.u32 %v9512_v8, 16  ;;  %v9515_v16 = vld [vmem:[%s12061_s9 + $0x234] sm:$0xf] }
 0x1c7   : > { %v7727_v60 = vor.u32 %v7726_v50, %v7723_v19  ;;  %v3408_v33 = vshll.u32 %v9512_v8, 16  ;;  %v7742_v44 = vrot.slane %v7740_v29, 5  ;;  %v3414_v31 = vshll.u32 %v9513_v21, 16  ;;  %v11891_v19 = vld [vmem:[%s12061_s9 + $0x2e8] sm:$0xff]  }
 0x1c8   : > { %11116 = vmatmul.mubr.msk.bf16.gmra.mrb[12].mxu0 %vm290_vm1, %v11884_v41  ;;  %v3403_v34 = vsel %vm12174_vm4, %v3398_v24, %v3402_v1  ;;  %v7737_v27 = vor.u32 %v7736_v26, %v7732_v36  ;;  %v3407_v46 = vrot.slane %v3405_v15, 4  ;;  %v10097_v41 = vld [vmem:[%s12061_s9 + $0x238] sm:$0xf]  ;;  %v3424_v0 = vshll.u32 %v9514_v32, 16  ;;  %v11890_v1 = vld [vmem:[%s12061_s9 + $0x2e8] sm:$0xff]  }
 0x1c9   : > { %11119 = vmatprep.mubr.msk.bf16.mxu0 %vm290_vm1, %v11886_v62  ;;  %v13197_v9 = vcombine.low %v3393_v30, %v3403_v34  ;;  %v7728_v52 = vrot.slane %v7727_v60, 4  ;;  %v3410_v53 = vrot.slane %v3408_v33, 5  ;;  %v3416_v61 = vrot.slane %v3414_v31, 5  ;;  %v11893_v26 = vld [vmem:[%s12061_s9 + $0x2f4] sm:$0xff]   ;;  %v9517_v34 = vld [vmem:[%s12061_s9 + $0x23c] sm:$0x1] }
 0x1ca   : > { %v7738_v58 = vrot.slane %v7737_v27, 4  ;;  %v3418_v62 = vshrl.u32 %v9513_v21, 16  ;;  %v7745_v6 = vshrl.u32 %v10096_v56, 16  ;;  %v7748_v40 = vshll.u32 %v10096_v56, 16 }
 0x1cb   : > { %10848 = vmatmul.mubr.msk.bf16.gmra.mrb[16].mxu1 %vm290_vm1, %v11887_v42  ;;  %v7733_v10 = vsel %vm12174_vm4, %v7728_v52, %v7732_v36  ;;  %v3411_v18 = vor.u32 %v3410_v53, %v3407_v46  ;;  %v3426_v8 = vrot.slane %v3424_v0, 5  ;;  %v7754_v42 = vshll.u32 %v10097_v41, 16  ;;  %v9516_v36 = vld [vmem:[%s12061_s9 + $0x238] sm:$0xf] }
 0x1cc   : > { %10851 = vmatprep.mubr.msk.bf16.mxu1 %vm290_vm1, %v11889_v25  ;;  %v7743_v22 = vsel %vm12174_vm4, %v7738_v58, %v7742_v44  ;;  %v3420_v48 = vrot.slane %v3418_v62, 4  ;;  %v7747_v25 = vrot.slane %v7745_v6, 4  ;;  %v7750_v24 = vrot.slane %v7748_v40, 5  ;;  %v10099_v62 = vld [vmem:[%s12061_s9 + $0x240] sm:$0xf]  ;;  %v11892_v0 = vld [vmem:[%s12061_s9 + $0x2f4] sm:$0xff]  }
 0x1cd   : > { %v13210_v50 = vcombine.low %v7733_v10, %v7743_v22  ;;  %v3412_v21 = vrot.slane %v3411_v18, 4  ;;  %v7756_v30 = vrot.slane %v7754_v42, 5  ;;  %v7758_v60 = vshrl.u32 %v10097_v41, 16  ;;  %v11894_v6 = vld [vmem:[%s12061_s9 + $0x300] sm:$0xff]  }
 0x1ce   : > { %v3421_v29 = vor.u32 %v3420_v48, %v3416_v61  ;;  %v7764_v32 = vshll.u32 %v10098_v5, 16  ;;  %v7751_v33 = vor.u32 %v7750_v24, %v7747_v25  ;;  %v3429_v27 = vshrl.u32 %v9515_v16, 16  ;;  %v10100_v5 = vld [vmem:[%s12061_s9 + $0x244] sm:$0xf] }
 0x1cf   : > { %v3417_v15 = vsel %vm12174_vm4, %v3412_v21, %v3416_v61  ;;  %v3432_v44 = vshll.u32 %v9515_v16, 16  ;;  %v7760_v56 = vrot.slane %v7758_v60, 4  ;;  %v3438_v46 = vshll.u32 %v9516_v36, 16  ;;  %v10101_v16 = vld [vmem:[%s12061_s9 + $0x248] sm:$0x1]  ;;  %v11895_v24 = vld [vmem:[%s12061_s9 + $0x300] sm:$0xff]  }
 0x1d0   : > { %11120 = vmatmul.mubr.msk.bf16.gmra.mrb[16].mxu0 %vm290_vm1, %v11888_v57  ;;  %v3422_v31 = vrot.slane %v3421_v29, 4  ;;  %v7766_v52 = vrot.slane %v7764_v32, 5  ;;  %v7752_v53 = vrot.slane %v7751_v33, 4  ;;  %v3431_v41 = vrot.slane %v3429_v27, 4  ;;  %v9518_v32 = vld [vmem:[%s12061_s9 + $0x240] sm:$0xf] }
 0x1d1   : > { %11123 = vmatprep.mubr.msk.bf16.mxu0 %vm290_vm1, %v11890_v1  ;;  %v3434_v57 = vrot.slane %v3432_v44, 5  ;;  %v3442_v58 = vshrl.u32 %v9516_v36, 16  ;;  %v7761_v1 = vor.u32 %v7760_v56, %v7756_v30  ;;  %v3440_v10 = vrot.slane %v3438_v46, 5  ;;  %v9519_v44 = vld [vmem:[%s12061_s9 + $0x244] sm:$0xf] }
 0x1d2   : > { %v3427_v61 = vsel %vm12174_vm4, %v3422_v31, %v3426_v8  ;;  %v3448_v18 = vshll.u32 %v9517_v34, 16  ;;  %v7757_v22 = vsel %vm12174_vm4, %v7752_v53, %v7756_v30  ;;  %v7769_v25 = vshrl.u32 %v10099_v62, 16 }
 0x1d3   : > { %10852 = vmatmul.mubr.msk.bf16.gmra.mrb[20].mxu1 %vm290_vm1, %v11891_v19  ;;  %v13227_v40 = vcombine.low %v3417_v15, %v3427_v61  ;;  %v3435_v48 = vor.u32 %v3434_v57, %v3431_v41  ;;  %v3444_v42 = vrot.slane %v3442_v58, 4  ;;  %v7762_v19 = vrot.slane %v7761_v1, 4  ;;  %v11897_v15 = vld [vmem:[%s12061_s9 + $0x30c] sm:$0xff]  }
 0x1d4   : > { %10855 = vmatprep.mubr.msk.bf16.mxu1 %vm290_vm1, %v11893_v26  ;;  %v3450_v21 = vrot.slane %v3448_v18, 5  ;;  %v7772_v8 = vshll.u32 %v10099_v62, 16  ;;  %v7778_v29 = vshll.u32 %v10100_v5, 16  ;;  %v7782_v60 = vshrl.u32 %v10100_v5, 16  ;;  %v10102_v5 = vld [vmem:[%s12061_s9 + $0x24c] sm:$0xf] }
 0x1d5   : > { %v3436_v36 = vrot.slane %v3435_v48, 4  ;;  %v3445_v26 = vor.u32 %v3444_v42, %v3440_v10  ;;  %v7767_v30 = vsel %vm12174_vm4, %v7762_v19, %v7766_v52  ;;  %v7771_v33 = vrot.slane %v7769_v25, 4  ;;  %v9520_v52 = vld [vmem:[%s12061_s9 + $0x248] sm:$0x1]  ;;  %v11898_v19 = vld [vmem:[%s12061_s9 + $0x318] sm:$0xff]  }
 0x1d6   : > { %v7774_v34 = vrot.slane %v7772_v8, 5  ;;  %v7788_v27 = vshll.u32 %v10101_v16, 16  ;;  %v13240_v31 = vcombine.low %v7757_v22, %v7767_v30  ;;  %v7780_v53 = vrot.slane %v7778_v29, 5  ;;  %v10103_v16 = vld [vmem:[%s12061_s9 + $0x250] sm:$0xf] }
 0x1d7   : > { %v3441_v56 = vsel %vm12174_vm4, %v3436_v36, %v3440_v10  ;;  %v3446_v46 = vrot.slane %v3445_v26, 4  ;;  %v7784_v57 = vrot.slane %v7782_v60, 4  ;;  %v3453_v62 = vshrl.u32 %v9518_v32, 16  ;;  %v11896_v10 = vld [vmem:[%s12061_s9 + $0x30c] sm:$0xff]   ;;  %v11899_v36 = vld [vmem:[%s12061_s9 + $0x318] sm:$0xff]  }
 0x1d8   : > { %11124 = vmatmul.mubr.msk.bf16.gmra.mrb[20].mxu0 %vm290_vm1, %v11892_v0  ;;  %v7775_v41 = vor.u32 %v7774_v34, %v7771_v33  ;;  %v7790_v58 = vrot.slane %v7788_v27, 5  ;;  %v3456_v61 = vshll.u32 %v9518_v32, 16  ;;  %v3462_v1 = vshll.u32 %v9519_v44, 16  ;;  %v10104_v34 = vld [vmem:[%s12061_s9 + $0x254] sm:$0x1] }
 0x1d9   : > { %11127 = vmatprep.mubr.msk.bf16.mxu0 %vm290_vm1, %v11894_v6  ;;  %v3451_v0 = vsel %vm12174_vm4, %v3446_v46, %v3450_v21  ;;  %v3466_v18 = vshrl.u32 %v9519_v44, 16  ;;  %v7785_v48 = vor.u32 %v7784_v57, %v7780_v53  ;;  %v3455_v42 = vrot.slane %v3453_v62, 4  ;;  %v9521_v44 = vld [vmem:[%s12061_s9 + $0x24c] sm:$0xf] }
 0x1da   : > { %v13251_v6 = vcombine.low %v3441_v56, %v3451_v0  ;;  %v7776_v22 = vrot.slane %v7775_v41, 4  ;;  %v3458_v25 = vrot.slane %v3456_v61, 5  ;;  %v3464_v8 = vrot.slane %v3462_v1, 5 }
 0x1db   : > { %10856 = vmatmul.mubr.msk.bf16.gmra.mrb[24].mxu1 %vm290_vm1, %v11895_v24  ;;  %v3468_v21 = vrot.slane %v3466_v18, 4  ;;  %v3472_v24 = vshll.u32 %v9520_v52, 16  ;;  %v7786_v29 = vrot.slane %v7785_v48, 4  ;;  %v7793_v60 = vshrl.u32 %v10102_v5, 16  ;;  %v9522_v52 = vld [vmem:[%s12061_s9 + $0x250] sm:$0xf] }
 0x1dc   : > { %10859 = vmatprep.mubr.msk.bf16.mxu1 %vm290_vm1, %v11897_v15  ;;  %v7781_v26 = vsel %vm12174_vm4, %v7776_v22, %v7780_v53  ;;  %v7796_v32 = vshll.u32 %v10102_v5, 16  ;;  %v3459_v15 = vor.u32 %v3458_v25, %v3455_v42  ;;  %v7802_v27 = vshll.u32 %v10103_v16, 16  ;;  %v9523_v48 = vld [vmem:[%s12061_s9 + $0x254] sm:$0x1]  ;;  %v11900_v25 = vld [vmem:[%s12061_s9 + $0x324] sm:$0xff]  }
 0x1dd   : > { %v3469_v30 = vor.u32 %v3468_v21, %v3464_v8  ;;  %v3474_v33 = vrot.slane %v3472_v24, 5  ;;  %v7791_v56 = vsel %vm12174_vm4, %v7786_v29, %v7790_v58  ;;  %v7795_v46 = vrot.slane %v7793_v60, 4  ;;  %v10106_v29 = vld [vmem:[%s12061_s9 + $0x25c] sm:$0xf] }
 0x1de   : > { %v7798_v41 = vrot.slane %v7796_v32, 5  ;;  %v7806_v57 = vshrl.u32 %v10103_v16, 16  ;;  %v13265_v53 = vcombine.low %v7781_v26, %v7791_v56  ;;  %v3460_v62 = vrot.slane %v3459_v15, 4 }
 0x1df   : > { %v3470_v0 = vrot.slane %v3469_v30, 4  ;;  %v7804_v61 = vrot.slane %v7802_v27, 5  ;;  %v7812_v5 = vshll.u32 %v10104_v34, 16  ;;  %v3480_v42 = vshll.u32 %v9521_v44, 16  ;;  %v10107_v27 = vld [vmem:[%s12061_s9 + $0x260] sm:$0x1] }
 0x1e0   : > { %11128 = vmatmul.mubr.msk.bf16.gmra.mrb[24].mxu0 %vm290_vm1, %v11896_v10  ;;  %v7799_v1 = vor.u32 %v7798_v41, %v7795_v46  ;;  %v7808_v18 = vrot.slane %v7806_v57, 4  ;;  %v3477_v10 = vshrl.u32 %v9521_v44, 16  ;;  %v3465_v58 = vsel %vm12174_vm4, %v3460_v62, %v3464_v8  ;;  %v9557_v57 = vld [vmem:[%s12061_s9 + $0x264] sm:$0xf] }
 0x1e1   : > { %11131 = vmatprep.mubr.msk.bf16.mxu0 %vm290_vm1, %v11898_v19  ;;  %v3475_v22 = vsel %vm12174_vm4, %v3470_v0, %v3474_v33  ;;  %v3486_v16 = vshll.u32 %v9522_v52, 16  ;;  %v10105_v19 = vld [vmem:[%s12061_s9 + $0x258] sm:$0xf]  ;;  %v3482_v60 = vrot.slane %v3480_v42, 5  ;;  %v3490_v15 = vshrl.u32 %v9522_v52, 16 }
 0x1e2   : > { %v13277_v21 = vcombine.low %v3465_v58, %v3475_v22  ;;  %v7800_v24 = vrot.slane %v7799_v1, 4  ;;  %v7809_v26 = vor.u32 %v7808_v18, %v7804_v61  ;;  %v3479_v8 = vrot.slane %v3477_v10, 4  ;;  %v9558_v58 = vld [vmem:[%s12061_s9 + $0x268] sm:$0xf] }
 0x1e3   : > { %10860 = vmatmul.mubr.msk.bf16.gmra.mrb[28].mxu1 %vm290_vm1, %v11899_v36  ;;  %v7814_v36 = vrot.slane %v7812_v5, 5  ;;  %v3488_v32 = vrot.slane %v3486_v16, 5  ;;  %v3496_v34 = vshll.u32 %v9523_v48, 16  ;;  %v7817_v44 = vshrl.u32 %v10105_v19, 16 }
 0x1e4   : > { %10865 = vmatprep.mubr.msk.bf16.mxu1 %vm290_vm1, %v12885_v39  ;;  %v7805_v30 = vsel %vm12174_vm4, %v7800_v24, %v7804_v61  ;;  %v7810_v33 = vrot.slane %v7809_v26, 4  ;;  %v3483_v39 = vor.u32 %v3482_v60, %v3479_v8  ;;  %v3492_v56 = vrot.slane %v3490_v15, 4  ;;  %v9559_v24 = vld [vmem:[%s12061_s9 + $0x26c] sm:$0x1]  ;;  %v10141_v15 = vld [vmem:[%s12061_s9 + $0x270] sm:$0xf] }
 0x1e5   : > { %v7820_v46 = vshll.u32 %v10105_v19, 16  ;;  %v7826_v41 = vshll.u32 %v10106_v29, 16  ;;  %v3498_v0 = vrot.slane %v3496_v34, 5  ;;  %v7819_v52 = vrot.slane %v7817_v44, 4  ;;  %v10142_v34 = vld [vmem:[%s12061_s9 + $0x274] sm:$0xf] }
 0x1e6   : > { %v7815_v62 = vsel %vm12174_vm4, %v7810_v33, %v7814_v36  ;;  %v7830_v1 = vshrl.u32 %v10106_v29, 16  ;;  %v3484_v18 = vrot.slane %v3483_v39, 4  ;;  %v3493_v5 = vor.u32 %v3492_v56, %v3488_v32 }
 0x1e7   : > { %v13289_v61 = vcombine.low %v7805_v30, %v7815_v62  ;;  %v7822_v10 = vrot.slane %v7820_v46, 5  ;;  %v7828_v22 = vrot.slane %v7826_v41, 5  ;;  %v7836_v42 = vshll.u32 %v10107_v27, 16  ;;  %v10143_v41 = vld [vmem:[%s12061_s9 + $0x278] sm:$0x1] }
 0x1e8   : > { %11132 = vmatmul.mubr.msk.bf16.gmra.mrb[28].mxu0 %vm290_vm1, %v11900_v25  ;;  %v7832_v48 = vrot.slane %v7830_v1, 4  ;;  %v3843_v16 = vshrl.u32 %v9557_v57, 16  ;;  %v3489_v19 = vsel %vm12174_vm4, %v3484_v18, %v3488_v32  ;;  %v3494_v25 = vrot.slane %v3493_v5, 4  ;;  %v9560_v18 = vld [vmem:[%s12061_s9 + $0x270] sm:$0xf] }
 0x1e9   : > { %11137 = vmatprep.mubr.msk.bf16.mxu0 %vm290_vm1, %v12909_v38  ;;  %v7823_v38 = vor.u32 %v7822_v10, %v7819_v52  ;;  %v3846_v26 = vshll.u32 %v9557_v57, 16  ;;  %v7838_v29 = vrot.slane %v7836_v42, 5  ;;  %v3852_v60 = vshll.u32 %v9558_v58, 16 }
 0x1ea   : > { %v7833_v36 = vor.u32 %v7832_v48, %v7828_v22  ;;  %v3845_v8 = vrot.slane %v3843_v16, 4  ;;  %v3856_v33 = vshrl.u32 %v9558_v58, 16  ;;  %v3862_v39 = vshll.u32 %v9559_v24, 16  ;;  %v9561_v48 = vld [vmem:[%s12061_s9 + $0x274] sm:$0xf] }
 0x1eb   : > { %10866 = vmatmul.mubr.msk.bf16.vlgmr.msra.gmra.mrb[0].mxu1 %vm290_vm1, %v12926_v17  ;;  %v3499_v17 = vsel %vm12174_vm4, %v3494_v25, %v3498_v0  ;;  %v7824_v32 = vrot.slane %v7823_v38, 4  ;;  %v3848_v30 = vrot.slane %v3846_v26, 5  ;;  %v3854_v44 = vrot.slane %v3852_v60, 5  ;;  %v10144_v60 = vld [vmem:[%s12061_s9 + $0x27c] sm:$0xf] }
 0x1ec   : > { %10898 = vmatpush3.bf16.msra.mxu1 %v12893_v3  ;;  %10869 = vmatprep.mubr.msk.bf16.mxu1 %vm290_vm1, %v12954_v49  ;;  %v13304_v27 = vcombine.low %v3489_v19, %v3499_v17  ;;  %v7834_v3 = vrot.slane %v7833_v36, 4  ;;  %v3858_v46 = vrot.slane %v3856_v33, 4  ;;  %v8183_v57 = vshrl.u32 %v10141_v15, 16 }
 0x1ed   : > { %v7829_v49 = vsel %vm12174_vm4, %v7824_v32, %v7828_v22  ;;  %v3849_v56 = vor.u32 %v3848_v30, %v3845_v8  ;;  %v3864_v0 = vrot.slane %v3862_v39, 5  ;;  %v8186_v52 = vshll.u32 %v10141_v15, 16  ;;  %v10145_v30 = vld [vmem:[%s12061_s9 + $0x280] sm:$0xf] }
 0x1ee   : > { %v7839_v62 = vsel %vm12174_vm4, %v7834_v3, %v7838_v29  ;;  %v8192_v1 = vshll.u32 %v10142_v34, 16  ;;  %v3859_v58 = vor.u32 %v3858_v46, %v3854_v44  ;;  %v8185_v22 = vrot.slane %v8183_v57, 4  ;;  %v10146_v57 = vld [vmem:[%s12061_s9 + $0x284] sm:$0x1] }
 0x1ef   : > { %v13317_v5 = vcombine.low %v7829_v49, %v7839_v62  ;;  %v3850_v10 = vrot.slane %v3849_v56, 4  ;;  %v8196_v16 = vshrl.u32 %v10142_v34, 16  ;;  %v8202_v19 = vshll.u32 %v10143_v41, 16 }
 0x1f0   : > { %11138 = vmatmul.mubr.msk.bf16.vlgmr.msra.gmra.mrb[0].mxu0 %vm290_vm1, %v12939_v43  ;;  %v8188_v43 = vrot.slane %v8186_v52, 5  ;;  %v8194_v42 = vrot.slane %v8192_v1, 5  ;;  %v3860_v25 = vrot.slane %v3859_v58, 4  ;;  %v3867_v38 = vshrl.u32 %v9560_v18, 16  ;;  %v9563_v58 = vld [vmem:[%s12061_s9 + $0x27c] sm:$0xf] }
 0x1f1   : > { %11170 = vmatpush3.bf16.msra.mxu0 %v12919_v7  ;;  %11141 = vmatprep.mubr.msk.bf16.mxu0 %vm290_vm1, %v12969_v59  ;;  %v3855_v7 = vsel %vm12174_vm4, %v3850_v10, %v3854_v44  ;;  %v9562_v59 = vld [vmem:[%s12061_s9 + $0x278] sm:$0x1]  ;;  %v3870_v24 = vshll.u32 %v9560_v18, 16  ;;  %v8198_v36 = vrot.slane %v8196_v16, 4  ;;  %v8204_v29 = vrot.slane %v8202_v19, 5 }
 0x1f2   : > { %v8189_v26 = vor.u32 %v8188_v43, %v8185_v22  ;;  %v3876_v8 = vshll.u32 %v9561_v48, 16  ;;  %v3865_v15 = vsel %vm12174_vm4, %v3860_v25, %v3864_v0  ;;  %v3880_v32 = vshrl.u32 %v9561_v48, 16 }
 0x1f3   : > { %10870 = vmatmul.mubr.msk.bf16.gmra.mrb[4].mxu1 %vm290_vm1, %v12982_v4  ;;  %v3869_v4 = vrot.slane %v3867_v38, 4  ;;  %v3872_v17 = vrot.slane %v3870_v24, 5  ;;  %v13331_v33 = vcombine.low %v3855_v7, %v3865_v15  ;;  %v8199_v3 = vor.u32 %v8198_v36, %v8194_v42  ;;  %v9565_v38 = vld [vmem:[%s12061_s9 + $0x284] sm:$0x1] }
 0x1f4   : > { %10873 = vmatprep.mubr.msk.bf16.mxu1 %vm290_vm1, %v13005_v47  ;;  %v8190_v34 = vrot.slane %v8189_v26, 4  ;;  %v3878_v44 = vrot.slane %v3876_v8, 5  ;;  %v3882_v39 = vrot.slane %v3880_v32, 4  ;;  %v3886_v49 = vshll.u32 %v9562_v59, 16 }
 0x1f5   : > { %v3873_v47 = vor.u32 %v3872_v17, %v3869_v4  ;;  %v8207_v56 = vshrl.u32 %v10144_v60, 16  ;;  %v8200_v41 = vrot.slane %v8199_v3, 4  ;;  %v8210_v62 = vshll.u32 %v10144_v60, 16  ;;  %v10147_v60 = vld [vmem:[%s12061_s9 + $0x288] sm:$0xf] }
 0x1f6   : > { %v8195_v46 = vsel %vm12174_vm4, %v8190_v34, %v8194_v42  ;;  %v8216_v0 = vshll.u32 %v10145_v30, 16  ;;  %v3883_v1 = vor.u32 %v3882_v39, %v3878_v44  ;;  %v3888_v18 = vrot.slane %v3886_v49, 5  ;;  %v9564_v42 = vld [vmem:[%s12061_s9 + $0x280] sm:$0xf] }
 0x1f7   : > { %v3874_v52 = vrot.slane %v3873_v47, 4  ;;  %v8209_v10 = vrot.slane %v8207_v56, 4  ;;  %v8212_v22 = vrot.slane %v8210_v62, 5  ;;  %v8220_v43 = vshrl.u32 %v10145_v30, 16  ;;  %v10148_v30 = vld [vmem:[%s12061_s9 + $0x28c] sm:$0xf] }
 0x1f8   : > { %11142 = vmatmul.mubr.msk.bf16.gmra.mrb[4].mxu0 %vm290_vm1, %v12992_v20  ;;  %v8205_v20 = vsel %vm12174_vm4, %v8200_v41, %v8204_v29  ;;  %v8218_v48 = vrot.slane %v8216_v0, 5  ;;  %v3884_v19 = vrot.slane %v3883_v1, 4  ;;  %v8226_v7 = vshll.u32 %v10146_v57, 16  ;;  %v10149_v62 = vld [vmem:[%s12061_s9 + $0x290] sm:$0x1] }
 0x1f9   : > { %11145 = vmatprep.mubr.msk.bf16.mxu0 %vm290_vm1, %v13023_v28  ;;  %v13346_v16 = vcombine.low %v8195_v46, %v8205_v20  ;;  %v3879_v28 = vsel %vm12174_vm4, %v3874_v52, %v3878_v44  ;;  %v8213_v25 = vor.u32 %v8212_v22, %v8209_v10  ;;  %v8222_v59 = vrot.slane %v8220_v43, 4  ;;  %v9566_v52 = vld [vmem:[%s12061_s9 + $0x288] sm:$0xf] }
 0x1fa   : > { %v3891_v24 = vshrl.u32 %v9563_v58, 16  ;;  %v3894_v26 = vshll.u32 %v9563_v58, 16  ;;  %v3889_v36 = vsel %vm12174_vm4, %v3884_v19, %v3888_v18  ;;  %v3900_v29 = vshll.u32 %v9564_v42, 16  ;;  %v9567_v58 = vld [vmem:[%s12061_s9 + $0x28c] sm:$0xf] }
 0x1fb   : > { %10874 = vmatmul.mubr.msk.bf16.gmra.mrb[8].mxu1 %vm290_vm1, %v13035_v54  ;;  %v8228_v54 = vrot.slane %v8226_v7, 5  ;;  %v3904_v8 = vshrl.u32 %v9564_v42, 16  ;;  %v13356_v15 = vcombine.low %v3879_v28, %v3889_v36  ;;  %v8214_v4 = vrot.slane %v8213_v25, 4 }
 0x1fc   : > { %10877 = vmatprep.mubr.msk.bf16.mxu1 %vm290_vm1, %v13059_v37  ;;  %v8223_v17 = vor.u32 %v8222_v59, %v8218_v48  ;;  %v3893_v32 = vrot.slane %v3891_v24, 4  ;;  %v3896_v37 = vrot.slane %v3894_v26, 5  ;;  %v3902_v34 = vrot.slane %v3900_v29, 5  ;;  %v10150_v24 = vld [vmem:[%s12061_s9 + $0x294] sm:$0xf] }
 0x1fd   : > { %v3906_v3 = vrot.slane %v3904_v8, 4  ;;  %v3910_v44 = vshll.u32 %v9565_v38, 16  ;;  %v8219_v47 = vsel %vm12174_vm4, %v8214_v4, %v8218_v48  ;;  %v8231_v49 = vshrl.u32 %v10147_v60, 16  ;;  %v10151_v29 = vld [vmem:[%s12061_s9 + $0x298] sm:$0xf] }
 0x1fe   : > { %v8224_v39 = vrot.slane %v8223_v17, 4  ;;  %v8234_v56 = vshll.u32 %v10147_v60, 16  ;;  %v3897_v46 = vor.u32 %v3896_v37, %v3893_v32  ;;  %v8240_v0 = vshll.u32 %v10148_v30, 16 }
 0x1ff   : > { %v3907_v41 = vor.u32 %v3906_v3, %v3902_v34  ;;  %v3912_v57 = vrot.slane %v3910_v44, 5  ;;  %v8244_v10 = vshrl.u32 %v10148_v30, 16  ;;  %v8250_v28 = vshll.u32 %v10149_v62, 16 }
 0x200   : > { %11146 = vmatmul.mubr.msk.bf16.gmra.mrb[8].mxu0 %vm290_vm1, %v13048_v63  ;;  %v8229_v1 = vsel %vm12174_vm4, %v8224_v39, %v8228_v54  ;;  %v8233_v63 = vrot.slane %v8231_v49, 4  ;;  %v8236_v18 = vrot.slane %v8234_v56, 5  ;;  %v8242_v48 = vrot.slane %v8240_v0, 5  ;;  %v9569_v56 = vld [vmem:[%s12061_s9 + $0x294] sm:$0xf] }
 0x201   : > { %11149 = vmatprep.mubr.msk.bf16.mxu0 %vm290_vm1, %v13074_v11  ;;  %v13372_v20 = vcombine.low %v8219_v47, %v8229_v1  ;;  %v3898_v11 = vrot.slane %v3897_v46, 4  ;;  %v3908_v22 = vrot.slane %v3907_v41, 4  ;;  %v8246_v42 = vrot.slane %v8244_v10, 4  ;;  %v9570_v1 = vld [vmem:[%s12061_s9 + $0x298] sm:$0xf] }
 0x202   : > { %v8237_v43 = vor.u32 %v8236_v18, %v8233_v63  ;;  %v3915_v19 = vshrl.u32 %v9566_v52, 16  ;;  %v3918_v59 = vshll.u32 %v9566_v52, 16  ;;  %v3924_v38 = vshll.u32 %v9567_v58, 16 }
 0x203   : > { %10878 = vmatmul.mubr.msk.bf16.gmra.mrb[12].mxu1 %vm290_vm1, %v13087_v51  ;;  %v3903_v7 = vsel %vm12174_vm4, %v3898_v11, %v3902_v34  ;;  %v3913_v25 = vsel %vm12174_vm4, %v3908_v22, %v3912_v57  ;;  %v9568_v51 = vld [vmem:[%s12061_s9 + $0x290] sm:$0x1]  ;;  %v8247_v54 = vor.u32 %v8246_v42, %v8242_v48  ;;  %v3928_v17 = vshrl.u32 %v9567_v58, 16  ;;  %v10152_v34 = vld [vmem:[%s12061_s9 + $0x29c] sm:$0x1] }
 0x204   : > { %10881 = vmatprep.mubr.msk.bf16.mxu1 %vm290_vm1, %v13118_v45  ;;  %v13382_v26 = vcombine.low %v3903_v7, %v3913_v25  ;;  %v8238_v36 = vrot.slane %v8237_v43, 4  ;;  %v8252_v45 = vrot.slane %v8250_v28, 5  ;;  %v3917_v8 = vrot.slane %v3915_v19, 4  ;;  %v10153_v25 = vld [vmem:[%s12061_s9 + $0x2a0] sm:$0xf] }
 0x205   : > { %v3920_v60 = vrot.slane %v3918_v59, 5  ;;  %v3926_v4 = vrot.slane %v3924_v38, 5  ;;  %v8248_v30 = vrot.slane %v8247_v54, 4  ;;  %v3934_v37 = vshll.u32 %v9568_v51, 16 }
 0x206   : > { %v8243_v32 = vsel %vm12174_vm4, %v8238_v36, %v8242_v48  ;;  %v8255_v3 = vshrl.u32 %v10150_v24, 16  ;;  %v3930_v47 = vrot.slane %v3928_v17, 4  ;;  %v8258_v39 = vshll.u32 %v10150_v24, 16  ;;  %v9571_v48 = vld [vmem:[%s12061_s9 + $0x29c] sm:$0x1] }
 0x207   : > { %v3921_v44 = vor.u32 %v3920_v60, %v3917_v8  ;;  %v8264_v49 = vshll.u32 %v10151_v29, 16  ;;  %v8253_v46 = vsel %vm12174_vm4, %v8248_v30, %v8252_v45  ;;  %v8268_v57 = vshrl.u32 %v10151_v29, 16  ;;  %v10154_v24 = vld [vmem:[%s12061_s9 + $0x2a4] sm:$0xf]  ;;  %v10155_v17 = vld [vmem:[%s12061_s9 + $0x2a8] sm:$0x1] }
 0x208   : > { %11150 = vmatmul.mubr.msk.bf16.gmra.mrb[12].mxu0 %vm290_vm1, %v13104_v23  ;;  %v3936_v23 = vrot.slane %v3934_v37, 5  ;;  %v8257_v41 = vrot.slane %v8255_v3, 4  ;;  %v13397_v62 = vcombine.low %v8243_v32, %v8253_v46  ;;  %v3931_v52 = vor.u32 %v3930_v47, %v3926_v4  ;;  %v9572_v3 = vld [vmem:[%s12061_s9 + $0x2a0] sm:$0xf] }
 0x209   : > { %11153 = vmatprep.mubr.msk.bf16.mxu0 %vm290_vm1, %v13131_v2  ;;  %v3922_v0 = vrot.slane %v3921_v44, 4  ;;  %v8260_v2 = vrot.slane %v8258_v39, 5  ;;  %v8266_v63 = vrot.slane %v8264_v49, 5  ;;  %v8270_v18 = vrot.slane %v8268_v57, 4  ;;  %v9573_v49 = vld [vmem:[%s12061_s9 + $0x2a4] sm:$0xf] }
 0x20a   : > { %v8274_v10 = vshll.u32 %v10152_v34, 16  ;;  %v3939_v58 = vshrl.u32 %v9569_v56, 16  ;;  %v3932_v22 = vrot.slane %v3931_v52, 4  ;;  %v3942_v43 = vshll.u32 %v9569_v56, 16 }
 0x20b   : > { %10882 = vmatmul.mubr.msk.bf16.gmra.mrb[16].mxu1 %vm290_vm1, %v13144_v35  ;;  %v3927_v11 = vsel %vm12174_vm4, %v3922_v0, %v3926_v4  ;;  %v8261_v35 = vor.u32 %v8260_v2, %v8257_v41  ;;  %v8271_v42 = vor.u32 %v8270_v18, %v8266_v63  ;;  %v3948_v7 = vshll.u32 %v9570_v1, 16 }
 0x20c   : > { %10885 = vmatprep.mubr.msk.bf16.mxu1 %vm290_vm1, %v13174_v55  ;;  %v8276_v28 = vrot.slane %v8274_v10, 5  ;;  %v3941_v19 = vrot.slane %v3939_v58, 4  ;;  %v3937_v55 = vsel %vm12174_vm4, %v3932_v22, %v3936_v23  ;;  %v3944_v59 = vrot.slane %v3942_v43, 5  ;;  %v10156_v58 = vld [vmem:[%s12061_s9 + $0x2ac] sm:$0xf] }
 0x20d   : > { %v8262_v51 = vrot.slane %v8261_v35, 4  ;;  %v3952_v38 = vshrl.u32 %v9570_v1, 16  ;;  %v13411_v36 = vcombine.low %v3927_v11, %v3937_v55  ;;  %v8272_v54 = vrot.slane %v8271_v42, 4 }
 0x20e   : > { %v3950_v45 = vrot.slane %v3948_v7, 5  ;;  %v3958_v29 = vshll.u32 %v9571_v48, 16  ;;  %v3945_v60 = vor.u32 %v3944_v59, %v3941_v19  ;;  %v8279_v32 = vshrl.u32 %v10153_v25, 16  ;;  %v10157_v48 = vld [vmem:[%s12061_s9 + $0x2b0] sm:$0xf] }
 0x20f   : > { %v8267_v8 = vsel %vm12174_vm4, %v8262_v51, %v8266_v63  ;;  %v3954_v4 = vrot.slane %v3952_v38, 4  ;;  %v8277_v30 = vsel %vm12174_vm4, %v8272_v54, %v8276_v28  ;;  %v8282_v37 = vshll.u32 %v10153_v25, 16 }
 0x210   : > { %11154 = vmatmul.mubr.msk.bf16.gmra.mrb[16].mxu0 %vm290_vm1, %v13159_v13  ;;  %v3960_v13 = vrot.slane %v3958_v29, 5  ;;  %v8288_v34 = vshll.u32 %v10154_v24, 16  ;;  %v3946_v44 = vrot.slane %v3945_v60, 4  ;;  %v8281_v39 = vrot.slane %v8279_v32, 4  ;;  %v9575_v60 = vld [vmem:[%s12061_s9 + $0x2ac] sm:$0xf] }
 0x211   : > { %11157 = vmatprep.mubr.msk.bf16.mxu0 %vm290_vm1, %v13184_v12  ;;  %v13423_v12 = vcombine.low %v8267_v8, %v8277_v30  ;;  %v3955_v47 = vor.u32 %v3954_v4, %v3950_v45  ;;  %v8284_v56 = vrot.slane %v8282_v37, 5  ;;  %v8292_v23 = vshrl.u32 %v10154_v24, 16  ;;  %v10158_v24 = vld [vmem:[%s12061_s9 + $0x2b4] sm:$0x1] }
 0x212   : > { %v8290_v46 = vrot.slane %v8288_v34, 5  ;;  %v8298_v41 = vshll.u32 %v10155_v17, 16  ;;  %v3951_v57 = vsel %vm12174_vm4, %v3946_v44, %v3950_v45  ;;  %v3963_v52 = vshrl.u32 %v9572_v3, 16 }
 0x213   : > { %10886 = vmatmul.mubr.msk.bf16.gmra.mrb[20].mxu1 %vm290_vm1, %v13197_v9  ;;  %v3956_v0 = vrot.slane %v3955_v47, 4  ;;  %v9574_v9 = vld [vmem:[%s12061_s9 + $0x2a8] sm:$0x1]  ;;  %v3966_v2 = vshll.u32 %v9572_v3, 16  ;;  %v8285_v1 = vor.u32 %v8284_v56, %v8281_v39  ;;  %v8294_v63 = vrot.slane %v8292_v23, 4 }
 0x214   : > { %10889 = vmatprep.mubr.msk.bf16.mxu1 %vm290_vm1, %v13227_v40  ;;  %v8300_v18 = vrot.slane %v8298_v41, 5  ;;  %v3972_v10 = vshll.u32 %v9573_v49, 16  ;;  %v3965_v11 = vrot.slane %v3963_v52, 4  ;;  %v3976_v35 = vshrl.u32 %v9573_v49, 16  ;;  %v9577_v39 = vld [vmem:[%s12061_s9 + $0x2b4] sm:$0x1] }
 0x215   : > { %v3961_v40 = vsel %vm12174_vm4, %v3956_v0, %v3960_v13  ;;  %v3968_v22 = vrot.slane %v3966_v2, 5  ;;  %v8286_v42 = vrot.slane %v8285_v1, 4  ;;  %v8295_v28 = vor.u32 %v8294_v63, %v8290_v46  ;;  %v9576_v13 = vld [vmem:[%s12061_s9 + $0x2b0] sm:$0xf]  ;;  %v10160_v1 = vld [vmem:[%s12061_s9 + $0x2bc] sm:$0xf] }
 0x216   : > { %v13437_v43 = vcombine.low %v3951_v57, %v3961_v40  ;;  %v3974_v19 = vrot.slane %v3972_v10, 5  ;;  %v3978_v25 = vrot.slane %v3976_v35, 4  ;;  %v3982_v55 = vshll.u32 %v9574_v9, 16  ;;  %v10159_v57 = vld [vmem:[%s12061_s9 + $0x2b8] sm:$0xf] }
 0x217   : > { %v3969_v7 = vor.u32 %v3968_v22, %v3965_v11  ;;  %v8303_v51 = vshrl.u32 %v10156_v58, 16  ;;  %v8291_v59 = vsel %vm12174_vm4, %v8286_v42, %v8290_v46  ;;  %v8296_v38 = vrot.slane %v8295_v28, 4  ;;  %v10161_v28 = vld [vmem:[%s12061_s9 + $0x2c0] sm:$0x1] }
 0x218   : > { %11158 = vmatmul.mubr.msk.bf16.gmra.mrb[20].mxu0 %vm290_vm1, %v13210_v50  ;;  %v8306_v50 = vshll.u32 %v10156_v58, 16  ;;  %v8312_v54 = vshll.u32 %v10157_v48, 16  ;;  %v3979_v29 = vor.u32 %v3978_v25, %v3974_v19  ;;  %v3984_v8 = vrot.slane %v3982_v55, 5 }
 0x219   : > { %11161 = vmatprep.mubr.msk.bf16.mxu0 %vm290_vm1, %v13240_v31  ;;  %v3970_v45 = vrot.slane %v3969_v7, 4  ;;  %v8305_v31 = vrot.slane %v8303_v51, 4  ;;  %v8301_v4 = vsel %vm12174_vm4, %v8296_v38, %v8300_v18  ;;  %v8316_v30 = vshrl.u32 %v10157_v48, 16 }
 0x21a   : > { %v8308_v17 = vrot.slane %v8306_v50, 5  ;;  %v8314_v32 = vrot.slane %v8312_v54, 5  ;;  %v13452_v37 = vcombine.low %v8291_v59, %v8301_v4  ;;  %v3980_v34 = vrot.slane %v3979_v29, 4  ;;  %v9579_v59 = vld [vmem:[%s12061_s9 + $0x2bc] sm:$0xf] }
 0x21b   : > { %10890 = vmatmul.mubr.msk.bf16.gmra.mrb[24].mxu1 %vm290_vm1, %v13251_v6  ;;  %v3975_v6 = vsel %vm12174_vm4, %v3970_v45, %v3974_v19  ;;  %v8322_v3 = vshll.u32 %v10158_v24, 16  ;;  %v8318_v47 = vrot.slane %v8316_v30, 4  ;;  %v3990_v49 = vshll.u32 %v9575_v60, 16 }
 0x21c   : > { %10893 = vmatprep.mubr.msk.bf16.mxu1 %vm290_vm1, %v13277_v21  ;;  %v8309_v44 = vor.u32 %v8308_v17, %v8305_v31  ;;  %v3987_v21 = vshrl.u32 %v9575_v60, 16  ;;  %v3985_v56 = vsel %vm12174_vm4, %v3980_v34, %v3984_v8  ;;  %v3996_v23 = vshll.u32 %v9576_v13, 16  ;;  %v9580_v60 = vld [vmem:[%s12061_s9 + $0x2c0] sm:$0x1] }
 0x21d   : > { %v8324_v46 = vrot.slane %v8322_v3, 5  ;;  %v4000_v41 = vshrl.u32 %v9576_v13, 16  ;;  %v13462_v0 = vcombine.low %v3975_v6, %v3985_v56  ;;  %v8319_v52 = vor.u32 %v8318_v47, %v8314_v32  ;;  %v10163_v3 = vld [vmem:[%s12061_s9 + $0x2c8] sm:$0xf] }
 0x21e   : > { %v8310_v9 = vrot.slane %v8309_v44, 4  ;;  %v3989_v2 = vrot.slane %v3987_v21, 4  ;;  %v3992_v63 = vrot.slane %v3990_v49, 5  ;;  %v3998_v18 = vrot.slane %v3996_v23, 5 }
 0x21f   : > { %v4002_v10 = vrot.slane %v4000_v41, 4  ;;  %v4006_v58 = vshll.u32 %v9577_v39, 16  ;;  %v8327_v11 = vshrl.u32 %v10159_v57, 16  ;;  %v8330_v22 = vshll.u32 %v10159_v57, 16 }
 0x220   : > { %11162 = vmatmul.mubr.msk.bf16.gmra.mrb[24].mxu0 %vm290_vm1, %v13265_v53  ;;  %v8315_v40 = vsel %vm12174_vm4, %v8310_v9, %v8314_v32  ;;  %v8320_v53 = vrot.slane %v8319_v52, 4  ;;  %v3993_v35 = vor.u32 %v3992_v63, %v3989_v2  ;;  %v8336_v19 = vshll.u32 %v10160_v1, 16  ;;  %v10162_v32 = vld [vmem:[%s12061_s9 + $0x2c4] sm:$0xf] }
 0x221   : > { %11165 = vmatprep.mubr.msk.bf16.mxu0 %vm290_vm1, %v13289_v61  ;;  %v4003_v48 = vor.u32 %v4002_v10, %v3998_v18  ;;  %v4008_v42 = vrot.slane %v4006_v58, 5  ;;  %v9578_v61 = vld [vmem:[%s12061_s9 + $0x2b8] sm:$0xf]  ;;  %v8329_v25 = vrot.slane %v8327_v11, 4  ;;  %v8332_v55 = vrot.slane %v8330_v22, 5 }
 0x222   : > { %v8325_v7 = vsel %vm12174_vm4, %v8320_v53, %v8324_v46  ;;  %v8340_v51 = vshrl.u32 %v10160_v1, 16  ;;  %v8338_v50 = vrot.slane %v8336_v19, 5  ;;  %v8346_v29 = vshll.u32 %v10161_v28, 16  ;;  %v9582_v53 = vld [vmem:[%s12061_s9 + $0x2c8] sm:$0xf] }
 0x223   : > { %10894 = vmatmul.mubr.msk.bf16.gmra.mrb[28].mxu1 %vm290_vm1, %v13304_v27  ;;  %v13478_v38 = vcombine.low %v8315_v40, %v8325_v7  ;;  %v3994_v27 = vrot.slane %v3993_v35, 4  ;;  %v4004_v24 = vrot.slane %v4003_v48, 4  ;;  %v8333_v54 = vor.u32 %v8332_v55, %v8329_v25  ;;  %v9583_v19 = vld [vmem:[%s12061_s9 + $0x2cc] sm:$0x1] }
 0x224   : > { %10899 = vmatprep.mubr.msk.bf16.mxu1 %vm290_vm1, %v13331_v33  ;;  %v8342_v45 = vrot.slane %v8340_v51, 4  ;;  %v4011_v8 = vshrl.u32 %v9578_v61, 16  ;;  %v4014_v4 = vshll.u32 %v9578_v61, 16  ;;  %v4020_v17 = vshll.u32 %v9579_v59, 16 }
 0x225   : > { %v3999_v33 = vsel %vm12174_vm4, %v3994_v27, %v3998_v18  ;;  %v4009_v31 = vsel %vm12174_vm4, %v4004_v24, %v4008_v42  ;;  %v8334_v13 = vrot.slane %v8333_v54, 4  ;;  %v8348_v34 = vrot.slane %v8346_v29, 5 }
 0x226   : > { %v13488_v30 = vcombine.low %v3999_v33, %v4009_v31  ;;  %v8343_v6 = vor.u32 %v8342_v45, %v8338_v50  ;;  %v4013_v44 = vrot.slane %v4011_v8, 4  ;;  %v4016_v47 = vrot.slane %v4014_v4, 5  ;;  %v10166_v45 = vld [vmem:[%s12061_s9 + $0x2d4] sm:$0xf]  ;;  %v10167_v4 = vld [vmem:[%s12061_s9 + $0x2d8] sm:$0x1] }
 0x227   : > { %v4022_v39 = vrot.slane %v4020_v17, 5  ;;  %v4024_v21 = vshrl.u32 %v9579_v59, 16  ;;  %v8339_v49 = vsel %vm12174_vm4, %v8334_v13, %v8338_v50  ;;  %v4030_v46 = vshll.u32 %v9580_v60, 16  ;;  %v10165_v59 = vld [vmem:[%s12061_s9 + $0x2d0] sm:$0xf] }
 0x228   : > { %11166 = vmatmul.mubr.msk.bf16.gmra.mrb[28].mxu0 %vm290_vm1, %v13317_v5  ;;  %v8344_v56 = vrot.slane %v8343_v6, 4  ;;  %v10164_v5 = vld [vmem:[%s12061_s9 + $0x2cc] sm:$0x1]  ;;  %v8351_v23 = vshrl.u32 %v10162_v32, 16  ;;  %v4017_v41 = vor.u32 %v4016_v47, %v4013_v44  ;;  %v8354_v9 = vshll.u32 %v10162_v32, 16 }
 0x229   : > { %11171 = vmatprep.mubr.msk.bf16.mxu0 %vm290_vm1, %v13346_v16  ;;  %v4026_v57 = vrot.slane %v4024_v21, 4  ;;  %v8360_v52 = vshll.u32 %v10163_v3, 16  ;;  %v9581_v16 = vld [vmem:[%s12061_s9 + $0x2c4] sm:$0xf]  ;;  %v4032_v1 = vrot.slane %v4030_v46, 5  ;;  %v8364_v18 = vshrl.u32 %v10163_v3, 16 }
 0x22a   : > { %v8349_v2 = vsel %vm12174_vm4, %v8344_v56, %v8348_v34  ;;  %v8353_v63 = vrot.slane %v8351_v23, 4  ;;  %v4018_v58 = vrot.slane %v4017_v41, 4  ;;  %v8370_v35 = vshll.u32 %v10164_v5, 16  ;;  %v9584_v3 = vld [vmem:[%s12061_s9 + $0x2d0] sm:$0xf] }
 0x22b   : > { %10900 = vmatmul.mubr.msk.bf16.vlgmr.msra.gmra.mrb[0].mxu1 %vm290_vm1, %v13356_v15  ;;  %v13503_v10 = vcombine.low %v8339_v49, %v8349_v2  ;;  %v4027_v40 = vor.u32 %v4026_v57, %v4022_v39  ;;  %v8356_v15 = vrot.slane %v8354_v9, 5  ;;  %v8362_v11 = vrot.slane %v8360_v52, 5  ;;  %v9585_v21 = vld [vmem:[%s12061_s9 + $0x2d4] sm:$0xf]  ;;  %v9586_v41 = vld [vmem:[%s12061_s9 + $0x2d8] sm:$0x1] }
 0x22c   : > { %10903 = vmatprep.mubr.msk.bf16.mxu1 %vm290_vm1, %v13382_v26  ;;  %v8366_v22 = vrot.slane %v8364_v18, 4  ;;  %v4035_v48 = vshrl.u32 %v9581_v16, 16  ;;  %v4023_v26 = vsel %vm12174_vm4, %v4018_v58, %v4022_v39  ;;  %v4038_v61 = vshll.u32 %v9581_v16, 16 }
 0x22d   : > { %v4028_v42 = vrot.slane %v4027_v40, 4  ;;  %v8357_v28 = vor.u32 %v8356_v15, %v8353_v63  ;;  %v8372_v25 = vrot.slane %v8370_v35, 5  ;;  %v4044_v51 = vshll.u32 %v9582_v53, 16  ;;  %v10168_v63 = vld [vmem:[%s12061_s9 + $0x2dc] sm:$0xf] }
 0x22e   : > { %v8367_v7 = vor.u32 %v8366_v22, %v8362_v11  ;;  %v4037_v55 = vrot.slane %v4035_v48, 4  ;;  %v4040_v50 = vrot.slane %v4038_v61, 5  ;;  %v4048_v54 = vshrl.u32 %v9582_v53, 16  ;;  %v10169_v53 = vld [vmem:[%s12061_s9 + $0x2e0] sm:$0xf] }
 0x22f   : > { %v4033_v27 = vsel %vm12174_vm4, %v4028_v42, %v4032_v1  ;;  %v8358_v24 = vrot.slane %v8357_v28, 4  ;;  %v4046_v8 = vrot.slane %v4044_v51, 5  ;;  %v4054_v33 = vshll.u32 %v9583_v19, 16  ;;  %v10170_v61 = vld [vmem:[%s12061_s9 + $0x2e4] sm:$0x1] }
 0x230   : > { %11172 = vmatmul.mubr.msk.bf16.vlgmr.msra.gmra.mrb[0].mxu0 %vm290_vm1, %v13372_v20  ;;  %v13517_v29 = vcombine.low %v4023_v26, %v4033_v27  ;;  %v8368_v20 = vrot.slane %v8367_v7, 4  ;;  %v4041_v31 = vor.u32 %v4040_v50, %v4037_v55  ;;  %v4050_v60 = vrot.slane %v4048_v54, 4  ;;  %v9587_v27 = vld [vmem:[%s12061_s9 + $0x2dc] sm:$0xf] }
 0x231   : > { %11175 = vmatprep.mubr.msk.bf16.mxu0 %vm290_vm1, %v13397_v62  ;;  %v8363_v62 = vsel %vm12174_vm4, %v8358_v24, %v8362_v11  ;;  %v8375_v17 = vshrl.u32 %v10165_v59, 16  ;;  %v4056_v13 = vrot.slane %v4054_v33, 5  ;;  %v8378_v6 = vshll.u32 %v10165_v59, 16 }
 0x232   : > { %v8373_v32 = vsel %vm12174_vm4, %v8368_v20, %v8372_v25  ;;  %v8384_v34 = vshll.u32 %v10166_v45, 16  ;;  %v4042_v44 = vrot.slane %v4041_v31, 4  ;;  %v4051_v47 = vor.u32 %v4050_v60, %v4046_v8 }
 0x233   : > { %10904 = vmatmul.mubr.msk.bf16.gmra.mrb[4].mxu1 %vm290_vm1, %v13411_v36  ;;  %v13529_v36 = vcombine.low %v8363_v62, %v8373_v32  ;;  %v8377_v39 = vrot.slane %v8375_v17, 4  ;;  %v8380_v49 = vrot.slane %v8378_v6, 5  ;;  %v8388_v46 = vshrl.u32 %v10166_v45, 16 }
 0x234   : > { %10907 = vmatprep.mubr.msk.bf16.mxu1 %vm290_vm1, %v13437_v43  ;;  %v8386_v56 = vrot.slane %v8384_v34, 5  ;;  %v8394_v5 = vshll.u32 %v10167_v4, 16  ;;  %v4047_v43 = vsel %vm12174_vm4, %v4042_v44, %v4046_v8  ;;  %v4052_v23 = vrot.slane %v4051_v47, 4  ;;  %v9589_v4 = vld [vmem:[%s12061_s9 + $0x2e4] sm:$0x1] }
 0x235   : > { %v4059_v57 = vshrl.u32 %v9584_v3, 16  ;;  %v4062_v9 = vshll.u32 %v9584_v3, 16  ;;  %v8381_v52 = vor.u32 %v8380_v49, %v8377_v39  ;;  %v8390_v16 = vrot.slane %v8388_v46, 4  ;;  %v10171_v44 = vld [vmem:[%s12061_s9 + $0x2e8] sm:$0xf] }
 0x236   : > { %v8396_v2 = vrot.slane %v8394_v5, 5  ;;  %v4068_v1 = vshll.u32 %v9585_v21, 16  ;;  %v4057_v18 = vsel %vm12174_vm4, %v4052_v23, %v4056_v13  ;;  %v4072_v15 = vshrl.u32 %v9585_v21, 16  ;;  %v10172_v49 = vld [vmem:[%s12061_s9 + $0x2ec] sm:$0xf] }
 0x237   : > { %v4061_v58 = vrot.slane %v4059_v57, 4  ;;  %v4064_v40 = vrot.slane %v4062_v9, 5  ;;  %v9614_v11 = vcombine.low %v4047_v43, %v4057_v18  ;;  %v8382_v22 = vrot.slane %v8381_v52, 4 }
 0x238   : > { %11176 = vmatmul.mubr.msk.bf16.gmra.mrb[4].mxu0 %vm290_vm1, %v13423_v12  ;;  %v8391_v35 = vor.u32 %v8390_v16, %v8386_v56  ;;  %v4070_v12 = vrot.slane %v4068_v1, 5  ;;  %v4074_v26 = vrot.slane %v4072_v15, 4  ;;  %v4078_v42 = vshll.u32 %v9586_v41, 16  ;;  %v9591_v15 = vld [vmem:[%s12061_s9 + $0x2ec] sm:$0xf] }
 0x239   : > { %11179 = vmatprep.mubr.msk.bf16.mxu0 %vm290_vm1, %v13452_v37  ;;  %v4065_v48 = vor.u32 %v4064_v40, %v4061_v58  ;;  %v8399_v37 = vshrl.u32 %v10168_v63, 16  ;;  %v8387_v28 = vsel %vm12174_vm4, %v8382_v22, %v8386_v56  ;;  %v8402_v7 = vshll.u32 %v10168_v63, 16  ;;  %v9590_v63 = vld [vmem:[%s12061_s9 + $0x2e8] sm:$0xf] }
 0x23a   : > { %v8392_v19 = vrot.slane %v8391_v35, 4  ;;  %v8408_v25 = vshll.u32 %v10169_v53, 16  ;;  %v4075_v51 = vor.u32 %v4074_v26, %v4070_v12  ;;  %v4080_v59 = vrot.slane %v4078_v42, 5 }
 0x23b   : > { %10908 = vmatmul.mubr.msk.bf16.gmra.mrb[8].mxu1 %vm290_vm1, %v13462_v0  ;;  %v4066_v55 = vrot.slane %v4065_v48, 4  ;;  %v8401_v0 = vrot.slane %v8399_v37, 4  ;;  %v8404_v50 = vrot.slane %v8402_v7, 5  ;;  %v8412_v45 = vshrl.u32 %v10169_v53, 16 }
 0x23c   : > { %10911 = vmatprep.mubr.msk.bf16.mxu1 %vm290_vm1, %v13488_v30  ;;  %v8397_v24 = vsel %vm12174_vm4, %v8392_v19, %v8396_v2  ;;  %v8410_v54 = vrot.slane %v8408_v25, 5  ;;  %v9588_v30 = vld [vmem:[%s12061_s9 + $0x2e0] sm:$0xf]  ;;  %v4076_v33 = vrot.slane %v4075_v51, 4  ;;  %v8418_v62 = vshll.u32 %v10170_v61, 16 }
 0x23d   : > { %v10198_v20 = vcombine.low %v8387_v28, %v8397_v24  ;;  %v4071_v8 = vsel %vm12174_vm4, %v4066_v55, %v4070_v12  ;;  %v8405_v31 = vor.u32 %v8404_v50, %v8401_v0  ;;  %v8414_v60 = vrot.slane %v8412_v45, 4  ;;  %v10173_v2 = vld [vmem:[%s12061_s9 + $0x2f0] sm:$0x1]  ;;  %v10174_v25 = vld [vmem:[%s12061_s9 + $0x2f4] sm:$0xf] }
 0x23e   : > { %v4083_v17 = vshrl.u32 %v9587_v27, 16  ;;  %v4086_v32 = vshll.u32 %v9587_v27, 16  ;;  %v4081_v13 = vsel %vm12174_vm4, %v4076_v33, %v4080_v59  ;;  %v8420_v6 = vrot.slane %v8418_v62, 5  ;;  %v9592_v19 = vld [vmem:[%s12061_s9 + $0x2f0] sm:$0x1] }
 0x23f   : > { %v4092_v34 = vshll.u32 %v9588_v30, 16  ;;  %v4096_v3 = vshrl.u32 %v9588_v30, 16  ;;  %v9615_v47 = vcombine.low %v4071_v8, %v4081_v13  ;;  %v8406_v39 = vrot.slane %v8405_v31, 4  ;;  %v10175_v0 = vld [vmem:[%s12061_s9 + $0x2f8] sm:$0xf] }
 0x240   : > { %11180 = vmatmul.mubr.msk.bf16.gmra.mrb[8].mxu0 %vm290_vm1, %v13478_v38  ;;  %v8415_v21 = vor.u32 %v8414_v60, %v8410_v54  ;;  %v4085_v38 = vrot.slane %v4083_v17, 4  ;;  %v4088_v56 = vrot.slane %v4086_v32, 5  ;;  %v4102_v5 = vshll.u32 %v9589_v4, 16  ;;  %v10176_v8 = vld [vmem:[%s12061_s9 + $0x2fc] sm:$0x1] }
 0x241   : > { %11183 = vmatprep.mubr.msk.bf16.mxu0 %vm290_vm1, %v13503_v10  ;;  %v4094_v46 = vrot.slane %v4092_v34, 5  ;;  %v4098_v10 = vrot.slane %v4096_v3, 4  ;;  %v8411_v43 = vsel %vm12174_vm4, %v8406_v39, %v8410_v54  ;;  %v8423_v41 = vshrl.u32 %v10171_v44, 16  ;;  %v9593_v17 = vld [vmem:[%s12061_s9 + $0x2f4] sm:$0xf] }
 0x242   : > { %v8416_v23 = vrot.slane %v8415_v21, 4  ;;  %v8426_v57 = vshll.u32 %v10171_v44, 16  ;;  %v4089_v9 = vor.u32 %v4088_v56, %v4085_v38  ;;  %v4104_v16 = vrot.slane %v4102_v5, 5  ;;  %v9594_v21 = vld [vmem:[%s12061_s9 + $0x2f8] sm:$0xf] }
 0x243   : > { %10912 = vmatmul.mubr.msk.bf16.gmra.mrb[12].mxu1 %vm290_vm1, %v13517_v29  ;;  %v4099_v52 = vor.u32 %v4098_v10, %v4094_v46  ;;  %v8432_v1 = vshll.u32 %v10172_v49, 16  ;;  %v8425_v18 = vrot.slane %v8423_v41, 4  ;;  %v8436_v40 = vshrl.u32 %v10172_v49, 16 }
 0x244   : > { %10915 = vmatprep.mubr.msk.bf16.mxu1 %vm290_vm1, %v9614_v11  ;;  %v8421_v29 = vsel %vm12174_vm4, %v8416_v23, %v8420_v6  ;;  %v8428_v58 = vrot.slane %v8426_v57, 5  ;;  %v4090_v11 = vrot.slane %v4089_v9, 4  ;;  %v8442_v26 = vshll.u32 %v10173_v2, 16  ;;  %v9595_v23 = vld [vmem:[%s12061_s9 + $0x2fc] sm:$0x1] }
 0x245   : > { %v10199_v53 = vcombine.low %v8411_v43, %v8421_v29  ;;  %v4100_v22 = vrot.slane %v4099_v52, 4  ;;  %v8434_v35 = vrot.slane %v8432_v1, 5  ;;  %v8438_v48 = vrot.slane %v8436_v40, 4  ;;  %v10177_v2 = vld [vmem:[%s12061_s9 + $0x300] sm:$0xf] }
 0x246   : > { %v8429_v12 = vor.u32 %v8428_v58, %v8425_v18  ;;  %v4107_v42 = vshrl.u32 %v9590_v63, 16  ;;  %v4095_v37 = vsel %vm12174_vm4, %v4090_v11, %v4094_v46  ;;  %v4110_v61 = vshll.u32 %v9590_v63, 16  ;;  %v10178_v58 = vld [vmem:[%s12061_s9 + $0x304] sm:$0xf] }
 0x247   : > { %v4105_v28 = vsel %vm12174_vm4, %v4100_v22, %v4104_v16  ;;  %v4116_v7 = vshll.u32 %v9591_v15, 16  ;;  %v8439_v51 = vor.u32 %v8438_v48, %v8434_v35  ;;  %v8444_v59 = vrot.slane %v8442_v26, 5  ;;  %v10179_v48 = vld [vmem:[%s12061_s9 + $0x308] sm:$0x1] }
 0x248   : > { %11184 = vmatmul.mubr.msk.bf16.gmra.mrb[12].mxu0 %vm290_vm1, %v13529_v36  ;;  %v9616_v55 = vcombine.low %v4095_v37, %v4105_v28  ;;  %v8430_v36 = vrot.slane %v8429_v12, 4  ;;  %v4109_v27 = vrot.slane %v4107_v42, 4  ;;  %v4112_v24 = vrot.slane %v4110_v61, 5  ;;  %v9596_v61 = vld [vmem:[%s12061_s9 + $0x300] sm:$0xf] }
 0x249   : > { %11187 = vmatprep.mubr.msk.bf16.mxu0 %vm290_vm1, %v10198_v20  ;;  %v4118_v50 = vrot.slane %v4116_v7, 5  ;;  %v4120_v54 = vshrl.u32 %v9591_v15, 16  ;;  %v8440_v30 = vrot.slane %v8439_v51, 4  ;;  %v4126_v20 = vshll.u32 %v9592_v19, 16  ;;  %v9597_v51 = vld [vmem:[%s12061_s9 + $0x304] sm:$0xf] }
 0x24a   : > { %v8435_v45 = vsel %vm12174_vm4, %v8430_v36, %v8434_v35  ;;  %v8447_v33 = vshrl.u32 %v10174_v25, 16  ;;  %v4113_v62 = vor.u32 %v4112_v24, %v4109_v27  ;;  %v8450_v60 = vshll.u32 %v10174_v25, 16 }
 0x24b   : > { %10916 = vmatmul.mubr.msk.bf16.gmra.mrb[16].mxu1 %vm290_vm1, %v9615_v47  ;;  %v4122_v31 = vrot.slane %v4120_v54, 4  ;;  %v8456_v4 = vshll.u32 %v10175_v0, 16  ;;  %v8445_v32 = vsel %vm12174_vm4, %v8440_v30, %v8444_v59  ;;  %v4128_v13 = vrot.slane %v4126_v20, 5 }
 0x24c   : > { %10919 = vmatprep.mubr.msk.bf16.mxu1 %vm290_vm1, %v9616_v55  ;;  %v8449_v6 = vrot.slane %v8447_v33, 4  ;;  %v8460_v34 = vshrl.u32 %v10175_v0, 16  ;;  %v10200_v3 = vcombine.low %v8435_v45, %v8445_v32  ;;  %v4114_v44 = vrot.slane %v4113_v62, 4  ;;  %v9598_v45 = vld [vmem:[%s12061_s9 + $0x308] sm:$0x1] }
 0x24d   : > { %v4123_v47 = vor.u32 %v4122_v31, %v4118_v50  ;;  %v8452_v39 = vrot.slane %v8450_v60, 5  ;;  %v8458_v38 = vrot.slane %v8456_v4, 5  ;;  %v8466_v56 = vshll.u32 %v10176_v8, 16  ;;  %v10180_v60 = vld [vmem:[%s12061_s9 + $0x30c] sm:$0xf] }
 0x24e   : > { %v8462_v49 = vrot.slane %v8460_v34, 4  ;;  %v4131_v46 = vshrl.u32 %v9593_v17, 16  ;;  %v4119_v10 = vsel %vm12174_vm4, %v4114_v44, %v4118_v50  ;;  %v4134_v41 = vshll.u32 %v9593_v17, 16 }
 0x24f   : > { %v4124_v5 = vrot.slane %v4123_v47, 4  ;;  %v8453_v43 = vor.u32 %v8452_v39, %v8449_v6  ;;  %v8468_v9 = vrot.slane %v8466_v56, 5  ;;  %v4140_v16 = vshll.u32 %v9594_v21, 16  ;;  %v10181_v6 = vld [vmem:[%s12061_s9 + $0x310] sm:$0xf] }
 0x250   : > { %11188 = vmatmul.mubr.msk.bf16.gmra.mrb[16].mxu0 %vm290_vm1, %v10199_v53  ;;  %v8463_v57 = vor.u32 %v8462_v49, %v8458_v38  ;;  %v4133_v52 = vrot.slane %v4131_v46, 4  ;;  %v4136_v29 = vrot.slane %v4134_v41, 5  ;;  %v4144_v18 = vshrl.u32 %v9594_v21, 16 }
 0x251   : > { %11191 = vmatprep.mubr.msk.bf16.mxu0 %vm290_vm1, %v10200_v3  ;;  %v4129_v1 = vsel %vm12174_vm4, %v4124_v5, %v4128_v13  ;;  %v8454_v63 = vrot.slane %v8453_v43, 4  ;;  %v4142_v53 = vrot.slane %v4140_v16, 5  ;;  %v4150_v11 = vshll.u32 %v9595_v23, 16 }
 0x252   : > { %v9617_v40 = vcombine.low %v4119_v10, %v4129_v1  ;;  %v8464_v15 = vrot.slane %v8463_v57, 4  ;;  %v4137_v35 = vor.u32 %v4136_v29, %v4133_v52  ;;  %v4146_v12 = vrot.slane %v4144_v18, 4  ;;  %v10182_v10 = vld [vmem:[%s12061_s9 + $0x314] sm:$0x1]  ;;  %v9599_v52 = vld [vmem:[%s12061_s9 + $0x30c] sm:$0xf] }
 0x253   : > { %v8459_v22 = vsel %vm12174_vm4, %v8454_v63, %v8458_v38  ;;  %v8471_v26 = vshrl.u32 %v10177_v2, 16  ;;  %v4152_v37 = vrot.slane %v4150_v11, 5  ;;  %v8474_v28 = vshll.u32 %v10177_v2, 16  ;;  %v9600_v29 = vld [vmem:[%s12061_s9 + $0x310] sm:$0xf] }
 0x254   : > { %10920 = vmatmul.mubr.msk.bf16.gmra.mrb[20].mxu1 %vm290_vm1, %v9617_v40  ;;  %v8469_v42 = vsel %vm12174_vm4, %v8464_v15, %v8468_v9  ;;  %v8480_v19 = vshll.u32 %v10178_v58, 16  ;;  %v4138_v25 = vrot.slane %v4137_v35, 4  ;;  %v4147_v55 = vor.u32 %v4146_v12, %v4142_v53 }
 0x255   : > { %v10201_v7 = vcombine.low %v8459_v22, %v8469_v42  ;;  %v8473_v36 = vrot.slane %v8471_v26, 4  ;;  %v8476_v59 = vrot.slane %v8474_v28, 5  ;;  %v8484_v27 = vshrl.u32 %v10178_v58, 16  ;;  %v9601_v22 = vld [vmem:[%s12061_s9 + $0x314] sm:$0x1] }
 0x256   : > { %v8482_v0 = vrot.slane %v8480_v19, 5  ;;  %v8490_v24 = vshll.u32 %v10179_v48, 16  ;;  %v4143_v50 = vsel %vm12174_vm4, %v4138_v25, %v4142_v53  ;;  %v4148_v54 = vrot.slane %v4147_v55, 4  ;;  %v10183_v28 = vld [vmem:[%s12061_s9 + $0x318] sm:$0xf] }
 0x257   : > { %v4155_v30 = vshrl.u32 %v9596_v61, 16  ;;  %v4158_v20 = vshll.u32 %v9596_v61, 16  ;;  %v8477_v8 = vor.u32 %v8476_v59, %v8473_v36  ;;  %v8486_v33 = vrot.slane %v8484_v27, 4  ;;  %v10184_v55 = vld [vmem:[%s12061_s9 + $0x31c] sm:$0xf] }
 0x258   : > { %11192 = vmatmul.mubr.msk.bf16.gmra.mrb[20].mxu0 %vm290_vm1, %v10201_v7  ;;  %v8492_v62 = vrot.slane %v8490_v24, 5  ;;  %v4164_v31 = vshll.u32 %v9597_v51, 16  ;;  %v4153_v4 = vsel %vm12174_vm4, %v4148_v54, %v4152_v37  ;;  %v4168_v13 = vshrl.u32 %v9597_v51, 16 }
 0x259   : > { %v4157_v17 = vrot.slane %v4155_v30, 4  ;;  %v4160_v32 = vrot.slane %v4158_v20, 5  ;;  %v9618_v34 = vcombine.low %v4143_v50, %v4153_v4  ;;  %v8478_v3 = vrot.slane %v8477_v8, 4  ;;  %v10185_v8 = vld [vmem:[%s12061_s9 + $0x320] sm:$0x1] }
 0x25a   : > { %v8487_v44 = vor.u32 %v8486_v33, %v8482_v0  ;;  %v4166_v47 = vrot.slane %v4164_v31, 5  ;;  %v4170_v21 = vrot.slane %v4168_v13, 4  ;;  %v4174_v38 = vshll.u32 %v9598_v45, 16 }
 0x25b   : > { %v4161_v39 = vor.u32 %v4160_v32, %v4157_v17  ;;  %v8495_v49 = vshrl.u32 %v10180_v60, 16  ;;  %10923 = vmatprep.mubr.msk.bf16.mxu1 %vm290_vm1, %v9618_v34  ;;  %v8483_v56 = vsel %vm12174_vm4, %v8478_v3, %v8482_v0  ;;  %v8498_v5 = vshll.u32 %v10180_v60, 16  ;;  %v9603_v32 = vld [vmem:[%s12061_s9 + $0x31c] sm:$0xf] }
 0x25c   : > { %v8488_v46 = vrot.slane %v8487_v44, 4  ;;  %v8504_v43 = vshll.u32 %v10181_v6, 16  ;;  %v4171_v41 = vor.u32 %v4170_v21, %v4166_v47  ;;  %v4176_v57 = vrot.slane %v4174_v38, 5 }
 0x25d   : > { %v4162_v23 = vrot.slane %v4161_v39, 4  ;;  %v8497_v9 = vrot.slane %v8495_v49, 4  ;;  %v8500_v2 = vrot.slane %v8498_v5, 5  ;;  %v8508_v63 = vshrl.u32 %v10181_v6, 16  ;;  %v10186_v5 = vld [vmem:[%s12061_s9 + $0x324] sm:$0xf] }
 0x25e   : > { %v8493_v16 = vsel %vm12174_vm4, %v8488_v46, %v8492_v62  ;;  %v8506_v1 = vrot.slane %v8504_v43, 5  ;;  %v4172_v40 = vrot.slane %v4171_v41, 4  ;;  %v8514_v15 = vshll.u32 %v10182_v10, 16  ;;  %v9602_v62 = vld [vmem:[%s12061_s9 + $0x318] sm:$0xf] }
 0x25f   : > { %v10202_v18 = vcombine.low %v8483_v56, %v8493_v16  ;;  %v4167_v58 = vsel %vm12174_vm4, %v4162_v23, %v4166_v47  ;;  %v8501_v53 = vor.u32 %v8500_v2, %v8497_v9  ;;  %v8510_v11 = vrot.slane %v8508_v63, 4  ;;  %v9604_v56 = vld [vmem:[%s12061_s9 + $0x320] sm:$0x1]  ;;  %v10187_v9 = vld [vmem:[%s12061_s9 + $0x328] sm:$0xf] }
 0x260   : > { %v4179_v35 = vshrl.u32 %v9599_v52, 16  ;;  %v4182_v12 = vshll.u32 %v9599_v52, 16  ;;  %v4177_v48 = vsel %vm12174_vm4, %v4172_v40, %v4176_v57  ;;  %v8516_v26 = vrot.slane %v8514_v15, 5 }
 0x261   : > { %11195 = vmatprep.mubr.msk.bf16.mxu0 %vm290_vm1, %v10202_v18  ;;  %v4188_v42 = vshll.u32 %v9600_v29, 16  ;;  %v4192_v37 = vshrl.u32 %v9600_v29, 16  ;;  %v9619_v19 = vcombine.low %v4167_v58, %v4177_v48  ;;  %v8502_v61 = vrot.slane %v8501_v53, 4  ;;  %v10188_v53 = vld [vmem:[%s12061_s9 + $0x32c] sm:$0x1] }
 0x262   : > { %v8511_v7 = vor.u32 %v8510_v11, %v8506_v1  ;;  %v4181_v25 = vrot.slane %v4179_v35, 4  ;;  %v4184_v36 = vrot.slane %v4182_v12, 5  ;;  %v4198_v0 = vshll.u32 %v9601_v22, 16 }
 0x263   : > { %v4190_v51 = vrot.slane %v4188_v42, 5  ;;  %v4194_v59 = vrot.slane %v4192_v37, 4  ;;  %10924 = vmatmul.mubr.msk.bf16.gmra.mrb[24].mxu1 %vm290_vm1, %v9619_v19  ;;  %v8507_v27 = vsel %vm12174_vm4, %v8502_v61, %v8506_v1  ;;  %v8519_v50 = vshrl.u32 %v10183_v28, 16 }
 0x264   : > { %v8512_v24 = vrot.slane %v8511_v7, 4  ;;  %v8522_v54 = vshll.u32 %v10183_v28, 16  ;;  %v4185_v45 = vor.u32 %v4184_v36, %v4181_v25  ;;  %v4200_v20 = vrot.slane %v4198_v0, 5 }
 0x265   : > { %v4195_v30 = vor.u32 %v4194_v59, %v4190_v51  ;;  %v8528_v33 = vshll.u32 %v10184_v55, 16  ;;  %v8521_v60 = vrot.slane %v8519_v50, 4  ;;  %v8532_v17 = vshrl.u32 %v10184_v55, 16 }
 0x266   : > { %v8517_v31 = vsel %vm12174_vm4, %v8512_v24, %v8516_v26  ;;  %v8524_v4 = vrot.slane %v8522_v54, 5  ;;  %v4186_v6 = vrot.slane %v4185_v45, 4  ;;  %v8538_v39 = vshll.u32 %v10185_v8, 16  ;;  %v13671_v8 = vld [vmem:[%s13780_s2] ss:$0 sm:$0xff] }
 0x267   : > { %v10203_v13 = vcombine.low %v8507_v27, %v8517_v31  ;;  %v4196_v34 = vrot.slane %v4195_v30, 4  ;;  %v8530_v3 = vrot.slane %v8528_v33, 5  ;;  %v8534_v47 = vrot.slane %v8532_v17, 4 }
 0x268   : > { %v8525_v44 = vor.u32 %v8524_v4, %v8521_v60  ;;  %v4203_v21 = vshrl.u32 %v9602_v62, 16  ;;  %v4191_v38 = vsel %vm12174_vm4, %v4186_v6, %v4190_v51  ;;  %v4206_v46 = vshll.u32 %v9602_v62, 16 }
 0x269   : > { %11196 = vmatmul.mubr.msk.bf16.gmra.mrb[24].mxu0 %vm290_vm1, %v10203_v13  ;;  %v4201_v49 = vsel %vm12174_vm4, %v4196_v34, %v4200_v20  ;;  %v4212_v10 = vshll.u32 %v9603_v32, 16  ;;  %v8535_v41 = vor.u32 %v8534_v47, %v8530_v3  ;;  %v8540_v57 = vrot.slane %v8538_v39, 5 }
 0x26a   : > { %v9620_v43 = vcombine.low %v4191_v38, %v4201_v49  ;;  %v8526_v23 = vrot.slane %v8525_v44, 4  ;;  %v4205_v52 = vrot.slane %v4203_v21, 4  ;;  %v4208_v16 = vrot.slane %v4206_v46, 5 }
 0x26b   : > { %v4214_v2 = vrot.slane %v4212_v10, 5  ;;  %v4216_v1 = vshrl.u32 %v9603_v32, 16  ;;  %v8536_v29 = vrot.slane %v8535_v41, 4  ;;  %v4222_v18 = vshll.u32 %v9604_v56, 16 }
 0x26c   : > { %10927 = vmatprep.mubr.msk.bf16.mxu1 %vm290_vm1, %v9620_v43  ;;  %v8531_v63 = vsel %vm12174_vm4, %v8526_v23, %v8530_v3  ;;  %v8543_v58 = vshrl.u32 %v10186_v5, 16  ;;  %v4209_v40 = vor.u32 %v4208_v16, %v4205_v52  ;;  %v8546_v11 = vshll.u32 %v10186_v5, 16 }
 0x26d   : > { %v4218_v15 = vrot.slane %v4216_v1, 4  ;;  %v8552_v22 = vshll.u32 %v10187_v9, 16  ;;  %v8541_v35 = vsel %vm12174_vm4, %v8536_v29, %v8540_v57  ;;  %v4224_v12 = vrot.slane %v4222_v18, 5 }
 0x26e   : > { %v8545_v48 = vrot.slane %v8543_v58, 4  ;;  %v8556_v26 = vshrl.u32 %v10187_v9, 16  ;;  %v10204_v42 = vcombine.low %v8531_v63, %v8541_v35  ;;  %v4210_v37 = vrot.slane %v4209_v40, 4 }
 0x26f   : > { %v4219_v28 = vor.u32 %v4218_v15, %v4214_v2  ;;  %v8548_v19 = vrot.slane %v8546_v11, 5  ;;  %v8554_v61 = vrot.slane %v8552_v22, 5  ;;  %v8562_v25 = vshll.u32 %v10188_v53, 16 }
 0x270   : > { %v8558_v7 = vrot.slane %v8556_v26, 4  ;;  %11199 = vmatprep.mubr.msk.bf16.mxu0 %vm290_vm1, %v10204_v42  ;;  %v4215_v55 = vsel %vm12174_vm4, %v4210_v37, %v4214_v2 }
 0x271   : > { %v4220_v36 = vrot.slane %v4219_v28, 4  ;;  %v8549_v51 = vor.u32 %v8548_v19, %v8545_v48  ;;  %v8564_v0 = vrot.slane %v8562_v25, 5 }
 0x272   : > { %v8559_v59 = vor.u32 %v8558_v7, %v8554_v61 }
 0x273   : > { %v4225_v27 = vsel %vm12174_vm4, %v4220_v36, %v4224_v12  ;;  %v8550_v24 = vrot.slane %v8549_v51, 4 }
 0x274   : > { %v9621_v50 = vcombine.low %v4215_v55, %v4225_v27  ;;  %v8560_v54 = vrot.slane %v8559_v59, 4 }
 0x275   : > { %v8555_v45 = vsel %vm12174_vm4, %v8550_v24, %v8554_v61 }
 0x276   : > { %10928 = vmatmul.mubr.msk.bf16.gmra.mrb[28].mxu1 %vm290_vm1, %v9621_v50  ;;  %v8565_v30 = vsel %vm12174_vm4, %v8560_v54, %v8564_v0 }
 0x277   : > { %v10205_v20 = vcombine.low %v8555_v45, %v8565_v30 }
 0x279   : > { %11200 = vmatmul.mubr.msk.bf16.gmra.mrb[28].mxu0 %vm290_vm1, %v10205_v20 }
 0x2fe   : > { %v10901_v33 = vpop.f32.mrb[0].mxu1 }
 0x2ff   : > { %v4361_v62 = vpop.f32.mrb[1].mxu1  ;;  %v11203_v31 = vadd.f32 %v10901_v33, %v13671_v8 }
 0x300   : > { %v10902_v60 = vpop.f32.mrb[2].mxu1  ;;  %v11205_v4 = vadd.f32 %v13671_v8, %v4361_v62 }
 0x301   : > { %v4364_v17 = vpop.f32.mrb[3].mxu1  ;;  %v11207_v14 = vadd.f32 %v10902_v60, %v13671_v8 }
 0x302   : > { %v11209_v13 = vadd.f32 %v13671_v8, %v4364_v17 }
 0x303   : > { %v11173_v32 = vpop.f32.mrb[0].mxu0 }
 0x304   : > { %v11204_v6 = vadd.f32 %v11203_v31, %v11173_v32  ;;  %v8701_v34 = vpop.f32.mrb[1].mxu0 }
 0x305   : > { %v11206_v3 = vadd.f32 %v11205_v4, %v8701_v34  ;;  %v11174_v44 = vpop.f32.mrb[2].mxu0 }
 0x306   : > { %v11208_v47 = vadd.f32 %v11207_v14, %v11174_v44  ;;  %v8704_v39 = vpop.f32.mrb[3].mxu0  ;;  %v10905_v21 = vpop.f32.mrb[4].mxu1  ;;  %v8862_v56 = vmax.f32 %v11204_v6, 0.0 }
 0x307   : > { %v11210_v38 = vadd.f32 %v11209_v13, %v8704_v39  ;;  %v4377_v49 = vpop.f32.mrb[5].mxu1  ;;  %v11211_v10 = vadd.f32 %v10905_v21, %v13671_v8  ;;  %v8860_v43 = vmax.f32 %v11206_v3, 0.0 }
 0x308   : > { %v8863_v46 = vmax.f32 %v11208_v47, 0.0  ;;  %v10906_v5 = vpop.f32.mrb[6].mxu1  ;;  %v11213_v41 = vadd.f32 %v13671_v8, %v4377_v49 }
 0x309   : > { %v8861_v23 = vmax.f32 %v11210_v38, 0.0  ;;  %v4380_v57 = vpop.f32.mrb[7].mxu1  ;;  %v11215_v52 = vadd.f32 %v10906_v5, %v13671_v8 }
 0x30a   : > { %v10300_v9 = vpack.c.bf16 %v8863_v46, %v8862_v56  ;;  %v11217_v1 = vadd.f32 %v13671_v8, %v4380_v57 }
 0x30b   : > { %v10295_v16 = vpack.c.bf16 %v8861_v23, %v8860_v43  ;;  %v11177_v2 = vpop.f32.mrb[4].mxu0 }
 0x30c   : > { %10372 = vst [vmem:[%s13684_s6 + $0x8] sm:$0xff] %v10300_v9   ;;  %v11212_v63 = vadd.f32 %v11211_v10, %v11177_v2  ;;  %v8717_v29 = vpop.f32.mrb[5].mxu0 }
 0x30d   : > { %10296 = vst [vmem:[%s13684_s6] sm:$0xff] %v10295_v16   ;;  %v11214_v18 = vadd.f32 %v11213_v41, %v8717_v29  ;;  %v11178_v58 = vpop.f32.mrb[6].mxu0 }
 0x30e   : > { %v11216_v40 = vadd.f32 %v11215_v52, %v11178_v58  ;;  %v8720_v15 = vpop.f32.mrb[7].mxu0  ;;  %v10909_v53 = vpop.f32.mrb[8].mxu1  ;;  %v8866_v35 = vmax.f32 %v11212_v63, 0.0 }
 0x30f   : > { %v11218_v11 = vadd.f32 %v11217_v1, %v8720_v15  ;;  %v4393_v22 = vpop.f32.mrb[9].mxu1  ;;  %v11219_v48 = vadd.f32 %v10909_v53, %v13671_v8  ;;  %v8864_v42 = vmax.f32 %v11214_v18, 0.0 }
 0x310   : > { %v8867_v12 = vmax.f32 %v11216_v40, 0.0  ;;  %v10910_v26 = vpop.f32.mrb[10].mxu1  ;;  %v11221_v28 = vadd.f32 %v13671_v8, %v4393_v22 }
 0x311   : > { %v8865_v37 = vmax.f32 %v11218_v11, 0.0  ;;  %v4396_v19 = vpop.f32.mrb[11].mxu1  ;;  %v11223_v7 = vadd.f32 %v10910_v26, %v13671_v8 }
 0x312   : > { %v10310_v61 = vpack.c.bf16 %v8867_v12, %v8866_v35  ;;  %v11225_v36 = vadd.f32 %v13671_v8, %v4396_v19 }
 0x313   : > { %v10305_v25 = vpack.c.bf16 %v8865_v37, %v8864_v42  ;;  %v11181_v55 = vpop.f32.mrb[8].mxu0 }
 0x314   : > { %10374 = vst [vmem:[%s13684_s6 + $0x18] sm:$0xff] %v10310_v61   ;;  %v11220_v51 = vadd.f32 %v11219_v48, %v11181_v55  ;;  %v8733_v59 = vpop.f32.mrb[9].mxu0 }
 0x315   : > { %10373 = vst [vmem:[%s13684_s6 + $0x10] sm:$0xff] %v10305_v25   ;;  %v11222_v0 = vadd.f32 %v11221_v28, %v8733_v59  ;;  %v11182_v27 = vpop.f32.mrb[10].mxu0 }
 0x316   : > { %v11224_v24 = vadd.f32 %v11223_v7, %v11182_v27  ;;  %v8736_v50 = vpop.f32.mrb[11].mxu0  ;;  %v10913_v54 = vpop.f32.mrb[12].mxu1  ;;  %v8870_v20 = vmax.f32 %v11220_v51, 0.0 }
 0x317   : > { %v11226_v45 = vadd.f32 %v11225_v36, %v8736_v50  ;;  %v4409_v30 = vpop.f32.mrb[13].mxu1  ;;  %v11227_v62 = vadd.f32 %v10913_v54, %v13671_v8  ;;  %v8868_v60 = vmax.f32 %v11222_v0, 0.0 }
 0x318   : > { %v8871_v33 = vmax.f32 %v11224_v24, 0.0  ;;  %v10914_v31 = vpop.f32.mrb[14].mxu1  ;;  %v11229_v17 = vadd.f32 %v13671_v8, %v4409_v30 }
 0x319   : > { %v8869_v4 = vmax.f32 %v11226_v45, 0.0  ;;  %v4412_v14 = vpop.f32.mrb[15].mxu1  ;;  %v11231_v13 = vadd.f32 %v10914_v31, %v13671_v8 }
 0x31a   : > { %v10320_v32 = vpack.c.bf16 %v8871_v33, %v8870_v20  ;;  %v11233_v3 = vadd.f32 %v13671_v8, %v4412_v14 }
 0x31b   : > { %v10315_v6 = vpack.c.bf16 %v8869_v4, %v8868_v60  ;;  %v11185_v34 = vpop.f32.mrb[12].mxu0 }
 0x31c   : > { %10376 = vst [vmem:[%s13684_s6 + $0x28] sm:$0xff] %v10320_v32   ;;  %v11228_v44 = vadd.f32 %v11227_v62, %v11185_v34  ;;  %v8749_v47 = vpop.f32.mrb[13].mxu0 }
 0x31d   : > { %10375 = vst [vmem:[%s13684_s6 + $0x20] sm:$0xff] %v10315_v6   ;;  %v11230_v39 = vadd.f32 %v11229_v17, %v8749_v47  ;;  %v11186_v21 = vpop.f32.mrb[14].mxu0 }
 0x31e   : > { %v11232_v38 = vadd.f32 %v11231_v13, %v11186_v21  ;;  %v8752_v49 = vpop.f32.mrb[15].mxu0  ;;  %v10917_v56 = vpop.f32.mrb[16].mxu1  ;;  %v8874_v5 = vmax.f32 %v11228_v44, 0.0 }
 0x31f   : > { %v11234_v46 = vadd.f32 %v11233_v3, %v8752_v49  ;;  %v4425_v10 = vpop.f32.mrb[17].mxu1  ;;  %v11235_v23 = vadd.f32 %v10917_v56, %v13671_v8  ;;  %v8872_v57 = vmax.f32 %v11230_v39, 0.0 }
 0x320   : > { %v8875_v43 = vmax.f32 %v11232_v38, 0.0  ;;  %v10918_v41 = vpop.f32.mrb[18].mxu1  ;;  %v11237_v52 = vadd.f32 %v13671_v8, %v4425_v10 }
 0x321   : > { %v8873_v9 = vmax.f32 %v11234_v46, 0.0  ;;  %v4428_v16 = vpop.f32.mrb[19].mxu1  ;;  %v11239_v1 = vadd.f32 %v10918_v41, %v13671_v8 }
 0x322   : > { %v10330_v2 = vpack.c.bf16 %v8875_v43, %v8874_v5  ;;  %v11241_v18 = vadd.f32 %v13671_v8, %v4428_v16 }
 0x323   : > { %v10325_v63 = vpack.c.bf16 %v8873_v9, %v8872_v57  ;;  %v11189_v29 = vpop.f32.mrb[16].mxu0 }
 0x324   : > { %10378 = vst [vmem:[%s13684_s6 + $0x38] sm:$0xff] %v10330_v2   ;;  %v11236_v58 = vadd.f32 %v11235_v23, %v11189_v29  ;;  %v8765_v40 = vpop.f32.mrb[17].mxu0 }
 0x325   : > { %10377 = vst [vmem:[%s13684_s6 + $0x30] sm:$0xff] %v10325_v63   ;;  %v11238_v15 = vadd.f32 %v11237_v52, %v8765_v40  ;;  %v11190_v53 = vpop.f32.mrb[18].mxu0 }
 0x326   : > { %v11240_v11 = vadd.f32 %v11239_v1, %v11190_v53  ;;  %v8768_v22 = vpop.f32.mrb[19].mxu0  ;;  %v8878_v12 = vmax.f32 %v11236_v58, 0.0 }
 0x327   : > { %v11242_v35 = vadd.f32 %v11241_v18, %v8768_v22  ;;  %v8876_v26 = vmax.f32 %v11238_v15, 0.0  ;;  %v10921_v37 = vpop.f32.mrb[20].mxu1 }
 0x328   : > { %v8879_v48 = vmax.f32 %v11240_v11, 0.0  ;;  %v11243_v19 = vadd.f32 %v10921_v37, %v13671_v8  ;;  %v4441_v61 = vpop.f32.mrb[21].mxu1 }
 0x329   : > { %v8877_v42 = vmax.f32 %v11242_v35, 0.0  ;;  %v11245_v25 = vadd.f32 %v13671_v8, %v4441_v61  ;;  %v10922_v55 = vpop.f32.mrb[22].mxu1 }
 0x32a   : > { %v10340_v28 = vpack.c.bf16 %v8879_v48, %v8878_v12  ;;  %v11247_v51 = vadd.f32 %v10922_v55, %v13671_v8  ;;  %v4444_v59 = vpop.f32.mrb[23].mxu1 }
 0x32b   : > { %v10335_v7 = vpack.c.bf16 %v8877_v42, %v8876_v26  ;;  %v11193_v36 = vpop.f32.mrb[20].mxu0  ;;  %v11249_v24 = vadd.f32 %v13671_v8, %v4444_v59 }
 0x32c   : > { %10380 = vst [vmem:[%s13684_s6 + $0x48] sm:$0xff] %v10340_v28   ;;  %v11244_v0 = vadd.f32 %v11243_v19, %v11193_v36  ;;  %v8781_v27 = vpop.f32.mrb[21].mxu0 }
 0x32d   : > { %10379 = vst [vmem:[%s13684_s6 + $0x40] sm:$0xff] %v10335_v7   ;;  %v11246_v50 = vadd.f32 %v11245_v25, %v8781_v27  ;;  %v11194_v54 = vpop.f32.mrb[22].mxu0 }
 0x32e   : > { %v11248_v45 = vadd.f32 %v11247_v51, %v11194_v54  ;;  %v8784_v30 = vpop.f32.mrb[23].mxu0  ;;  %v8882_v33 = vmax.f32 %v11244_v0, 0.0 }
 0x32f   : > { %v11250_v20 = vadd.f32 %v11249_v24, %v8784_v30  ;;  %v8880_v31 = vmax.f32 %v11246_v50, 0.0 }
 0x330   : > { %v8883_v62 = vmax.f32 %v11248_v45, 0.0 }
 0x331   : > { %v8881_v60 = vmax.f32 %v11250_v20, 0.0 }
 0x332   : > { %v10350_v4 = vpack.c.bf16 %v8883_v62, %v8882_v33 }
 0x333   : > { %v10345_v17 = vpack.c.bf16 %v8881_v60, %v8880_v31 }
 0x334   : > { %10382 = vst [vmem:[%s13684_s6 + $0x58] sm:$0xff] %v10350_v4  }
 0x335   : > { %10381 = vst [vmem:[%s13684_s6 + $0x50] sm:$0xff] %v10345_v17  }
 0x336   : > { %v10925_v14 = vpop.f32.mrb[24].mxu1 }
 0x337   : > { %v4457_v32 = vpop.f32.mrb[25].mxu1  ;;  %v11251_v13 = vadd.f32 %v10925_v14, %v13671_v8 }
 0x338   : > { %v10926_v6 = vpop.f32.mrb[26].mxu1  ;;  %v11253_v34 = vadd.f32 %v13671_v8, %v4457_v32 }
 0x339   : > { %v4460_v3 = vpop.f32.mrb[27].mxu1  ;;  %v11255_v44 = vadd.f32 %v10926_v6, %v13671_v8 }
 0x33a   : > { %v11257_v39 = vadd.f32 %v13671_v8, %v4460_v3 }
 0x33c   : > { %v11197_v47 = vpop.f32.mrb[24].mxu0 }
 0x33d   : > { %v11252_v21 = vadd.f32 %v11251_v13, %v11197_v47  ;;  %v8797_v38 = vpop.f32.mrb[25].mxu0 }
 0x33e   : > { %v11254_v49 = vadd.f32 %v11253_v34, %v8797_v38  ;;  %v11198_v56 = vpop.f32.mrb[26].mxu0 }
 0x33f   : > { %v11256_v46 = vadd.f32 %v11255_v44, %v11198_v56  ;;  %v8800_v10 = vpop.f32.mrb[27].mxu0  ;;  %v8886_v43 = vmax.f32 %v11252_v21, 0.0 }
 0x340   : > { %v11258_v5 = vadd.f32 %v11257_v39, %v8800_v10  ;;  %v8884_v41 = vmax.f32 %v11254_v49, 0.0 }
 0x341   : > { %v8887_v23 = vmax.f32 %v11256_v46, 0.0 }
 0x342   : > { %v8885_v57 = vmax.f32 %v11258_v5, 0.0 }
 0x343   : > { %v10360_v9 = vpack.c.bf16 %v8887_v23, %v8886_v43 }
 0x344   : > { %v10355_v52 = vpack.c.bf16 %v8885_v57, %v8884_v41 }
 0x345   : > { %10384 = vst [vmem:[%s13684_s6 + $0x68] sm:$0xff] %v10360_v9  }
 0x346   : > { %10383 = vst [vmem:[%s13684_s6 + $0x60] sm:$0xff] %v10355_v52  }
 0x349   : > { %v10929_v16 = vpop.f32.mrb[28].mxu1 }
 0x34a   : > { %v11259_v2 = vadd.f32 %v10929_v16, %v13671_v8  ;;  %v4473_v1 = vpop.f32.mrb[29].mxu1 }
 0x34b   : > { %v11261_v63 = vadd.f32 %v13671_v8, %v4473_v1  ;;  %v10930_v29 = vpop.f32.mrb[30].mxu1 }
 0x34c   : > { %v11201_v18 = vpop.f32.mrb[28].mxu0  ;;  %v11263_v58 = vadd.f32 %v10930_v29, %v13671_v8  ;;  %v4476_v40 = vpop.f32.mrb[31].mxu1 }
 0x34d   : > { %v11260_v15 = vadd.f32 %v11259_v2, %v11201_v18  ;;  %v8813_v53 = vpop.f32.mrb[29].mxu0  ;;  %v11265_v11 = vadd.f32 %v13671_v8, %v4476_v40 }
 0x34e   : > { %v11262_v22 = vadd.f32 %v11261_v63, %v8813_v53  ;;  %v11202_v35 = vpop.f32.mrb[30].mxu0 }
 0x34f   : > { %v11264_v12 = vadd.f32 %v11263_v58, %v11202_v35  ;;  %v8816_v48 = vpop.f32.mrb[31].mxu0  ;;  %v8890_v42 = vmax.f32 %v11260_v15, 0.0 }
 0x350   : > { %v11266_v26 = vadd.f32 %v11265_v11, %v8816_v48  ;;  %v8888_v28 = vmax.f32 %v11262_v22, 0.0 }
 0x351   : > { %v8891_v37 = vmax.f32 %v11264_v12, 0.0 }
 0x352   : > { %v8889_v19 = vmax.f32 %v11266_v26, 0.0 }
 0x353   : > { %v10370_v61 = vpack.c.bf16 %v8891_v37, %v8890_v42 }
 0x354   : > { %v10365_v8 = vpack.c.bf16 %v8889_v19, %v8888_v28 }
 0x355   : > { %10386 = vst [vmem:[%s13684_s6 + $0x78] sm:$0xff] %v10370_v61  }
 0x356   : > { %10385 = vst [vmem:[%s13684_s6 + $0x70] sm:$0xff] %v10365_v8  }
 0x357   : > { %11916 = shalt.err (!%p11913_p3)
}
 0x358   : > { %s11917_s26 = scalar_lea.hbm %s13729_s17, 2048  ;;  %s11921_s29 = scalar_lea.hbm %s13781_s3, 4096 }
 0x359   : > { %p11918_p4 = scmp.ne.s32.totalorder %s13729_s17, %s11917_s26  ;;  %p11922_p9 = scmp.lt.u32.totalorder %s13729_s17, %s13781_s3 }
 0x35a   : > { %p11923_p10 = scmp.lt.u32.totalorder %s11921_s29, %s11917_s26  ;;  %p11925_p12 = scmp.lt.u32.totalorder %s11917_s26, %s13729_s17 }
 0x35b   : > { %p11919_p7 = pnand %p11918_p4, %p12028_p5 }
 0x35c   : > { %p11924_p11 = por %p11923_p10, %p11922_p9 }
 0x35d   : > { %p11920_p8 = pneg %p11919_p7 }
 0x35e   : > { %p11926_p13 = por %p11925_p12, %p11924_p11 }
 0x360   : > { %p11927_p0 = pnand %p11926_p13, %p11920_p8 }
 0x362   : > { %11930 = shalt.err (!%p11927_p0)
}
 0x363   : > { %s11968_s4 = smov 64   ;;  %s11969_s5 = smov 4  }
 0x364   : > { %11732 = dma.vmem_to_hbm [thread:$0]  (%p12028_p5), %s13731_s8, 2048, %s13729_s17, %s13737_s16, %s11968_s4, %s11968_s4, %s11969_s5  }
 0x365 PF: > { %p11738_p1 = scmp.ge.s32.totalorder %s11965_s15, 2  ;;  %s9081_s6 = sand.u32 1, %s11953_s12  }
 0x366   : > { %s9082_s7 = scalar_lea.sflag [#allocation3], %s9081_s6 }
 0x367   : > { %p11735_p2 = pnand %p11738_p1, %p12032_p6 }
 0x369   : > { %11948 = dma.done.wait (!%p11735_p2), %s9082_s7, 2048  }
 0x36a   : > { %11950 = vsyncadd (!%p11735_p2), %s9082_s7, 4294965248  ;;  %p13_p3 = scmp.ge.s32.totalorder %s12015_s18, 4   ;;  %s13786_s12 = smov %s11957_s13 }
 0x36b   : > { %s13787_s13 = smov %s11961_s14  ;;  %s13788_s14 = smov %s12026_s21 }
 0x36c   : > { %s13789_s15 = smov %s12015_s18  ;;  %15 = sbr.rel (!%p13_p3) target bundleno = 3 (0x3), region = 89 }
 0x373   :  { %9087 = vsyncpa [#allocation3], 1 }
 0x374   :  { %9089 = vsyncpa [#allocation3 + $0x1], 1 }

</bundles_post_ra>
